<compile_context>
chip_gen: v7x
topology: tpu7x:2x2x1
jax: 0.10.0
libtpu: 0.0.40
codegen_flags: <defaults>
</compile_context>

<pallas_src>
import numpy as np
import jax
import jax.numpy as jnp
from jax.experimental import pallas as pl
from jax.experimental.pallas import tpu as pltpu

# --------------------------- model hyperparameters ---------------------------
DENSE_UNITS = [62, 32]
K_SIZE1 = 5
K_STRIDE1 = 2
NB_KERNEL1 = 32
N_LINEAR_FEATURES = 2          # ['position', 'pips']
N_ACTIONS = 3                  # train_env.action_space.n (buy / sell / hold)
N_INPUT_CHANNELS = 4
INPUT_WIDTH = 16               # small, consistent with the module

LANE = 128                     # TPU lane width (pad widths to this)
AUX_ROWS = 8                   # packed bias / linear-weight slab (sublane-full)


def _round_up(x, m):
    return (x + m - 1) // m * m


# ------------------------------- Pallas kernel -------------------------------
def _fused_qfunc_kernel(x_ref, xlin_ref, wc_ref, w1i_ref, aux_ref,
                        w2_ref, w3_ref, o_ref):
    # packed f32 slab: row0 conv bias (spatially repeated), rows1-3 fc biases,
    # rows4-5 fc1 weights for the 2 linear features (all zero-padded to lanes)
    aux = aux_ref[...]                           # (8, 1152) f32
    bc = aux[0:1, :]                             # (1, 1152)
    b1 = aux[1:2, :LANE]                         # (1, 128)
    b2 = aux[2:3, :LANE]
    b3 = aux[3:4, :LANE]
    w1l0 = aux[4:5, :LANE]
    w1l1 = aux[5:6, :LANE]

    # conv layer expressed as a dense matmul (weight pre-scattered at init);
    # bf16 operands into the MXU, f32 accumulation, f32 bias/ReLU on the VPU.
    x = x_ref[...].astype(jnp.bfloat16)
    h = jnp.dot(x, wc_ref[...], preferred_element_type=jnp.float32)
    h = jnp.maximum(h + bc, 0.0)                                 # [TB, 1152]

    # fc1: image part on the MXU + rank-2 VPU update for the 2 linear features
    xl = xlin_ref[...]                                           # [TB, 2] f32
    h1 = jnp.dot(h.astype(jnp.bfloat16), w1i_ref[...],
                 preferred_element_type=jnp.float32)
    h1 = h1 + xl[:, 0:1] * w1l0 + xl[:, 1:2] * w1l1 + b1
    h1 = jnp.maximum(h1, 0.0)                                    # [TB, 128] (62 live)

    # fc2
    h2 = jnp.dot(h1.astype(jnp.bfloat16), w2_ref[...],
                 preferred_element_type=jnp.float32)
    h2 = jnp.maximum(h2 + b2, 0.0)                               # [TB, 128] (32 live)

    # fc3 (reference activates the final action-value layer too)
    h3 = jnp.dot(h2.astype(jnp.bfloat16), w3_ref[...],
                 preferred_element_type=jnp.float32)
    o_ref[...] = jnp.maximum(h3 + b3, 0.0)                       # [TB, 128] (3 live)


# --------------------------- batch-tile selection -----------------------------
def _pick_batch_tile(b8, cap=512, step_cost_rows=64):
    """Batch tile <= cap rows: minimise padded work + per-step overhead.

    For batches > 128 rows we require >= 2 grid steps so the "parallel" grid
    axis can shard across v7x's two TensorCores (harmless extra step on
    v5e/v6e).  Tiny batches run as a single tile.
    """
    if b8 <= 128:
        return b8
    best_tb, best_key = None, None
    for tb in range(8, min(cap, b8) + 1, 8):
        steps = -(-b8 // tb)
        if steps < 2:
            continue
        # padded rows of matmul work + a fixed per-step overhead, prefer big tiles
        key = (steps * tb + steps * step_cost_rows, -tb)
        if best_key is None or key < best_key:
            best_tb, best_key = tb, key
    return best_tb if best_tb is not None else b8


# ------------------------------ forward wrapper -------------------------------
def q_func_forward(prepped, x_img, x_linear):
    """Forward pass of Q_Func.  x_img: [B, C, H, W] NCHW; x_linear: [B, 2]."""
    B = x_img.shape[0]
    d_in = N_INPUT_CHANNELS * INPUT_WIDTH * INPUT_WIDTH          # 1024
    d_conv = prepped["wc"].shape[1]                              # 1152

    x_flat = x_img.reshape(B, d_in)                              # free reshape (NCHW)

    b8 = _round_up(B, 8)
    tb = _pick_batch_tile(b8)                                    # adaptive batch tile
    b_pad = _round_up(b8, tb)
    if b_pad != B:
        x_flat = jnp.pad(x_flat, ((0, b_pad - B), (0, 0)))
        x_lin = jnp.pad(x_linear, ((0, b_pad - B), (0, 0)))
    else:
        x_lin = x_linear

    def _w_spec(shape):
        # Grid-invariant operand: constant index_map + single buffer (no point
        # double-buffering a weight that never changes across grid steps).
        nd = len(shape)
        return pl.BlockSpec(shape, lambda i: (0,) * nd,
                            pipeline_mode=pl.Buffered(1))

    q_pad = pl.pallas_call(
        _fused_qfunc_kernel,
        out_shape=jax.ShapeDtypeStruct((b_pad, LANE), jnp.float32),
        grid_spec=pltpu.PrefetchScalarGridSpec(
            num_scalar_prefetch=0,
            grid=(b_pad // tb,),
            in_specs=[
                pl.BlockSpec((tb, d_in), lambda i: (i, 0)),                # x
                pl.BlockSpec((tb, N_LINEAR_FEATURES), lambda i: (i, 0)),   # x_linear
                _w_spec((d_in, d_conv)),                                   # conv dense W (bf16)
                _w_spec((d_conv, LANE)),                                   # fc1 img W (bf16)
                _w_spec((AUX_ROWS, d_conv)),                               # biases + fc1 lin W (f32)
                _w_spec((LANE, LANE)),                                     # fc2 W (bf16)
                _w_spec((LANE, LANE)),                                     # fc3 W (bf16)
            ],
            out_specs=pl.BlockSpec((tb, LANE), lambda i: (i, 0)),
        ),
        compiler_params=pltpu.CompilerParams(
            dimension_semantics=("parallel",),
            vmem_limit_bytes=48 * 1024 * 1024,
        ),
    )(x_flat, x_lin, prepped["wc"], prepped["w1i"], prepped["aux"],
      prepped["w2"], prepped["w3"])

    # TODO(synk): DiscreteActionValue is a pfrl/chainerrl wrapper (argmax/max
    # bookkeeping), not a tensor op; we return the raw q-values it wraps.
    return q_pad[:B, :N_ACTIONS]


# ----------------------- one-time host-side param prep ------------------------
def prepare_params(params):
    """Hoists all weight reshapes/transposes/casts out of the per-call path.

    - Scatters the [O,C,K,K] conv weight into an exact dense [1024, 1152]
      matrix mapping the NCHW-flattened image to the NCHW-flattened conv out
      (torch nn.Flatten order baked in), stored bf16 for the MXU.
    - Splits fc1 into image / linear-feature parts, transposes all fc weights
      to [in, out], zero-pads widths to 128 lanes (pads are inert through
      ReLU) and stores the matmul weights in bf16.
    - Packs the four biases and the 2-row fc1-linear weight into one (8,1152)
      f32 slab (single tiny operand, sliced in-kernel).
    """
    O, C, K, _ = params["conv_w"].shape
    oh_n = ow_n = (INPUT_WIDTH - K) // K_STRIDE1 + 1            # 6
    d_in = C * INPUT_WIDTH * INPUT_WIDTH                        # 1024
    d_conv = O * oh_n * ow_n                                    # 1152

    w = np.asarray(params["conv_w"], np.float32)
    o, oh, ow, c, kh, kw = np.meshgrid(
        np.arange(O), np.arange(oh_n), np.arange(ow_n),
        np.arange(C), np.arange(K), np.arange(K), indexing="ij")
    rows = (c * INPUT_WIDTH + (K_STRIDE1 * oh + kh)) * INPUT_WIDTH \
        + (K_STRIDE1 * ow + kw)                                  # NCHW flat input idx
    cols = (o * oh_n + oh) * ow_n + ow                           # NCHW flat output idx
    wc = np.zeros((d_in, d_conv), np.float32)
    wc[rows.ravel(), cols.ravel()] = w[o.ravel(), c.ravel(), kh.ravel(), kw.ravel()]

    def pad_to(a, n_rows, n_cols):
        out = np.zeros((n_rows, n_cols), np.float32)
        out[:a.shape[0], :a.shape[1]] = a
        return out

    fc1_w = np.asarray(params["fc1_w"], np.float32)              # [62, 1154]
    fc2_w = np.asarray(params["fc2_w"], np.float32)              # [32, 62]
    fc3_w = np.asarray(params["fc3_w"], np.float32)              # [3, 32]

    aux = np.zeros((AUX_ROWS, d_conv), np.float32)
    aux[0, :] = np.repeat(np.asarray(params["conv_b"], np.float32), oh_n * ow_n)
    aux[1, :DENSE_UNITS[0]] = np.asarray(params["fc1_b"], np.float32)
    aux[2, :DENSE_UNITS[1]] = np.asarray(params["fc2_b"], np.float32)
    aux[3, :N_ACTIONS] = np.asarray(params["fc3_b"], np.float32)
    aux[4:4 + N_LINEAR_FEATURES, :DENSE_UNITS[0]] = fc1_w[:, d_conv:].T

    return {
        "wc": jnp.asarray(wc, jnp.bfloat16),
        "w1i": jnp.asarray(pad_to(fc1_w[:, :d_conv].T, d_conv, LANE), jnp.bfloat16),
        "aux": jnp.asarray(aux, jnp.float32),
        "w2": jnp.asarray(pad_to(fc2_w.T, LANE, LANE), jnp.bfloat16),
        "w3": jnp.asarray(pad_to(fc3_w.T, LANE, LANE), jnp.bfloat16),
    }


# ------------------------------- param init ----------------------------------
def init_params(key):
    out_spatial = (INPUT_WIDTH - K_SIZE1) // K_STRIDE1 + 1
    flat = out_spatial * out_spatial * NB_KERNEL1
    d0 = flat + N_LINEAR_FEATURES

    def _lin(k, fan_in, shape):
        bound = 1.0 / jnp.sqrt(jnp.float32(fan_in))
        return jax.random.uniform(k, shape, jnp.float32, -bound, bound)

    ks = jax.random.split(key, 8)
    fan_conv = N_INPUT_CHANNELS * K_SIZE1 * K_SIZE1
    return {
        "conv_w": _lin(ks[0], fan_conv,
                       (NB_KERNEL1, N_INPUT_CHANNELS, K_SIZE1, K_SIZE1)),
        "conv_b": _lin(ks[1], fan_conv, (NB_KERNEL1,)),
        "fc1_w": _lin(ks[2], d0, (DENSE_UNITS[0], d0)),
        "fc1_b": _lin(ks[3], d0, (DENSE_UNITS[0],)),
        "fc2_w": _lin(ks[4], DENSE_UNITS[0], (DENSE_UNITS[1], DENSE_UNITS[0])),
        "fc2_b": _lin(ks[5], DENSE_UNITS[0], (DENSE_UNITS[1],)),
        "fc3_w": _lin(ks[6], DENSE_UNITS[1], (N_ACTIONS, DENSE_UNITS[1])),
        "fc3_b": _lin(ks[7], DENSE_UNITS[1], (N_ACTIONS,)),
    }


# --------------------------- plain-JAX reference ------------------------------
def _reference_forward(params, x_img, x_lin):
    y = jax.lax.conv_general_dilated(
        x_img, params["conv_w"], window_strides=(K_STRIDE1, K_STRIDE1),
        padding="VALID", dimension_numbers=("NCHW", "OIHW", "NCHW"))
    y = jnp.maximum(y + params["conv_b"][None, :, None, None], 0.0)
    h = y.reshape(y.shape[0], -1)
    h = jnp.concatenate([h, x_lin], axis=1)
    h = jnp.maximum(h @ params["fc1_w"].T + params["fc1_b"], 0.0)
    h = jnp.maximum(h @ params["fc2_w"].T + params["fc2_b"], 0.0)
    h = jnp.maximum(h @ params["fc3_w"].T + params["fc3_b"], 0.0)
    return h


# ----------------------------------- main -------------------------------------
if __name__ == "__main__":
    key = jax.random.PRNGKey(0)
    k_img, k_lin, k_par = jax.random.split(key, 3)

    params = init_params(k_par)
    prepped = prepare_params(params)          # one-time host-side weight prep
    fwd = jax.jit(q_func_forward)

    # small case from the module (single grid step)
    batch = 2
    x_img = jax.random.normal(
        k_img, (batch, N_INPUT_CHANNELS, INPUT_WIDTH, INPUT_WIDTH), jnp.float32)
    x_linear = jax.random.normal(k_lin, (batch, N_LINEAR_FEATURES), jnp.float32)

    q_values = jax.block_until_ready(fwd(prepped, x_img, x_linear))
    assert q_values.shape == (batch, N_ACTIONS)
    assert q_values.dtype == jnp.float32
    assert bool(jnp.all(jnp.isfinite(q_values)))

    ref = _reference_forward(params, x_img, x_linear)
    assert bool(jnp.allclose(q_values, ref, rtol=5e-2, atol=5e-2)), (
        "max abs diff vs reference: "
        + str(float(jnp.max(jnp.abs(q_values - ref)))))

    # larger batch: exercises adaptive tiling + the 2-step "parallel" grid
    batch2 = 300
    x_img2 = jax.random.normal(
        k_img, (batch2, N_INPUT_CHANNELS, INPUT_WIDTH, INPUT_WIDTH), jnp.float32)
    x_linear2 = jax.random.normal(k_lin, (batch2, N_LINEAR_FEATURES), jnp.float32)

    q2 = jax.block_until_ready(fwd(prepped, x_img2, x_linear2))
    ref2 = _reference_forward(params, x_img2, x_linear2)
    assert q2.shape == (batch2, N_ACTIONS)
    assert bool(jnp.allclose(q2, ref2, rtol=5e-2, atol=5e-2)), (
        "max abs diff vs reference (batch2): "
        + str(float(jnp.max(jnp.abs(q2 - ref2)))))

    print("KERNEL_OK")
</pallas_src>

<mosaic_0001>
module attributes {stable_mosaic.version = 11 : i64} {
  func.func @_fused_qfunc_kernel(%arg0: i32, %arg1: memref<8x1024xf32, #tpu.memory_space<vmem>>, %arg2: memref<8x2xf32, #tpu.memory_space<vmem>>, %arg3: memref<1024x1152xbf16, #tpu.memory_space<vmem>>, %arg4: memref<1152x128xbf16, #tpu.memory_space<vmem>>, %arg5: memref<8x1152xf32, #tpu.memory_space<vmem>>, %arg6: memref<128x128xbf16, #tpu.memory_space<vmem>>, %arg7: memref<128x128xbf16, #tpu.memory_space<vmem>>, %arg8: memref<8x128xf32, #tpu.memory_space<vmem>>) attributes {dimension_semantics = [#tpu.dimension_semantics<parallel>], iteration_bounds = array<i64: 1>, scalar_prefetch = 0 : i64, scratch_operands = 0 : i64, tpu.core_type = #tpu.core_type<tc>, window_params = [{transform_indices = @transform_0, window_bounds = array<i64: 8, 1024>}, {transform_indices = @transform_1, window_bounds = array<i64: 8, 2>}, {pipeline_mode = #tpu.pipeline_mode<synchronous>, transform_indices = @transform_2, window_bounds = array<i64: 1024, 1152>}, {pipeline_mode = #tpu.pipeline_mode<synchronous>, transform_indices = @transform_3, window_bounds = array<i64: 1152, 128>}, {pipeline_mode = #tpu.pipeline_mode<synchronous>, transform_indices = @transform_4, window_bounds = array<i64: 8, 1152>}, {pipeline_mode = #tpu.pipeline_mode<synchronous>, transform_indices = @transform_5, window_bounds = array<i64: 128, 128>}, {pipeline_mode = #tpu.pipeline_mode<synchronous>, transform_indices = @transform_6, window_bounds = array<i64: 128, 128>}, {transform_indices = @transform_7, window_bounds = array<i64: 8, 128>}]} {
    %c0 = arith.constant 0 : index
    %c0_0 = arith.constant 0 : index
    %0 = vector.load %arg5[%c0, %c0_0] : memref<8x1152xf32, #tpu.memory_space<vmem>>, vector<8x1152xf32>
    %1 = vector.extract_strided_slice %0 {offsets = [0, 0], sizes = [1, 1152], strides = [1, 1]} : vector<8x1152xf32> to vector<1x1152xf32>
    %2 = vector.extract_strided_slice %0 {offsets = [1, 0], sizes = [1, 128], strides = [1, 1]} : vector<8x1152xf32> to vector<1x128xf32>
    %3 = vector.extract_strided_slice %0 {offsets = [2, 0], sizes = [1, 128], strides = [1, 1]} : vector<8x1152xf32> to vector<1x128xf32>
    %4 = vector.extract_strided_slice %0 {offsets = [3, 0], sizes = [1, 128], strides = [1, 1]} : vector<8x1152xf32> to vector<1x128xf32>
    %5 = vector.extract_strided_slice %0 {offsets = [4, 0], sizes = [1, 128], strides = [1, 1]} : vector<8x1152xf32> to vector<1x128xf32>
    %6 = vector.extract_strided_slice %0 {offsets = [5, 0], sizes = [1, 128], strides = [1, 1]} : vector<8x1152xf32> to vector<1x128xf32>
    %c0_1 = arith.constant 0 : index
    %c0_2 = arith.constant 0 : index
    %7 = vector.load %arg1[%c0_1, %c0_2] : memref<8x1024xf32, #tpu.memory_space<vmem>>, vector<8x1024xf32>
    %8 = arith.truncf %7 : vector<8x1024xf32> to vector<8x1024xbf16>
    %c0_3 = arith.constant 0 : index
    %c0_4 = arith.constant 0 : index
    %9 = vector.load %arg3[%c0_3, %c0_4] : memref<1024x1152xbf16, #tpu.memory_space<vmem>>, vector<1024x1152xbf16>
    %cst = arith.constant dense<0.000000e+00> : vector<8x1152xf32>
    %10 = tpu.matmul %8, %9, %cst {dimension_numbers = #tpu.dot_dimension_numbers<[1], [0], [0], [1], [0, 0, 1, 1], [], []>} : vector<8x1024xbf16>, vector<1024x1152xbf16>, vector<8x1152xf32> -> vector<8x1152xf32>
    %11 = vector.broadcast %1 : vector<1x1152xf32> to vector<8x1152xf32>
    %12 = arith.addf %10, %11 : vector<8x1152xf32>
    %cst_5 = arith.constant 0.000000e+00 : f32
    %13 = vector.broadcast %cst_5 : f32 to vector<8x1152xf32>
    %14 = arith.maximumf %12, %13 : vector<8x1152xf32>
    %c0_6 = arith.constant 0 : index
    %c0_7 = arith.constant 0 : index
    %15 = vector.load %arg2[%c0_6, %c0_7] : memref<8x2xf32, #tpu.memory_space<vmem>>, vector<8x2xf32>
    %16 = arith.truncf %14 : vector<8x1152xf32> to vector<8x1152xbf16>
    %c0_8 = arith.constant 0 : index
    %c0_9 = arith.constant 0 : index
    %17 = vector.load %arg4[%c0_8, %c0_9] : memref<1152x128xbf16, #tpu.memory_space<vmem>>, vector<1152x128xbf16>
    %cst_10 = arith.constant dense<0.000000e+00> : vector<8x128xf32>
    %18 = tpu.matmul %16, %17, %cst_10 {dimension_numbers = #tpu.dot_dimension_numbers<[1], [0], [0], [1], [0, 0, 1, 1], [], []>} : vector<8x1152xbf16>, vector<1152x128xbf16>, vector<8x128xf32> -> vector<8x128xf32>
    %19 = vector.extract_strided_slice %15 {offsets = [0, 0], sizes = [8, 1], strides = [1, 1]} : vector<8x2xf32> to vector<8x1xf32>
    %20 = vector.broadcast %19 : vector<8x1xf32> to vector<8x128xf32>
    %21 = vector.broadcast %5 : vector<1x128xf32> to vector<8x128xf32>
    %22 = arith.mulf %20, %21 : vector<8x128xf32>
    %23 = arith.addf %18, %22 : vector<8x128xf32>
    %24 = vector.extract_strided_slice %15 {offsets = [0, 1], sizes = [8, 1], strides = [1, 1]} : vector<8x2xf32> to vector<8x1xf32>
    %25 = vector.broadcast %24 : vector<8x1xf32> to vector<8x128xf32>
    %26 = vector.broadcast %6 : vector<1x128xf32> to vector<8x128xf32>
    %27 = arith.mulf %25, %26 : vector<8x128xf32>
    %28 = arith.addf %23, %27 : vector<8x128xf32>
    %29 = vector.broadcast %2 : vector<1x128xf32> to vector<8x128xf32>
    %30 = arith.addf %28, %29 : vector<8x128xf32>
    %cst_11 = arith.constant 0.000000e+00 : f32
    %31 = vector.broadcast %cst_11 : f32 to vector<8x128xf32>
    %32 = arith.maximumf %30, %31 : vector<8x128xf32>
    %33 = arith.truncf %32 : vector<8x128xf32> to vector<8x128xbf16>
    %c0_12 = arith.constant 0 : index
    %c0_13 = arith.constant 0 : index
    %34 = vector.load %arg6[%c0_12, %c0_13] : memref<128x128xbf16, #tpu.memory_space<vmem>>, vector<128x128xbf16>
    %cst_14 = arith.constant dense<0.000000e+00> : vector<8x128xf32>
    %35 = tpu.matmul %33, %34, %cst_14 {dimension_numbers = #tpu.dot_dimension_numbers<[1], [0], [0], [1], [0, 0, 1, 1], [], []>} : vector<8x128xbf16>, vector<128x128xbf16>, vector<8x128xf32> -> vector<8x128xf32>
    %36 = vector.broadcast %3 : vector<1x128xf32> to vector<8x128xf32>
    %37 = arith.addf %35, %36 : vector<8x128xf32>
    %cst_15 = arith.constant 0.000000e+00 : f32
    %38 = vector.broadcast %cst_15 : f32 to vector<8x128xf32>
    %39 = arith.maximumf %37, %38 : vector<8x128xf32>
    %40 = arith.truncf %39 : vector<8x128xf32> to vector<8x128xbf16>
    %c0_16 = arith.constant 0 : index
    %c0_17 = arith.constant 0 : index
    %41 = vector.load %arg7[%c0_16, %c0_17] : memref<128x128xbf16, #tpu.memory_space<vmem>>, vector<128x128xbf16>
    %cst_18 = arith.constant dense<0.000000e+00> : vector<8x128xf32>
    %42 = tpu.matmul %40, %41, %cst_18 {dimension_numbers = #tpu.dot_dimension_numbers<[1], [0], [0], [1], [0, 0, 1, 1], [], []>} : vector<8x128xbf16>, vector<128x128xbf16>, vector<8x128xf32> -> vector<8x128xf32>
    %43 = vector.broadcast %4 : vector<1x128xf32> to vector<8x128xf32>
    %44 = arith.addf %42, %43 : vector<8x128xf32>
    %cst_19 = arith.constant 0.000000e+00 : f32
    %45 = vector.broadcast %cst_19 : f32 to vector<8x128xf32>
    %46 = arith.maximumf %44, %45 : vector<8x128xf32>
    %c0_20 = arith.constant 0 : index
    %c0_21 = arith.constant 0 : index
    %47 = vector.load %arg8[%c0_20, %c0_21] : memref<8x128xf32, #tpu.memory_space<vmem>>, vector<8x128xf32>
    tpu.vector_store %arg8[%c0_20, %c0_21], %46 {strides = array<i32>} : memref<8x128xf32, #tpu.memory_space<vmem>>, vector<8x128xf32>,
    return
  }
  func.func @transform_0(%arg0: i32) -> (i32, i32) {
    %c0_i32 = arith.constant 0 : i32
    %c0_i32_0 = arith.constant 0 : i32
    return %arg0, %c0_i32 : i32, i32
  }
  func.func @transform_1(%arg0: i32) -> (i32, i32) {
    %c0_i32 = arith.constant 0 : i32
    %c0_i32_0 = arith.constant 0 : i32
    return %arg0, %c0_i32 : i32, i32
  }
  func.func @transform_2(%arg0: i32) -> (i32, i32) {
    %c0_i32 = arith.constant 0 : i32
    %c0_i32_0 = arith.constant 0 : i32
    %c0_i32_1 = arith.constant 0 : i32
    return %c0_i32, %c0_i32_0 : i32, i32
  }
  func.func @transform_3(%arg0: i32) -> (i32, i32) {
    %c0_i32 = arith.constant 0 : i32
    %c0_i32_0 = arith.constant 0 : i32
    %c0_i32_1 = arith.constant 0 : i32
    return %c0_i32, %c0_i32_0 : i32, i32
  }
  func.func @transform_4(%arg0: i32) -> (i32, i32) {
    %c0_i32 = arith.constant 0 : i32
    %c0_i32_0 = arith.constant 0 : i32
    %c0_i32_1 = arith.constant 0 : i32
    return %c0_i32, %c0_i32_0 : i32, i32
  }
  func.func @transform_5(%arg0: i32) -> (i32, i32) {
    %c0_i32 = arith.constant 0 : i32
    %c0_i32_0 = arith.constant 0 : i32
    %c0_i32_1 = arith.constant 0 : i32
    return %c0_i32, %c0_i32_0 : i32, i32
  }
  func.func @transform_6(%arg0: i32) -> (i32, i32) {
    %c0_i32 = arith.constant 0 : i32
    %c0_i32_0 = arith.constant 0 : i32
    %c0_i32_1 = arith.constant 0 : i32
    return %c0_i32, %c0_i32_0 : i32, i32
  }
  func.func @transform_7(%arg0: i32) -> (i32, i32) {
    %c0_i32 = arith.constant 0 : i32
    %c0_i32_0 = arith.constant 0 : i32
    return %arg0, %c0_i32 : i32, i32
  }
}

</mosaic_0001>

<bundles_post_ra>
// kernel: q_func_forward.1
= control target key start
LH: loop header
LB: loop body
LE: loop exit
PB: predicated region body
PF: predicated region fallthrough
CT: control target
= control target key end

     0   :  { %12 = vsyncpa [#allocation3], 0  ;;  %s7918_s0 = inlined_call_operand.vmem [shape: f32[8,1024], index: 0, kind: input, shape index: {}]   ;;  %s7919_s1 = inlined_call_operand.vmem [shape: f32[8,2], index: 1, kind: input, shape index: {}]   ;;  %s7920_s2 = inlined_call_operand.hbm [shape: bf16[1024,1152], index: 2, kind: input, shape index: {}]   ;;  %s7921_s3 = inlined_call_operand.hbm [shape: bf16[1152,128], index: 3, kind: input, shape index: {}]   ;;  %s7922_s4 = inlined_call_operand.hbm [shape: f32[8,1152], index: 4, kind: input, shape index: {}]   ;;  %s7923_s5 = inlined_call_operand.hbm [shape: bf16[128,128], index: 5, kind: input, shape index: {}]   ;;  %s7924_s6 = inlined_call_operand.hbm [shape: bf16[128,128], index: 6, kind: input, shape index: {}]   ;;  %s7925_s7 = inlined_call_operand.vmem [shape: f32[8,128], index: 7, kind: output, shape index: {}]  }
   0x1   :  { %13 = vsyncpa [#allocation5], 0 }
   0x2   :  { %14 = vsyncpa [#allocation8], 0  ;;  %s7637_s24 = smov [#allocation4]   ;;  %s7521_s28 = scalar_lea.hbm %s7921_s3, 9216 }
   0x3   :  { %s36_s25 = sshll.u32 %s7637_s24, 4  ;;  %p7522_p0 = scmp.ne.s32.totalorder %s7921_s3, %s7521_s28  ;;  %s37_s25 = int_to_ptr.vmem [resolvable:$true] %s36_s25 }
   0x4   :  { %p7525_p1 = scmp.lt.u32.totalorder %s7521_s28, %s7921_s3 }
   0x6   :  { %p7527_p2 = pnand %p7525_p1, %p7522_p0 }
   0x8   :  { %7530 = shalt.err (!%p7527_p2)
}
   0x9   :  { %s7531_s10 = scalar_lea.vmem %s37_s25, 9216  ;;  %p7536_p4 = scmp.lt.s32.totalorder %s37_s25, %s37_s25 }
   0xa   :  { %p7532_p3 = scmp.ne.s32.totalorder %s37_s25, %s7531_s10  ;;  %p7537_p5 = scmp.lt.s32.totalorder %s7531_s10, %s7531_s10 }
   0xc   :  { %p7538_p6 = por %p7537_p5, %p7536_p4 }
   0xe   :  { %p7539_p7 = pnand %p7538_p6, %p7532_p3 }
  0x10   :  { %7542 = shalt.err (!%p7539_p7)
}
  0x11   :  { %s7638_s11 = smov 64   ;;  %s7639_s12 = smov 4  }
  0x12   :  { %42 = dma.hbm_to_vmem [thread:$0]  %s7921_s3, 9216, %s37_s25, [#allocation5], %s7638_s11, %s7638_s11, %s7639_s12  }
  0x13   :  { %s7640_s15 = smov [#allocation7]   ;;  %s7641_s17 = smov [#allocation2]  }
  0x14   :  { %s58_s16 = sshll.u32 %s7640_s15, 4  ;;  %s24_s18 = sshll.u32 %s7641_s17, 4  ;;  %s59_s16 = int_to_ptr.vmem [resolvable:$true] %s58_s16  ;;  %s25_s18 = int_to_ptr.vmem [resolvable:$true] %s24_s18 }
  0x15   :  { %s7543_s21 = scalar_lea.hbm %s7923_s5, 1024 }
  0x16   :  { %p7544_p8 = scmp.ne.s32.totalorder %s7923_s5, %s7543_s21  ;;  %p7547_p9 = scmp.lt.u32.totalorder %s7543_s21, %s7923_s5 }
  0x18   :  { %p7549_p10 = pnand %p7547_p9, %p7544_p8 }
  0x1a   :  { %7552 = shalt.err (!%p7549_p10)
}
  0x1b   :  { %s7553_s3 = scalar_lea.vmem %s59_s16, 1024  ;;  %p7558_p12 = scmp.lt.s32.totalorder %s59_s16, %s59_s16 }
  0x1c   :  { %p7554_p11 = scmp.ne.s32.totalorder %s59_s16, %s7553_s3  ;;  %p7559_p13 = scmp.lt.s32.totalorder %s7553_s3, %s7553_s3 }
  0x1e   :  { %p7560_p0 = por %p7559_p13, %p7558_p12 }
  0x20   :  { %p7561_p1 = pnand %p7560_p0, %p7554_p11 }
  0x22   :  { %7564 = shalt.err (!%p7561_p1)
}
  0x23   :  { %64 = dma.hbm_to_vmem [thread:$0]  %s7923_s5, 1024, %s59_s16, [#allocation8], %s7638_s11, %s7638_s11, %s7639_s12  }
  0x24   :  { %s7565_s30 = scalar_lea.hbm %s7920_s2, 73728 }
  0x25   :  { %p7566_p2 = scmp.ne.s32.totalorder %s7920_s2, %s7565_s30  ;;  %p7569_p3 = scmp.lt.u32.totalorder %s7565_s30, %s7920_s2 }
  0x27   :  { %p7571_p4 = pnand %p7569_p3, %p7566_p2 }
  0x29   :  { %7574 = shalt.err (!%p7571_p4)
}
  0x2a   :  { %s7575_s14 = scalar_lea.vmem %s25_s18, 73728  ;;  %p7580_p6 = scmp.lt.s32.totalorder %s25_s18, %s25_s18 }
  0x2b   :  { %p7576_p5 = scmp.ne.s32.totalorder %s25_s18, %s7575_s14  ;;  %p7581_p7 = scmp.lt.s32.totalorder %s7575_s14, %s7575_s14 }
  0x2d   :  { %p7582_p8 = por %p7581_p7, %p7580_p6 }
  0x2f   :  { %p7583_p9 = pnand %p7582_p8, %p7576_p5 }
  0x31   :  { %7586 = shalt.err (!%p7583_p9)
}
  0x32   :  { %s7642_s5 = smov 576   ;;  %s7643_s15 = smov 36  }
  0x33   :  { %30 = dma.hbm_to_vmem [thread:$0]  %s7920_s2, 73728, %s25_s18, [#allocation3], %s7642_s5, %s7642_s5, %s7643_s15  }
  0x34   :  { %s7644_s19 = smov [#allocation6]   ;;  %s7645_s21 = smov [#allocation9]  }
  0x35   :  { %s49_s20 = sshll.u32 %s7644_s19, 4  ;;  %s70_s22 = sshll.u32 %s7645_s21, 4  ;;  %s50_s20 = int_to_ptr.vmem [resolvable:$true] %s49_s20  ;;  %s71_s22 = int_to_ptr.vmem [resolvable:$true] %s70_s22 }
  0x36   :  { %s7587_s26 = scalar_lea.hbm %s7922_s4, 1152 }
  0x37   :  { %p7588_p10 = scmp.ne.s32.totalorder %s7922_s4, %s7587_s26  ;;  %p7591_p11 = scmp.lt.u32.totalorder %s7587_s26, %s7922_s4 }
  0x39   :  { %p7593_p12 = pnand %p7591_p11, %p7588_p10 }
  0x3b   :  { %7596 = shalt.err (!%p7593_p12)
}
  0x3c   :  { %s7597_s2 = scalar_lea.vmem %s50_s20, 1152  ;;  %p7602_p0 = scmp.lt.s32.totalorder %s50_s20, %s50_s20 }
  0x3d   :  { %p7598_p13 = scmp.ne.s32.totalorder %s50_s20, %s7597_s2  ;;  %p7603_p1 = scmp.lt.s32.totalorder %s7597_s2, %s7597_s2 }
  0x3f   :  { %p7604_p2 = por %p7603_p1, %p7602_p0 }
  0x41   :  { %p7605_p3 = pnand %p7604_p2, %p7598_p13 }
  0x43   :  { %7608 = shalt.err (!%p7605_p3)
}
  0x44   :  { %52 = dma.hbm_to_vmem [thread:$0]  %s7922_s4, 1152, %s50_s20, [#allocation5]  }
  0x45   :  { %s7609_s9 = scalar_lea.hbm %s7924_s6, 1024 }
  0x46   :  { %p7610_p4 = scmp.ne.s32.totalorder %s7924_s6, %s7609_s9  ;;  %p7613_p5 = scmp.lt.u32.totalorder %s7609_s9, %s7924_s6 }
  0x48   :  { %p7615_p6 = pnand %p7613_p5, %p7610_p4 }
  0x4a   :  { %7618 = shalt.err (!%p7615_p6)
}
  0x4b   :  { %s7619_s15 = scalar_lea.vmem %s71_s22, 1024  ;;  %p7624_p8 = scmp.lt.s32.totalorder %s71_s22, %s71_s22 }
  0x4c   :  { %p7620_p7 = scmp.ne.s32.totalorder %s71_s22, %s7619_s15  ;;  %p7625_p9 = scmp.lt.s32.totalorder %s7619_s15, %s7619_s15 }
  0x4e   :  { %p7626_p10 = por %p7625_p9, %p7624_p8 }
  0x50   :  { %p7627_p11 = pnand %p7626_p10, %p7620_p7 }
  0x52   :  { %7630 = shalt.err (!%p7627_p11)
}
  0x53   :  { %76 = dma.hbm_to_vmem [thread:$0]  %s7924_s6, 1024, %s71_s22, [#allocation8], %s7638_s11, %s7638_s11, %s7639_s12  }
  0x54   :  { %7631 = dma.done.wait [#allocation3], 73728  }
  0x55   :  { %7632 = vsyncadd [#allocation3], 4294893568 }
  0x56   :  { %7633 = dma.done.wait [#allocation5], 10368  }
  0x57   :  { %7634 = vsyncadd [#allocation5], 4294956928 }
  0x58   :  { %7635 = dma.done.wait [#allocation8], 2048  }
  0x59   :  { %7636 = vsyncadd [#allocation8], 4294965248  ;;  %v6601_v0 = vld [vmem:[#allocation2 + $0x4] ss:$36 sps:$4 sm:$0xff]   ;;  %v6603_v1 = vld [vmem:[#allocation2 + $0xc] ss:$36 sps:$4 sm:$0xff]  }
  0x5a   :  { %3738 = vmatprep.subr.bf16.mxu0 %v6601_v0  ;;  %v6605_v2 = vld [vmem:[#allocation2] ss:$36 sps:$4 sm:$0xff]   ;;  %v6606_v3 = vld [vmem:[#allocation2 + $0x8] ss:$36 sps:$4 sm:$0xff]   ;;  %3902 = vmatprep.subr.bf16.mxu1 %v6603_v1  ;;  %v6609_v5 = vld [vmem:[#allocation2 + $0x54] ss:$36 sps:$4 sm:$0xff]  }
  0x5b   :  { %v6607_v4 = vld [vmem:[#allocation2 + $0x4c] ss:$36 sps:$4 sm:$0xff]   ;;  %3739 = vmatpush1.bf16.msra.mxu0 %v6605_v2  ;;  %3903 = vmatpush1.bf16.msra.mxu1 %v6606_v3  ;;  %v6613_v8 = vld [vmem:[#allocation2 + $0x94] ss:$36 sps:$4 sm:$0xff]   ;;  %v6615_v9 = vld [vmem:[#allocation2 + $0x9c] ss:$36 sps:$4 sm:$0xff]  }
  0x5c   :  { %v6611_v6 = vld [vmem:[#allocation2 + $0x48] ss:$36 sps:$4 sm:$0xff]   ;;  %3740 = vmatprep.subr.bf16.mxu0 %v6607_v4  ;;  %v6612_v7 = vld [vmem:[#allocation2 + $0x50] ss:$36 sps:$4 sm:$0xff]   ;;  %3904 = vmatprep.subr.bf16.mxu1 %v6609_v5  ;;  %v6618_v11 = vld [vmem:[#allocation2 + $0x98] ss:$36 sps:$4 sm:$0xff]  }
  0x5d   :  { %v6617_v10 = vld [vmem:[#allocation2 + $0x90] ss:$36 sps:$4 sm:$0xff]   ;;  %v6619_v12 = vld [vmem:[#allocation2 + $0xdc] ss:$36 sps:$4 sm:$0xff]   ;;  %v6621_v13 = vld [vmem:[#allocation2 + $0xe4] ss:$36 sps:$4 sm:$0xff]  }
  0x5e   :  { %v6623_v14 = vld [vmem:[#allocation2 + $0xd8] ss:$36 sps:$4 sm:$0xff]   ;;  %v6624_v15 = vld [vmem:[#allocation2 + $0xe0] ss:$36 sps:$4 sm:$0xff]   ;;  %v6627_v17 = vld [vmem:[#allocation2 + $0x12c] ss:$36 sps:$4 sm:$0xff]  }
  0x5f   :  { %3741 = vmatpush1.bf16.msra.mxu0 %v6611_v6  ;;  %3905 = vmatpush1.bf16.msra.mxu1 %v6612_v7  ;;  %v6625_v16 = vld [vmem:[#allocation2 + $0x124] ss:$36 sps:$4 sm:$0xff]   ;;  %v6631_v20 = vld [vmem:[#allocation2 + $0x16c] ss:$36 sps:$4 sm:$0xff]   ;;  %v6633_v21 = vld [vmem:[#allocation2 + $0x174] ss:$36 sps:$4 sm:$0xff]  }
  0x60   :  { %3742 = vmatprep.subr.bf16.mxu0 %v6613_v8  ;;  %3906 = vmatprep.subr.bf16.mxu1 %v6615_v9  ;;  %v6629_v18 = vld [vmem:[#allocation2 + $0x120] ss:$36 sps:$4 sm:$0xff]   ;;  %v6630_v19 = vld [vmem:[#allocation2 + $0x128] ss:$36 sps:$4 sm:$0xff]   ;;  %v6636_v23 = vld [vmem:[#allocation2 + $0x170] ss:$36 sps:$4 sm:$0xff]  }
  0x61   :  { %v6635_v22 = vld [vmem:[#allocation2 + $0x168] ss:$36 sps:$4 sm:$0xff]   ;;  %v6637_v24 = vld [vmem:[#allocation2 + $0x1b4] ss:$36 sps:$4 sm:$0xff]   ;;  %v6639_v25 = vld [vmem:[#allocation2 + $0x1bc] ss:$36 sps:$4 sm:$0xff]  }
  0x62   :  { %v6641_v26 = vld [vmem:[#allocation2 + $0x1b0] ss:$36 sps:$4 sm:$0xff]   ;;  %v6642_v27 = vld [vmem:[#allocation2 + $0x1b8] ss:$36 sps:$4 sm:$0xff]   ;;  %v6645_v29 = vld [vmem:[#allocation2 + $0x204] ss:$36 sps:$4 sm:$0xff]  }
  0x63   :  { %3743 = vmatpush1.bf16.msra.mxu0 %v6617_v10  ;;  %3907 = vmatpush1.bf16.msra.mxu1 %v6618_v11  ;;  %v6643_v28 = vld [vmem:[#allocation2 + $0x1fc] ss:$36 sps:$4 sm:$0xff]   ;;  %v6649_v32 = vld [vmem:[#allocation2 + $0x244] ss:$36 sps:$4 sm:$0xff]   ;;  %v6651_v33 = vld [vmem:[#allocation2 + $0x24c] ss:$36 sps:$4 sm:$0xff]  }
  0x64   :  { %3744 = vmatprep.subr.bf16.mxu0 %v6619_v12  ;;  %3908 = vmatprep.subr.bf16.mxu1 %v6621_v13  ;;  %v6647_v30 = vld [vmem:[#allocation2 + $0x1f8] ss:$36 sps:$4 sm:$0xff]   ;;  %v6648_v31 = vld [vmem:[#allocation2 + $0x200] ss:$36 sps:$4 sm:$0xff]   ;;  %v6654_v35 = vld [vmem:[#allocation2 + $0x248] ss:$36 sps:$4 sm:$0xff]  }
  0x65   :  { %v6653_v34 = vld [vmem:[#allocation2 + $0x240] ss:$36 sps:$4 sm:$0xff]   ;;  %v6655_v36 = vld [vmem:[#allocation2 + $0x28c] ss:$36 sps:$4 sm:$0xff]   ;;  %v6657_v37 = vld [vmem:[#allocation2 + $0x294] ss:$36 sps:$4 sm:$0xff]  }
  0x66   :  { %v6659_v38 = vld [vmem:[#allocation2 + $0x288] ss:$36 sps:$4 sm:$0xff]   ;;  %v6660_v39 = vld [vmem:[#allocation2 + $0x290] ss:$36 sps:$4 sm:$0xff]   ;;  %v6663_v41 = vld [vmem:[#allocation2 + $0x2dc] ss:$36 sps:$4 sm:$0xff]  }
  0x67   :  { %3745 = vmatpush1.bf16.msra.mxu0 %v6623_v14  ;;  %3909 = vmatpush1.bf16.msra.mxu1 %v6624_v15  ;;  %v6661_v40 = vld [vmem:[#allocation2 + $0x2d4] ss:$36 sps:$4 sm:$0xff]   ;;  %v6667_v44 = vld [vmem:[#allocation2 + $0x31c] ss:$36 sps:$4 sm:$0xff]   ;;  %v6669_v45 = vld [vmem:[#allocation2 + $0x324] ss:$36 sps:$4 sm:$0xff]  }
  0x68   :  { %3746 = vmatprep.subr.bf16.mxu0 %v6625_v16  ;;  %3910 = vmatprep.subr.bf16.mxu1 %v6627_v17  ;;  %v6665_v42 = vld [vmem:[#allocation2 + $0x2d0] ss:$36 sps:$4 sm:$0xff]   ;;  %v6666_v43 = vld [vmem:[#allocation2 + $0x2d8] ss:$36 sps:$4 sm:$0xff]   ;;  %v103_v46 = vld [vmem:[%s7918_s0 + $0x8] sm:$0xff]  ;;  %vm7649_vm0 = vmmov 0  }
  0x69   :  { %v6671_v47 = vld [vmem:[#allocation2 + $0x318] ss:$36 sps:$4 sm:$0xff]   ;;  %v7762_v48 = vpack.c.bf16 %v103_v46, %v103_v46  ;;  %v6672_v49 = vld [vmem:[#allocation2 + $0x320] ss:$36 sps:$4 sm:$0xff]   ;;  %v6675_v51 = vld [vmem:[#allocation2 + $0x36c] ss:$36 sps:$4 sm:$0xff]  }
  0x6a   :  { %v6673_v50 = vld [vmem:[#allocation2 + $0x364] ss:$36 sps:$4 sm:$0xff]   ;;  %v6679_v54 = vld [vmem:[#allocation2 + $0x3ac] ss:$36 sps:$4 sm:$0xff]   ;;  %v6681_v55 = vld [vmem:[#allocation2 + $0x3b4] ss:$36 sps:$4 sm:$0xff]  }
  0x6b   :  { %3747 = vmatpush1.bf16.msra.mxu0 %v6629_v18  ;;  %3911 = vmatpush1.bf16.msra.mxu1 %v6630_v19  ;;  %v6677_v52 = vld [vmem:[#allocation2 + $0x360] ss:$36 sps:$4 sm:$0xff]   ;;  %v6678_v53 = vld [vmem:[#allocation2 + $0x368] ss:$36 sps:$4 sm:$0xff]   ;;  %v6684_v57 = vld [vmem:[#allocation2 + $0x3b0] ss:$36 sps:$4 sm:$0xff]  }
  0x6c   :  { %3748 = vmatprep.subr.bf16.mxu0 %v6631_v20  ;;  %3912 = vmatprep.subr.bf16.mxu1 %v6633_v21  ;;  %v6683_v56 = vld [vmem:[#allocation2 + $0x3a8] ss:$36 sps:$4 sm:$0xff]   ;;  %v6685_v58 = vld [vmem:[#allocation2 + $0x3f4] ss:$36 sps:$4 sm:$0xff]   ;;  %v6687_v59 = vld [vmem:[#allocation2 + $0x3fc] ss:$36 sps:$4 sm:$0xff]  }
  0x6d   :  { %3770 = vmatprep.mubr.bf16.mxu0 %v7762_v48  ;;  %3934 = vmatprep.mubr.bf16.mxu1 %v7762_v48  ;;  %v6689_v60 = vld [vmem:[#allocation2 + $0x3f0] ss:$36 sps:$4 sm:$0xff]   ;;  %v6690_v61 = vld [vmem:[#allocation2 + $0x3f8] ss:$36 sps:$4 sm:$0xff]   ;;  %v6693_v63 = vld [vmem:[#allocation2 + $0x444] ss:$36 sps:$4 sm:$0xff]  }
  0x6e   :  { %v6691_v62 = vld [vmem:[#allocation2 + $0x43c] ss:$36 sps:$4 sm:$0xff]   ;;  %v6699_v3 = vld [vmem:[#allocation2 + $0x484] ss:$36 sps:$4 sm:$0xff]   ;;  %v6702_v4 = vld [vmem:[#allocation2 + $0x48c] ss:$36 sps:$4 sm:$0xff]  }
  0x6f   :  { %3749 = vmatpush1.bf16.msra.mxu0 %v6635_v22  ;;  %3913 = vmatpush1.bf16.msra.mxu1 %v6636_v23  ;;  %v6695_v0 = vld [vmem:[#allocation2 + $0x438] ss:$36 sps:$4 sm:$0xff]   ;;  %v6696_v1 = vld [vmem:[#allocation2 + $0x440] ss:$36 sps:$4 sm:$0xff]   ;;  %v6700_v7 = vld [vmem:[#allocation2 + $0x488] ss:$36 sps:$4 sm:$0xff]  }
  0x70   :  { %3750 = vmatprep.subr.bf16.mxu0 %v6637_v24  ;;  %3914 = vmatprep.subr.bf16.mxu1 %v6639_v25  ;;  %v102_v2 = vld [vmem:[%s7918_s0] sm:$0xff]  ;;  %v6705_v8 = vld [vmem:[#allocation2 + $0x4cc] ss:$36 sps:$4 sm:$0xff]   ;;  %v6708_v9 = vld [vmem:[#allocation2 + $0x4d4] ss:$36 sps:$4 sm:$0xff]  }
  0x71   :  { %v7769_v5 = vpack.c.bf16 %v102_v2, %v102_v2  ;;  %v6697_v6 = vld [vmem:[#allocation2 + $0x480] ss:$36 sps:$4 sm:$0xff]   ;;  %v6703_v10 = vld [vmem:[#allocation2 + $0x4c8] ss:$36 sps:$4 sm:$0xff]   ;;  %v6706_v11 = vld [vmem:[#allocation2 + $0x4d0] ss:$36 sps:$4 sm:$0xff]  }
  0x72   :  { %v6711_v12 = vld [vmem:[#allocation2 + $0x514] ss:$36 sps:$4 sm:$0xff]   ;;  %v6714_v13 = vld [vmem:[#allocation2 + $0x51c] ss:$36 sps:$4 sm:$0xff]   ;;  %v6720_v17 = vld [vmem:[#allocation2 + $0x564] ss:$36 sps:$4 sm:$0xff]  }
  0x73   :  { %3751 = vmatpush1.bf16.msra.mxu0 %v6641_v26  ;;  %3915 = vmatpush1.bf16.msra.mxu1 %v6642_v27  ;;  %v6709_v14 = vld [vmem:[#allocation2 + $0x510] ss:$36 sps:$4 sm:$0xff]   ;;  %v6712_v15 = vld [vmem:[#allocation2 + $0x518] ss:$36 sps:$4 sm:$0xff]   ;;  %v6718_v19 = vld [vmem:[#allocation2 + $0x560] ss:$36 sps:$4 sm:$0xff]  }
  0x74   :  { %3752 = vmatprep.subr.bf16.mxu0 %v6643_v28  ;;  %3916 = vmatprep.subr.bf16.mxu1 %v6645_v29  ;;  %v6717_v16 = vld [vmem:[#allocation2 + $0x55c] ss:$36 sps:$4 sm:$0xff]   ;;  %v6723_v20 = vld [vmem:[#allocation2 + $0x5a4] ss:$36 sps:$4 sm:$0xff]   ;;  %v6726_v21 = vld [vmem:[#allocation2 + $0x5ac] ss:$36 sps:$4 sm:$0xff]  }
  0x75   :  { %v6715_v18 = vld [vmem:[#allocation2 + $0x558] ss:$36 sps:$4 sm:$0xff]   ;;  %v6721_v22 = vld [vmem:[#allocation2 + $0x5a0] ss:$36 sps:$4 sm:$0xff]   ;;  %v6724_v23 = vld [vmem:[#allocation2 + $0x5a8] ss:$36 sps:$4 sm:$0xff]  }
  0x76   :  { %v6729_v24 = vld [vmem:[#allocation2 + $0x5ec] ss:$36 sps:$4 sm:$0xff]   ;;  %v6732_v25 = vld [vmem:[#allocation2 + $0x5f4] ss:$36 sps:$4 sm:$0xff]   ;;  %v6738_v29 = vld [vmem:[#allocation2 + $0x63c] ss:$36 sps:$4 sm:$0xff]  }
  0x77   :  { %3753 = vmatpush1.bf16.msra.mxu0 %v6647_v30  ;;  %3917 = vmatpush1.bf16.msra.mxu1 %v6648_v31  ;;  %v6727_v26 = vld [vmem:[#allocation2 + $0x5e8] ss:$36 sps:$4 sm:$0xff]   ;;  %v6730_v27 = vld [vmem:[#allocation2 + $0x5f0] ss:$36 sps:$4 sm:$0xff]   ;;  %v105_v30 = vld [vmem:[%s7918_s0 + $0x18] sm:$0xff] }
  0x78   :  { %3754 = vmatprep.subr.bf16.mxu0 %v6649_v32  ;;  %3918 = vmatprep.subr.bf16.mxu1 %v6651_v33  ;;  %v6735_v28 = vld [vmem:[#allocation2 + $0x634] ss:$36 sps:$4 sm:$0xff]   ;;  %v7776_v32 = vpack.c.bf16 %v105_v30, %v105_v30  ;;  %v6817_v30 = vld [vmem:[#allocation2 + $0xa20] ss:$36 sps:$4 sm:$0xff]  }
  0x79   :  { %v6733_v31 = vld [vmem:[#allocation2 + $0x630] ss:$36 sps:$4 sm:$0xff]   ;;  %v6736_v33 = vld [vmem:[#allocation2 + $0x638] ss:$36 sps:$4 sm:$0xff]  }
  0x7a   :  { %v6759_v46 = vld [vmem:[#allocation2 + $0x754] ss:$36 sps:$4 sm:$0xff]  }
  0x7b   :  { %3755 = vmatpush1.bf16.msra.mxu0 %v6653_v34  ;;  %3919 = vmatpush1.bf16.msra.mxu1 %v6654_v35  ;;  %v6741_v34 = vld [vmem:[#allocation2 + $0x67c] ss:$36 sps:$4 sm:$0xff]   ;;  %v6744_v35 = vld [vmem:[#allocation2 + $0x684] ss:$36 sps:$4 sm:$0xff]  }
  0x7c   :  { %3756 = vmatprep.subr.bf16.mxu0 %v6655_v36  ;;  %3920 = vmatprep.subr.bf16.mxu1 %v6657_v37  ;;  %v6739_v36 = vld [vmem:[#allocation2 + $0x678] ss:$36 sps:$4 sm:$0xff]   ;;  %v6742_v37 = vld [vmem:[#allocation2 + $0x680] ss:$36 sps:$4 sm:$0xff]  }
  0x7d   :  { %v6784_v2 = vld [vmem:[#allocation2 + $0x878] ss:$36 sps:$4 sm:$0xff]  }
  0x7f   :  { %3757 = vmatpush1.bf16.msra.mxu0 %v6659_v38  ;;  %3921 = vmatpush1.bf16.msra.mxu1 %v6660_v39  ;;  %v6747_v38 = vld [vmem:[#allocation2 + $0x6c4] ss:$36 sps:$4 sm:$0xff]   ;;  %v6750_v39 = vld [vmem:[#allocation2 + $0x6cc] ss:$36 sps:$4 sm:$0xff]  }
  0x80   :  { %3758 = vmatprep.subr.bf16.mxu0 %v6661_v40  ;;  %3922 = vmatprep.subr.bf16.mxu1 %v6663_v41  ;;  %v6745_v40 = vld [vmem:[#allocation2 + $0x6c0] ss:$36 sps:$4 sm:$0xff]   ;;  %v6748_v41 = vld [vmem:[#allocation2 + $0x6c8] ss:$36 sps:$4 sm:$0xff]  }
  0x83   :  { %3759 = vmatpush1.bf16.msra.mxu0 %v6665_v42  ;;  %3923 = vmatpush1.bf16.msra.mxu1 %v6666_v43  ;;  %v6753_v42 = vld [vmem:[#allocation2 + $0x70c] ss:$36 sps:$4 sm:$0xff]   ;;  %v6756_v43 = vld [vmem:[#allocation2 + $0x714] ss:$36 sps:$4 sm:$0xff]  }
  0x84   :  { %3760 = vmatprep.subr.bf16.mxu0 %v6667_v44  ;;  %3924 = vmatprep.subr.bf16.mxu1 %v6669_v45  ;;  %v6751_v44 = vld [vmem:[#allocation2 + $0x708] ss:$36 sps:$4 sm:$0xff]   ;;  %v6754_v45 = vld [vmem:[#allocation2 + $0x710] ss:$36 sps:$4 sm:$0xff]  }
  0x87   :  { %3761 = vmatpush1.bf16.msra.mxu0 %v6671_v47  ;;  %3925 = vmatpush1.bf16.msra.mxu1 %v6672_v49  ;;  %v6762_v47 = vld [vmem:[#allocation2 + $0x75c] ss:$36 sps:$4 sm:$0xff]   ;;  %v6757_v49 = vld [vmem:[#allocation2 + $0x750] ss:$36 sps:$4 sm:$0xff]  }
  0x88   :  { %3762 = vmatprep.subr.bf16.mxu0 %v6673_v50  ;;  %3926 = vmatprep.subr.bf16.mxu1 %v6675_v51  ;;  %v6760_v50 = vld [vmem:[#allocation2 + $0x758] ss:$36 sps:$4 sm:$0xff]  }
  0x89   :  { %v6765_v51 = vld [vmem:[#allocation2 + $0x79c] ss:$36 sps:$4 sm:$0xff]  }
  0x8b   :  { %3763 = vmatpush1.bf16.msra.mxu0 %v6677_v52  ;;  %3927 = vmatpush1.bf16.msra.mxu1 %v6678_v53  ;;  %v6768_v52 = vld [vmem:[#allocation2 + $0x7a4] ss:$36 sps:$4 sm:$0xff]   ;;  %v6763_v53 = vld [vmem:[#allocation2 + $0x798] ss:$36 sps:$4 sm:$0xff]  }
  0x8c   :  { %3764 = vmatprep.subr.bf16.mxu0 %v6679_v54  ;;  %3928 = vmatprep.subr.bf16.mxu1 %v6681_v55  ;;  %v6766_v54 = vld [vmem:[#allocation2 + $0x7a0] ss:$36 sps:$4 sm:$0xff]  }
  0x8d   :  { %v6771_v55 = vld [vmem:[#allocation2 + $0x7e4] ss:$36 sps:$4 sm:$0xff]  }
  0x8f   :  { %3765 = vmatpush1.bf16.msra.mxu0 %v6683_v56  ;;  %3929 = vmatpush1.bf16.msra.mxu1 %v6684_v57  ;;  %v6774_v56 = vld [vmem:[#allocation2 + $0x7ec] ss:$36 sps:$4 sm:$0xff]   ;;  %v6769_v57 = vld [vmem:[#allocation2 + $0x7e0] ss:$36 sps:$4 sm:$0xff]  }
  0x90   :  { %3766 = vmatprep.subr.bf16.mxu0 %v6685_v58  ;;  %3930 = vmatprep.subr.bf16.mxu1 %v6687_v59  ;;  %v6772_v58 = vld [vmem:[#allocation2 + $0x7e8] ss:$36 sps:$4 sm:$0xff]  }
  0x91   :  { %v6777_v59 = vld [vmem:[#allocation2 + $0x82c] ss:$36 sps:$4 sm:$0xff]  }
  0x93   :  { %3767 = vmatpush1.bf16.msra.mxu0 %v6689_v60  ;;  %3931 = vmatpush1.bf16.msra.mxu1 %v6690_v61  ;;  %v6780_v60 = vld [vmem:[#allocation2 + $0x834] ss:$36 sps:$4 sm:$0xff]   ;;  %v6775_v61 = vld [vmem:[#allocation2 + $0x828] ss:$36 sps:$4 sm:$0xff]  }
  0x94   :  { %3768 = vmatprep.subr.bf16.mxu0 %v6691_v62  ;;  %3932 = vmatprep.subr.bf16.mxu1 %v6693_v63  ;;  %v6778_v62 = vld [vmem:[#allocation2 + $0x830] ss:$36 sps:$4 sm:$0xff]  }
  0x95   :  { %v6783_v63 = vld [vmem:[#allocation2 + $0x874] ss:$36 sps:$4 sm:$0xff]  }
  0x97   :  { %3769 = vmatpush1.bf16.msra.mxu0 %v6695_v0  ;;  %3933 = vmatpush1.bf16.msra.mxu1 %v6696_v1  ;;  %v6786_v0 = vld [vmem:[#allocation2 + $0x87c] ss:$36 sps:$4 sm:$0xff]   ;;  %v6781_v1 = vld [vmem:[#allocation2 + $0x870] ss:$36 sps:$4 sm:$0xff]  }
  0x98   :  { %3779 = vmatprep.subr.bf16.mxu0 %v6699_v3  ;;  %3943 = vmatprep.subr.bf16.mxu1 %v6702_v4  ;;  %v6789_v3 = vld [vmem:[#allocation2 + $0x8bc] ss:$36 sps:$4 sm:$0xff]   ;;  %v6792_v4 = vld [vmem:[#allocation2 + $0x8c4] ss:$36 sps:$4 sm:$0xff]  }
  0x9a   :  { %3771 = vmatmul.mubr.bf16.vlgmr.msra.gmra.mrb[0].mxu0 %v7769_v5  ;;  %3935 = vmatmul.mubr.bf16.vlgmr.msra.gmra.mrb[0].mxu1 %v7769_v5 }
  0x9b   :  { %3780 = vmatpush1.bf16.msra.mxu0 %v6697_v6  ;;  %3944 = vmatpush1.bf16.msra.mxu1 %v6700_v7  ;;  %v6787_v6 = vld [vmem:[#allocation2 + $0x8b8] ss:$36 sps:$4 sm:$0xff]   ;;  %v6790_v7 = vld [vmem:[#allocation2 + $0x8c0] ss:$36 sps:$4 sm:$0xff]  }
  0x9c   :  { %3781 = vmatprep.subr.bf16.mxu0 %v6705_v8  ;;  %3945 = vmatprep.subr.bf16.mxu1 %v6708_v9  ;;  %v6795_v8 = vld [vmem:[#allocation2 + $0x904] ss:$36 sps:$4 sm:$0xff]   ;;  %v104_v9 = vld [vmem:[%s7918_s0 + $0x10] sm:$0xff] }
  0x9d   :  { %3811 = vmatprep.mubr.bf16.mxu0 %v7776_v32  ;;  %3975 = vmatprep.mubr.bf16.mxu1 %v7776_v32 }
  0x9f   :  { %3782 = vmatpush1.bf16.msra.mxu0 %v6703_v10  ;;  %3946 = vmatpush1.bf16.msra.mxu1 %v6706_v11  ;;  %v6798_v10 = vld [vmem:[#allocation2 + $0x90c] ss:$36 sps:$4 sm:$0xff]   ;;  %v6793_v11 = vld [vmem:[#allocation2 + $0x900] ss:$36 sps:$4 sm:$0xff]  }
  0xa0   :  { %3783 = vmatprep.subr.bf16.mxu0 %v6711_v12  ;;  %3947 = vmatprep.subr.bf16.mxu1 %v6714_v13  ;;  %v6796_v12 = vld [vmem:[#allocation2 + $0x908] ss:$36 sps:$4 sm:$0xff]   ;;  %v7783_v13 = vpack.c.bf16 %v104_v9, %v104_v9  ;;  %v6877_v9 = vld [vmem:[#allocation2 + $0xcf0] ss:$36 sps:$4 sm:$0xff]  }
  0xa3   :  { %3784 = vmatpush1.bf16.msra.mxu0 %v6709_v14  ;;  %3948 = vmatpush1.bf16.msra.mxu1 %v6712_v15  ;;  %v6801_v14 = vld [vmem:[#allocation2 + $0x94c] ss:$36 sps:$4 sm:$0xff]   ;;  %v6804_v15 = vld [vmem:[#allocation2 + $0x954] ss:$36 sps:$4 sm:$0xff]  }
  0xa4   :  { %3785 = vmatprep.subr.bf16.mxu0 %v6717_v16  ;;  %3949 = vmatprep.subr.bf16.mxu1 %v6720_v17  ;;  %v107_v16 = vld [vmem:[%s7918_s0 + $0x28] sm:$0xff] }
  0xa5   :  { %v7788_v17 = vpack.c.bf16 %v107_v16, %v107_v16  ;;  %v6891_v16 = vld [vmem:[#allocation2 + $0xd84] ss:$36 sps:$4 sm:$0xff]  }
  0xa7   :  { %3786 = vmatpush1.bf16.msra.mxu0 %v6715_v18  ;;  %3950 = vmatpush1.bf16.msra.mxu1 %v6718_v19  ;;  %v6799_v18 = vld [vmem:[#allocation2 + $0x948] ss:$36 sps:$4 sm:$0xff]   ;;  %v6802_v19 = vld [vmem:[#allocation2 + $0x950] ss:$36 sps:$4 sm:$0xff]  }
  0xa8   :  { %3787 = vmatprep.subr.bf16.mxu0 %v6723_v20  ;;  %3951 = vmatprep.subr.bf16.mxu1 %v6726_v21  ;;  %v6807_v20 = vld [vmem:[#allocation2 + $0x994] ss:$36 sps:$4 sm:$0xff]   ;;  %v6810_v21 = vld [vmem:[#allocation2 + $0x99c] ss:$36 sps:$4 sm:$0xff]  }
  0xab   :  { %3788 = vmatpush1.bf16.msra.mxu0 %v6721_v22  ;;  %3952 = vmatpush1.bf16.msra.mxu1 %v6724_v23  ;;  %v6805_v22 = vld [vmem:[#allocation2 + $0x990] ss:$36 sps:$4 sm:$0xff]   ;;  %v6808_v23 = vld [vmem:[#allocation2 + $0x998] ss:$36 sps:$4 sm:$0xff]  }
  0xac   :  { %3789 = vmatprep.subr.bf16.mxu0 %v6729_v24  ;;  %3953 = vmatprep.subr.bf16.mxu1 %v6732_v25  ;;  %v6813_v24 = vld [vmem:[#allocation2 + $0x9dc] ss:$36 sps:$4 sm:$0xff]   ;;  %v6816_v25 = vld [vmem:[#allocation2 + $0x9e4] ss:$36 sps:$4 sm:$0xff]  }
  0xaf   :  { %3790 = vmatpush1.bf16.msra.mxu0 %v6727_v26  ;;  %3954 = vmatpush1.bf16.msra.mxu1 %v6730_v27  ;;  %v6811_v26 = vld [vmem:[#allocation2 + $0x9d8] ss:$36 sps:$4 sm:$0xff]   ;;  %v6814_v27 = vld [vmem:[#allocation2 + $0x9e0] ss:$36 sps:$4 sm:$0xff]  }
  0xb0   :  { %3791 = vmatprep.subr.bf16.mxu0 %v6735_v28  ;;  %3955 = vmatprep.subr.bf16.mxu1 %v6738_v29  ;;  %v6819_v28 = vld [vmem:[#allocation2 + $0xa24] ss:$36 sps:$4 sm:$0xff]   ;;  %v6822_v29 = vld [vmem:[#allocation2 + $0xa2c] ss:$36 sps:$4 sm:$0xff]  }
  0xb3   :  { %3792 = vmatpush1.bf16.msra.mxu0 %v6733_v31  ;;  %3956 = vmatpush1.bf16.msra.mxu1 %v6736_v33  ;;  %v6820_v31 = vld [vmem:[#allocation2 + $0xa28] ss:$36 sps:$4 sm:$0xff]  }
  0xb4   :  { %3793 = vmatprep.subr.bf16.mxu0 %v6741_v34  ;;  %3957 = vmatprep.subr.bf16.mxu1 %v6744_v35  ;;  %v6825_v33 = vld [vmem:[#allocation2 + $0xa6c] ss:$36 sps:$4 sm:$0xff]   ;;  %v6828_v34 = vld [vmem:[#allocation2 + $0xa74] ss:$36 sps:$4 sm:$0xff]  }
  0xb5   :  { %v6823_v35 = vld [vmem:[#allocation2 + $0xa68] ss:$36 sps:$4 sm:$0xff]  }
  0xb7   :  { %3794 = vmatpush1.bf16.msra.mxu0 %v6739_v36  ;;  %3958 = vmatpush1.bf16.msra.mxu1 %v6742_v37  ;;  %v6826_v36 = vld [vmem:[#allocation2 + $0xa70] ss:$36 sps:$4 sm:$0xff]  }
  0xb8   :  { %3795 = vmatprep.subr.bf16.mxu0 %v6747_v38  ;;  %3959 = vmatprep.subr.bf16.mxu1 %v6750_v39  ;;  %v6831_v37 = vld [vmem:[#allocation2 + $0xab4] ss:$36 sps:$4 sm:$0xff]   ;;  %v6834_v38 = vld [vmem:[#allocation2 + $0xabc] ss:$36 sps:$4 sm:$0xff]  }
  0xb9   :  { %v6829_v39 = vld [vmem:[#allocation2 + $0xab0] ss:$36 sps:$4 sm:$0xff]  }
  0xbb   :  { %3796 = vmatpush1.bf16.msra.mxu0 %v6745_v40  ;;  %3960 = vmatpush1.bf16.msra.mxu1 %v6748_v41  ;;  %v6832_v40 = vld [vmem:[#allocation2 + $0xab8] ss:$36 sps:$4 sm:$0xff]  }
  0xbc   :  { %3797 = vmatprep.subr.bf16.mxu0 %v6753_v42  ;;  %3961 = vmatprep.subr.bf16.mxu1 %v6756_v43  ;;  %v6837_v41 = vld [vmem:[#allocation2 + $0xafc] ss:$36 sps:$4 sm:$0xff]   ;;  %v6840_v42 = vld [vmem:[#allocation2 + $0xb04] ss:$36 sps:$4 sm:$0xff]  }
  0xbd   :  { %v6835_v43 = vld [vmem:[#allocation2 + $0xaf8] ss:$36 sps:$4 sm:$0xff]  }
  0xbf   :  { %3798 = vmatpush1.bf16.msra.mxu0 %v6751_v44  ;;  %3962 = vmatpush1.bf16.msra.mxu1 %v6754_v45  ;;  %v6838_v44 = vld [vmem:[#allocation2 + $0xb00] ss:$36 sps:$4 sm:$0xff]  }
  0xc0   :  { %3799 = vmatprep.subr.bf16.mxu0 %v6759_v46  ;;  %3963 = vmatprep.subr.bf16.mxu1 %v6762_v47  ;;  %v6843_v45 = vld [vmem:[#allocation2 + $0xb44] ss:$36 sps:$4 sm:$0xff]   ;;  %v6846_v46 = vld [vmem:[#allocation2 + $0xb4c] ss:$36 sps:$4 sm:$0xff]  }
  0xc1   :  { %v6841_v47 = vld [vmem:[#allocation2 + $0xb40] ss:$36 sps:$4 sm:$0xff]  }
  0xc3   :  { %3800 = vmatpush1.bf16.msra.mxu0 %v6757_v49  ;;  %3964 = vmatpush1.bf16.msra.mxu1 %v6760_v50  ;;  %v6844_v49 = vld [vmem:[#allocation2 + $0xb48] ss:$36 sps:$4 sm:$0xff]  }
  0xc4   :  { %3801 = vmatprep.subr.bf16.mxu0 %v6765_v51  ;;  %3965 = vmatprep.subr.bf16.mxu1 %v6768_v52  ;;  %v6849_v50 = vld [vmem:[#allocation2 + $0xb8c] ss:$36 sps:$4 sm:$0xff]   ;;  %v6852_v51 = vld [vmem:[#allocation2 + $0xb94] ss:$36 sps:$4 sm:$0xff]  }
  0xc5   :  { %v6847_v52 = vld [vmem:[#allocation2 + $0xb88] ss:$36 sps:$4 sm:$0xff]  }
  0xc7   :  { %3802 = vmatpush1.bf16.msra.mxu0 %v6763_v53  ;;  %3966 = vmatpush1.bf16.msra.mxu1 %v6766_v54  ;;  %v6850_v53 = vld [vmem:[#allocation2 + $0xb90] ss:$36 sps:$4 sm:$0xff]  }
  0xc8   :  { %3803 = vmatprep.subr.bf16.mxu0 %v6771_v55  ;;  %3967 = vmatprep.subr.bf16.mxu1 %v6774_v56  ;;  %v6855_v54 = vld [vmem:[#allocation2 + $0xbd4] ss:$36 sps:$4 sm:$0xff]   ;;  %v6858_v55 = vld [vmem:[#allocation2 + $0xbdc] ss:$36 sps:$4 sm:$0xff]  }
  0xc9   :  { %v6853_v56 = vld [vmem:[#allocation2 + $0xbd0] ss:$36 sps:$4 sm:$0xff]  }
  0xcb   :  { %3804 = vmatpush1.bf16.msra.mxu0 %v6769_v57  ;;  %3968 = vmatpush1.bf16.msra.mxu1 %v6772_v58  ;;  %v6856_v57 = vld [vmem:[#allocation2 + $0xbd8] ss:$36 sps:$4 sm:$0xff]  }
  0xcc   :  { %3805 = vmatprep.subr.bf16.mxu0 %v6777_v59  ;;  %3969 = vmatprep.subr.bf16.mxu1 %v6780_v60  ;;  %v6861_v58 = vld [vmem:[#allocation2 + $0xc1c] ss:$36 sps:$4 sm:$0xff]   ;;  %v6864_v59 = vld [vmem:[#allocation2 + $0xc24] ss:$36 sps:$4 sm:$0xff]  }
  0xcd   :  { %v6859_v60 = vld [vmem:[#allocation2 + $0xc18] ss:$36 sps:$4 sm:$0xff]  }
  0xcf   :  { %3806 = vmatpush1.bf16.msra.mxu0 %v6775_v61  ;;  %3970 = vmatpush1.bf16.msra.mxu1 %v6778_v62  ;;  %v6862_v61 = vld [vmem:[#allocation2 + $0xc20] ss:$36 sps:$4 sm:$0xff]  }
  0xd0   :  { %3807 = vmatprep.subr.bf16.mxu0 %v6783_v63  ;;  %3971 = vmatprep.subr.bf16.mxu1 %v6786_v0  ;;  %v6867_v62 = vld [vmem:[#allocation2 + $0xc64] ss:$36 sps:$4 sm:$0xff]   ;;  %v6870_v63 = vld [vmem:[#allocation2 + $0xc6c] ss:$36 sps:$4 sm:$0xff]  }
  0xd1   :  { %v6865_v0 = vld [vmem:[#allocation2 + $0xc60] ss:$36 sps:$4 sm:$0xff]  }
  0xd3   :  { %3808 = vmatpush1.bf16.msra.mxu0 %v6781_v1  ;;  %3972 = vmatpush1.bf16.msra.mxu1 %v6784_v2  ;;  %v6868_v1 = vld [vmem:[#allocation2 + $0xc68] ss:$36 sps:$4 sm:$0xff]  }
  0xd4   :  { %3809 = vmatprep.subr.bf16.mxu0 %v6789_v3  ;;  %3973 = vmatprep.subr.bf16.mxu1 %v6792_v4  ;;  %v6873_v2 = vld [vmem:[#allocation2 + $0xcac] ss:$36 sps:$4 sm:$0xff]   ;;  %v6876_v3 = vld [vmem:[#allocation2 + $0xcb4] ss:$36 sps:$4 sm:$0xff]  }
  0xd5   :  { %v6871_v4 = vld [vmem:[#allocation2 + $0xca8] ss:$36 sps:$4 sm:$0xff]  }
  0xd7   :  { %3810 = vmatpush1.bf16.msra.mxu0 %v6787_v6  ;;  %3974 = vmatpush1.bf16.msra.mxu1 %v6790_v7  ;;  %v6874_v6 = vld [vmem:[#allocation2 + $0xcb0] ss:$36 sps:$4 sm:$0xff]  }
  0xd8   :  { %3820 = vmatprep.subr.bf16.mxu0 %v6795_v8  ;;  %3984 = vmatprep.subr.bf16.mxu1 %v6798_v10  ;;  %v6879_v7 = vld [vmem:[#allocation2 + $0xcf4] ss:$36 sps:$4 sm:$0xff]   ;;  %v6882_v8 = vld [vmem:[#allocation2 + $0xcfc] ss:$36 sps:$4 sm:$0xff]  }
  0xd9   :  { %v6880_v10 = vld [vmem:[#allocation2 + $0xcf8] ss:$36 sps:$4 sm:$0xff]  }
  0xda   :  { %3812 = vmatmul.mubr.bf16.vlgmr.msra.gmra.mrb[0].mxu0 %v7783_v13  ;;  %3976 = vmatmul.mubr.bf16.vlgmr.msra.gmra.mrb[0].mxu1 %v7783_v13 }
  0xdb   :  { %3821 = vmatpush1.bf16.msra.mxu0 %v6793_v11  ;;  %3985 = vmatpush1.bf16.msra.mxu1 %v6796_v12  ;;  %v6885_v11 = vld [vmem:[#allocation2 + $0xd3c] ss:$36 sps:$4 sm:$0xff]   ;;  %v6888_v12 = vld [vmem:[#allocation2 + $0xd44] ss:$36 sps:$4 sm:$0xff]  }
  0xdc   :  { %3822 = vmatprep.subr.bf16.mxu0 %v6801_v14  ;;  %3986 = vmatprep.subr.bf16.mxu1 %v6804_v15  ;;  %v6883_v14 = vld [vmem:[#allocation2 + $0xd38] ss:$36 sps:$4 sm:$0xff]   ;;  %v6886_v15 = vld [vmem:[#allocation2 + $0xd40] ss:$36 sps:$4 sm:$0xff]  }
  0xdd   :  { %3852 = vmatprep.mubr.bf16.mxu0 %v7788_v17  ;;  %4016 = vmatprep.mubr.bf16.mxu1 %v7788_v17 }
  0xdf   :  { %3823 = vmatpush1.bf16.msra.mxu0 %v6799_v18  ;;  %3987 = vmatpush1.bf16.msra.mxu1 %v6802_v19  ;;  %v106_v18 = vld [vmem:[%s7918_s0 + $0x20] sm:$0xff]  ;;  %v6894_v19 = vld [vmem:[#allocation2 + $0xd8c] ss:$36 sps:$4 sm:$0xff]  }
  0xe0   :  { %3824 = vmatprep.subr.bf16.mxu0 %v6807_v20  ;;  %3988 = vmatprep.subr.bf16.mxu1 %v6810_v21  ;;  %v6889_v20 = vld [vmem:[#allocation2 + $0xd80] ss:$36 sps:$4 sm:$0xff]   ;;  %v6892_v21 = vld [vmem:[#allocation2 + $0xd88] ss:$36 sps:$4 sm:$0xff]  }
  0xe3   :  { %3825 = vmatpush1.bf16.msra.mxu0 %v6805_v22  ;;  %3989 = vmatpush1.bf16.msra.mxu1 %v6808_v23  ;;  %v7797_v22 = vpack.c.bf16 %v106_v18, %v106_v18  ;;  %v109_v23 = vld [vmem:[%s7918_s0 + $0x38] sm:$0xff] }
  0xe4   :  { %3826 = vmatprep.subr.bf16.mxu0 %v6813_v24  ;;  %3990 = vmatprep.subr.bf16.mxu1 %v6816_v25  ;;  %v6897_v24 = vld [vmem:[#allocation2 + $0xdcc] ss:$36 sps:$4 sm:$0xff]   ;;  %v6900_v25 = vld [vmem:[#allocation2 + $0xdd4] ss:$36 sps:$4 sm:$0xff]  }
  0xe5   :  { %v6975_v18 = vld [vmem:[#allocation2 + $0x1174] ss:$36 sps:$4 sm:$0xff]  }
  0xe7   :  { %3827 = vmatpush1.bf16.msra.mxu0 %v6811_v26  ;;  %3991 = vmatpush1.bf16.msra.mxu1 %v6814_v27  ;;  %v7802_v26 = vpack.c.bf16 %v109_v23, %v109_v23  ;;  %v6895_v27 = vld [vmem:[#allocation2 + $0xdc8] ss:$36 sps:$4 sm:$0xff]   ;;  %v6981_v23 = vld [vmem:[#allocation2 + $0x11bc] ss:$36 sps:$4 sm:$0xff]  }
  0xe8   :  { %3828 = vmatprep.subr.bf16.mxu0 %v6819_v28  ;;  %3992 = vmatprep.subr.bf16.mxu1 %v6822_v29  ;;  %v6898_v28 = vld [vmem:[#allocation2 + $0xdd0] ss:$36 sps:$4 sm:$0xff]  }
  0xe9   :  { %v6903_v29 = vld [vmem:[#allocation2 + $0xe14] ss:$36 sps:$4 sm:$0xff]  }
  0xeb   :  { %3829 = vmatpush1.bf16.msra.mxu0 %v6817_v30  ;;  %3993 = vmatpush1.bf16.msra.mxu1 %v6820_v31  ;;  %v6906_v30 = vld [vmem:[#allocation2 + $0xe1c] ss:$36 sps:$4 sm:$0xff]   ;;  %v6901_v31 = vld [vmem:[#allocation2 + $0xe10] ss:$36 sps:$4 sm:$0xff]  }
  0xec   :  { %3830 = vmatprep.subr.bf16.mxu0 %v6825_v33  ;;  %3994 = vmatprep.subr.bf16.mxu1 %v6828_v34  ;;  %v6904_v33 = vld [vmem:[#allocation2 + $0xe18] ss:$36 sps:$4 sm:$0xff]  }
  0xed   :  { %v6909_v34 = vld [vmem:[#allocation2 + $0xe5c] ss:$36 sps:$4 sm:$0xff]  }
  0xef   :  { %3831 = vmatpush1.bf16.msra.mxu0 %v6823_v35  ;;  %3995 = vmatpush1.bf16.msra.mxu1 %v6826_v36  ;;  %v6912_v35 = vld [vmem:[#allocation2 + $0xe64] ss:$36 sps:$4 sm:$0xff]   ;;  %v6907_v36 = vld [vmem:[#allocation2 + $0xe58] ss:$36 sps:$4 sm:$0xff]  }
  0xf0   :  { %3832 = vmatprep.subr.bf16.mxu0 %v6831_v37  ;;  %3996 = vmatprep.subr.bf16.mxu1 %v6834_v38  ;;  %v6910_v37 = vld [vmem:[#allocation2 + $0xe60] ss:$36 sps:$4 sm:$0xff]  }
  0xf1   :  { %v6915_v38 = vld [vmem:[#allocation2 + $0xea4] ss:$36 sps:$4 sm:$0xff]  }
  0xf3   :  { %3833 = vmatpush1.bf16.msra.mxu0 %v6829_v39  ;;  %3997 = vmatpush1.bf16.msra.mxu1 %v6832_v40  ;;  %v6918_v39 = vld [vmem:[#allocation2 + $0xeac] ss:$36 sps:$4 sm:$0xff]   ;;  %v6913_v40 = vld [vmem:[#allocation2 + $0xea0] ss:$36 sps:$4 sm:$0xff]  }
  0xf4   :  { %3834 = vmatprep.subr.bf16.mxu0 %v6837_v41  ;;  %3998 = vmatprep.subr.bf16.mxu1 %v6840_v42  ;;  %v6916_v41 = vld [vmem:[#allocation2 + $0xea8] ss:$36 sps:$4 sm:$0xff]  }
  0xf5   :  { %v6921_v42 = vld [vmem:[#allocation2 + $0xeec] ss:$36 sps:$4 sm:$0xff]  }
  0xf7   :  { %3835 = vmatpush1.bf16.msra.mxu0 %v6835_v43  ;;  %3999 = vmatpush1.bf16.msra.mxu1 %v6838_v44  ;;  %v6924_v43 = vld [vmem:[#allocation2 + $0xef4] ss:$36 sps:$4 sm:$0xff]   ;;  %v6919_v44 = vld [vmem:[#allocation2 + $0xee8] ss:$36 sps:$4 sm:$0xff]  }
  0xf8   :  { %3836 = vmatprep.subr.bf16.mxu0 %v6843_v45  ;;  %4000 = vmatprep.subr.bf16.mxu1 %v6846_v46  ;;  %v6922_v45 = vld [vmem:[#allocation2 + $0xef0] ss:$36 sps:$4 sm:$0xff]  }
  0xf9   :  { %v6927_v46 = vld [vmem:[#allocation2 + $0xf34] ss:$36 sps:$4 sm:$0xff]  }
  0xfb   :  { %3837 = vmatpush1.bf16.msra.mxu0 %v6841_v47  ;;  %4001 = vmatpush1.bf16.msra.mxu1 %v6844_v49  ;;  %v6930_v47 = vld [vmem:[#allocation2 + $0xf3c] ss:$36 sps:$4 sm:$0xff]   ;;  %v6925_v49 = vld [vmem:[#allocation2 + $0xf30] ss:$36 sps:$4 sm:$0xff]  }
  0xfc   :  { %3838 = vmatprep.subr.bf16.mxu0 %v6849_v50  ;;  %4002 = vmatprep.subr.bf16.mxu1 %v6852_v51  ;;  %v6928_v50 = vld [vmem:[#allocation2 + $0xf38] ss:$36 sps:$4 sm:$0xff]  }
  0xfd   :  { %v6933_v51 = vld [vmem:[#allocation2 + $0xf7c] ss:$36 sps:$4 sm:$0xff]  }
  0xff   :  { %3839 = vmatpush1.bf16.msra.mxu0 %v6847_v52  ;;  %4003 = vmatpush1.bf16.msra.mxu1 %v6850_v53  ;;  %v6936_v52 = vld [vmem:[#allocation2 + $0xf84] ss:$36 sps:$4 sm:$0xff]   ;;  %v6931_v53 = vld [vmem:[#allocation2 + $0xf78] ss:$36 sps:$4 sm:$0xff]  }
 0x100   :  { %3840 = vmatprep.subr.bf16.mxu0 %v6855_v54  ;;  %4004 = vmatprep.subr.bf16.mxu1 %v6858_v55  ;;  %v6934_v54 = vld [vmem:[#allocation2 + $0xf80] ss:$36 sps:$4 sm:$0xff]  }
 0x101   :  { %v6939_v55 = vld [vmem:[#allocation2 + $0xfc4] ss:$36 sps:$4 sm:$0xff]  }
 0x103   :  { %3841 = vmatpush1.bf16.msra.mxu0 %v6853_v56  ;;  %4005 = vmatpush1.bf16.msra.mxu1 %v6856_v57  ;;  %v6942_v56 = vld [vmem:[#allocation2 + $0xfcc] ss:$36 sps:$4 sm:$0xff]   ;;  %v6937_v57 = vld [vmem:[#allocation2 + $0xfc0] ss:$36 sps:$4 sm:$0xff]  }
 0x104   :  { %3842 = vmatprep.subr.bf16.mxu0 %v6861_v58  ;;  %4006 = vmatprep.subr.bf16.mxu1 %v6864_v59  ;;  %v6940_v58 = vld [vmem:[#allocation2 + $0xfc8] ss:$36 sps:$4 sm:$0xff]  }
 0x105   :  { %v6945_v59 = vld [vmem:[#allocation2 + $0x100c] ss:$36 sps:$4 sm:$0xff]  }
 0x107   :  { %3843 = vmatpush1.bf16.msra.mxu0 %v6859_v60  ;;  %4007 = vmatpush1.bf16.msra.mxu1 %v6862_v61  ;;  %v6948_v60 = vld [vmem:[#allocation2 + $0x1014] ss:$36 sps:$4 sm:$0xff]   ;;  %v6943_v61 = vld [vmem:[#allocation2 + $0x1008] ss:$36 sps:$4 sm:$0xff]  }
 0x108   :  { %3844 = vmatprep.subr.bf16.mxu0 %v6867_v62  ;;  %4008 = vmatprep.subr.bf16.mxu1 %v6870_v63  ;;  %v6946_v62 = vld [vmem:[#allocation2 + $0x1010] ss:$36 sps:$4 sm:$0xff]  }
 0x109   :  { %v6951_v63 = vld [vmem:[#allocation2 + $0x1054] ss:$36 sps:$4 sm:$0xff]  }
 0x10b   :  { %3845 = vmatpush1.bf16.msra.mxu0 %v6865_v0  ;;  %4009 = vmatpush1.bf16.msra.mxu1 %v6868_v1  ;;  %v6954_v0 = vld [vmem:[#allocation2 + $0x105c] ss:$36 sps:$4 sm:$0xff]   ;;  %v6949_v1 = vld [vmem:[#allocation2 + $0x1050] ss:$36 sps:$4 sm:$0xff]  }
 0x10c   :  { %3846 = vmatprep.subr.bf16.mxu0 %v6873_v2  ;;  %4010 = vmatprep.subr.bf16.mxu1 %v6876_v3  ;;  %v6952_v2 = vld [vmem:[#allocation2 + $0x1058] ss:$36 sps:$4 sm:$0xff]  }
 0x10d   :  { %v6957_v3 = vld [vmem:[#allocation2 + $0x109c] ss:$36 sps:$4 sm:$0xff]  }
 0x10f   :  { %3847 = vmatpush1.bf16.msra.mxu0 %v6871_v4  ;;  %4011 = vmatpush1.bf16.msra.mxu1 %v6874_v6  ;;  %v6960_v4 = vld [vmem:[#allocation2 + $0x10a4] ss:$36 sps:$4 sm:$0xff]   ;;  %v6955_v6 = vld [vmem:[#allocation2 + $0x1098] ss:$36 sps:$4 sm:$0xff]  }
 0x110   :  { %3848 = vmatprep.subr.bf16.mxu0 %v6879_v7  ;;  %4012 = vmatprep.subr.bf16.mxu1 %v6882_v8  ;;  %v6958_v7 = vld [vmem:[#allocation2 + $0x10a0] ss:$36 sps:$4 sm:$0xff]  }
 0x111   :  { %v6963_v8 = vld [vmem:[#allocation2 + $0x10e4] ss:$36 sps:$4 sm:$0xff]  }
 0x113   :  { %3849 = vmatpush1.bf16.msra.mxu0 %v6877_v9  ;;  %4013 = vmatpush1.bf16.msra.mxu1 %v6880_v10  ;;  %v6966_v9 = vld [vmem:[#allocation2 + $0x10ec] ss:$36 sps:$4 sm:$0xff]   ;;  %v6961_v10 = vld [vmem:[#allocation2 + $0x10e0] ss:$36 sps:$4 sm:$0xff]  }
 0x114   :  { %3850 = vmatprep.subr.bf16.mxu0 %v6885_v11  ;;  %4014 = vmatprep.subr.bf16.mxu1 %v6888_v12  ;;  %v6964_v11 = vld [vmem:[#allocation2 + $0x10e8] ss:$36 sps:$4 sm:$0xff]  }
 0x115   :  { %v6969_v12 = vld [vmem:[#allocation2 + $0x112c] ss:$36 sps:$4 sm:$0xff]  }
 0x117   :  { %3851 = vmatpush1.bf16.msra.mxu0 %v6883_v14  ;;  %4015 = vmatpush1.bf16.msra.mxu1 %v6886_v15  ;;  %v6972_v14 = vld [vmem:[#allocation2 + $0x1134] ss:$36 sps:$4 sm:$0xff]   ;;  %v6967_v15 = vld [vmem:[#allocation2 + $0x1128] ss:$36 sps:$4 sm:$0xff]  }
 0x118   :  { %3861 = vmatprep.subr.bf16.mxu0 %v6891_v16  ;;  %4025 = vmatprep.subr.bf16.mxu1 %v6894_v19  ;;  %v6970_v16 = vld [vmem:[#allocation2 + $0x1130] ss:$36 sps:$4 sm:$0xff]   ;;  %v6978_v19 = vld [vmem:[#allocation2 + $0x117c] ss:$36 sps:$4 sm:$0xff]  }
 0x11a   :  { %3853 = vmatmul.mubr.bf16.vlgmr.msra.gmra.mrb[0].mxu0 %v7797_v22  ;;  %4017 = vmatmul.mubr.bf16.vlgmr.msra.gmra.mrb[0].mxu1 %v7797_v22 }
 0x11b   :  { %3862 = vmatpush1.bf16.msra.mxu0 %v6889_v20  ;;  %4026 = vmatpush1.bf16.msra.mxu1 %v6892_v21  ;;  %v6973_v20 = vld [vmem:[#allocation2 + $0x1170] ss:$36 sps:$4 sm:$0xff]   ;;  %v6976_v21 = vld [vmem:[#allocation2 + $0x1178] ss:$36 sps:$4 sm:$0xff]  }
 0x11c   :  { %3863 = vmatprep.subr.bf16.mxu0 %v6897_v24  ;;  %4027 = vmatprep.subr.bf16.mxu1 %v6900_v25  ;;  %v6984_v24 = vld [vmem:[#allocation2 + $0x11c4] ss:$36 sps:$4 sm:$0xff]   ;;  %v6979_v25 = vld [vmem:[#allocation2 + $0x11b8] ss:$36 sps:$4 sm:$0xff]  }
 0x11d   :  { %3893 = vmatprep.mubr.bf16.mxu0 %v7802_v26  ;;  %4057 = vmatprep.mubr.bf16.mxu1 %v7802_v26 }
 0x11f   :  { %3864 = vmatpush1.bf16.msra.mxu0 %v6895_v27  ;;  %4028 = vmatpush1.bf16.msra.mxu1 %v6898_v28  ;;  %v6982_v27 = vld [vmem:[#allocation2 + $0x11c0] ss:$36 sps:$4 sm:$0xff]   ;;  %v108_v28 = vld [vmem:[%s7918_s0 + $0x30] sm:$0xff] }
 0x120   :  { %3865 = vmatprep.subr.bf16.mxu0 %v6903_v29  ;;  %4029 = vmatprep.subr.bf16.mxu1 %v6906_v30  ;;  %v6987_v29 = vld [vmem:[#allocation2 + $0x14] ss:$36 sps:$4 sm:$0xff]   ;;  %v6990_v30 = vld [vmem:[#allocation2 + $0x1c] ss:$36 sps:$4 sm:$0xff]  }
 0x123   :  { %3866 = vmatpush1.bf16.msra.mxu0 %v6901_v31  ;;  %4030 = vmatpush1.bf16.msra.mxu1 %v6904_v33  ;;  %v7811_v31 = vpack.c.bf16 %v108_v28, %v108_v28  ;;  %v6985_v33 = vld [vmem:[#allocation2 + $0x10] ss:$36 sps:$4 sm:$0xff]   ;;  %v7066_v28 = vld [vmem:[#allocation2 + $0x3c0] ss:$36 sps:$4 sm:$0xff]  }
 0x124   :  { %3867 = vmatprep.subr.bf16.mxu0 %v6909_v34  ;;  %4031 = vmatprep.subr.bf16.mxu1 %v6912_v35  ;;  %v6988_v34 = vld [vmem:[#allocation2 + $0x18] ss:$36 sps:$4 sm:$0xff]  }
 0x125   :  { %v6993_v35 = vld [vmem:[#allocation2 + $0x5c] ss:$36 sps:$4 sm:$0xff]  }
 0x127   :  { %3868 = vmatpush1.bf16.msra.mxu0 %v6907_v36  ;;  %4032 = vmatpush1.bf16.msra.mxu1 %v6910_v37  ;;  %v6996_v36 = vld [vmem:[#allocation2 + $0x64] ss:$36 sps:$4 sm:$0xff]   ;;  %v6991_v37 = vld [vmem:[#allocation2 + $0x58] ss:$36 sps:$4 sm:$0xff]  }
 0x128   :  { %3869 = vmatprep.subr.bf16.mxu0 %v6915_v38  ;;  %4033 = vmatprep.subr.bf16.mxu1 %v6918_v39  ;;  %v6994_v38 = vld [vmem:[#allocation2 + $0x60] ss:$36 sps:$4 sm:$0xff]  }
 0x129   :  { %v6999_v39 = vld [vmem:[#allocation2 + $0xa4] ss:$36 sps:$4 sm:$0xff]  }
 0x12b   :  { %3870 = vmatpush1.bf16.msra.mxu0 %v6913_v40  ;;  %4034 = vmatpush1.bf16.msra.mxu1 %v6916_v41  ;;  %v7002_v40 = vld [vmem:[#allocation2 + $0xac] ss:$36 sps:$4 sm:$0xff]   ;;  %v6997_v41 = vld [vmem:[#allocation2 + $0xa0] ss:$36 sps:$4 sm:$0xff]  }
 0x12c   :  { %3871 = vmatprep.subr.bf16.mxu0 %v6921_v42  ;;  %4035 = vmatprep.subr.bf16.mxu1 %v6924_v43  ;;  %v7000_v42 = vld [vmem:[#allocation2 + $0xa8] ss:$36 sps:$4 sm:$0xff]  }
 0x12d   :  { %v7005_v43 = vld [vmem:[#allocation2 + $0xec] ss:$36 sps:$4 sm:$0xff]  }
 0x12f   :  { %3872 = vmatpush1.bf16.msra.mxu0 %v6919_v44  ;;  %4036 = vmatpush1.bf16.msra.mxu1 %v6922_v45  ;;  %v7008_v44 = vld [vmem:[#allocation2 + $0xf4] ss:$36 sps:$4 sm:$0xff]   ;;  %v7003_v45 = vld [vmem:[#allocation2 + $0xe8] ss:$36 sps:$4 sm:$0xff]  }
 0x130   :  { %3873 = vmatprep.subr.bf16.mxu0 %v6927_v46  ;;  %4037 = vmatprep.subr.bf16.mxu1 %v6930_v47  ;;  %v7006_v46 = vld [vmem:[#allocation2 + $0xf0] ss:$36 sps:$4 sm:$0xff]  }
 0x131   :  { %v7011_v47 = vld [vmem:[#allocation2 + $0x134] ss:$36 sps:$4 sm:$0xff]  }
 0x133   :  { %3874 = vmatpush1.bf16.msra.mxu0 %v6925_v49  ;;  %4038 = vmatpush1.bf16.msra.mxu1 %v6928_v50  ;;  %v7014_v49 = vld [vmem:[#allocation2 + $0x13c] ss:$36 sps:$4 sm:$0xff]   ;;  %v7009_v50 = vld [vmem:[#allocation2 + $0x130] ss:$36 sps:$4 sm:$0xff]  }
 0x134   :  { %3875 = vmatprep.subr.bf16.mxu0 %v6933_v51  ;;  %4039 = vmatprep.subr.bf16.mxu1 %v6936_v52  ;;  %v7012_v51 = vld [vmem:[#allocation2 + $0x138] ss:$36 sps:$4 sm:$0xff]  }
 0x135   :  { %v7017_v52 = vld [vmem:[#allocation2 + $0x17c] ss:$36 sps:$4 sm:$0xff]  }
 0x137   :  { %3876 = vmatpush1.bf16.msra.mxu0 %v6931_v53  ;;  %4040 = vmatpush1.bf16.msra.mxu1 %v6934_v54  ;;  %v7020_v53 = vld [vmem:[#allocation2 + $0x184] ss:$36 sps:$4 sm:$0xff]   ;;  %v7015_v54 = vld [vmem:[#allocation2 + $0x178] ss:$36 sps:$4 sm:$0xff]  }
 0x138   :  { %3877 = vmatprep.subr.bf16.mxu0 %v6939_v55  ;;  %4041 = vmatprep.subr.bf16.mxu1 %v6942_v56  ;;  %v7018_v55 = vld [vmem:[#allocation2 + $0x180] ss:$36 sps:$4 sm:$0xff]  }
 0x139   :  { %v7023_v56 = vld [vmem:[#allocation2 + $0x1c4] ss:$36 sps:$4 sm:$0xff]  }
 0x13b   :  { %3878 = vmatpush1.bf16.msra.mxu0 %v6937_v57  ;;  %4042 = vmatpush1.bf16.msra.mxu1 %v6940_v58  ;;  %v7026_v57 = vld [vmem:[#allocation2 + $0x1cc] ss:$36 sps:$4 sm:$0xff]   ;;  %v7021_v58 = vld [vmem:[#allocation2 + $0x1c0] ss:$36 sps:$4 sm:$0xff]  }
 0x13c   :  { %3879 = vmatprep.subr.bf16.mxu0 %v6945_v59  ;;  %4043 = vmatprep.subr.bf16.mxu1 %v6948_v60  ;;  %v7024_v59 = vld [vmem:[#allocation2 + $0x1c8] ss:$36 sps:$4 sm:$0xff]  }
 0x13d   :  { %v7029_v60 = vld [vmem:[#allocation2 + $0x20c] ss:$36 sps:$4 sm:$0xff]  }
 0x13f   :  { %3880 = vmatpush1.bf16.msra.mxu0 %v6943_v61  ;;  %4044 = vmatpush1.bf16.msra.mxu1 %v6946_v62  ;;  %v7032_v61 = vld [vmem:[#allocation2 + $0x214] ss:$36 sps:$4 sm:$0xff]   ;;  %v7027_v62 = vld [vmem:[#allocation2 + $0x208] ss:$36 sps:$4 sm:$0xff]  }
 0x140   :  { %3881 = vmatprep.subr.bf16.mxu0 %v6951_v63  ;;  %4045 = vmatprep.subr.bf16.mxu1 %v6954_v0  ;;  %v7030_v63 = vld [vmem:[#allocation2 + $0x210] ss:$36 sps:$4 sm:$0xff]  }
 0x141   :  { %v7035_v0 = vld [vmem:[#allocation2 + $0x254] ss:$36 sps:$4 sm:$0xff]  }
 0x143   :  { %3882 = vmatpush1.bf16.msra.mxu0 %v6949_v1  ;;  %4046 = vmatpush1.bf16.msra.mxu1 %v6952_v2  ;;  %v7038_v1 = vld [vmem:[#allocation2 + $0x25c] ss:$36 sps:$4 sm:$0xff]   ;;  %v7033_v2 = vld [vmem:[#allocation2 + $0x250] ss:$36 sps:$4 sm:$0xff]  }
 0x144   :  { %3883 = vmatprep.subr.bf16.mxu0 %v6957_v3  ;;  %4047 = vmatprep.subr.bf16.mxu1 %v6960_v4  ;;  %v7036_v3 = vld [vmem:[#allocation2 + $0x258] ss:$36 sps:$4 sm:$0xff]  }
 0x145   :  { %v7041_v4 = vld [vmem:[#allocation2 + $0x29c] ss:$36 sps:$4 sm:$0xff]  }
 0x147   :  { %3884 = vmatpush1.bf16.msra.mxu0 %v6955_v6  ;;  %4048 = vmatpush1.bf16.msra.mxu1 %v6958_v7  ;;  %v7044_v6 = vld [vmem:[#allocation2 + $0x2a4] ss:$36 sps:$4 sm:$0xff]   ;;  %v7039_v7 = vld [vmem:[#allocation2 + $0x298] ss:$36 sps:$4 sm:$0xff]  }
 0x148   :  { %3885 = vmatprep.subr.bf16.mxu0 %v6963_v8  ;;  %4049 = vmatprep.subr.bf16.mxu1 %v6966_v9  ;;  %v7042_v8 = vld [vmem:[#allocation2 + $0x2a0] ss:$36 sps:$4 sm:$0xff]  }
 0x149   :  { %v7047_v9 = vld [vmem:[#allocation2 + $0x2e4] ss:$36 sps:$4 sm:$0xff]  }
 0x14b   :  { %3886 = vmatpush1.bf16.msra.mxu0 %v6961_v10  ;;  %4050 = vmatpush1.bf16.msra.mxu1 %v6964_v11  ;;  %v7050_v10 = vld [vmem:[#allocation2 + $0x2ec] ss:$36 sps:$4 sm:$0xff]   ;;  %v7045_v11 = vld [vmem:[#allocation2 + $0x2e0] ss:$36 sps:$4 sm:$0xff]  }
 0x14c   :  { %3887 = vmatprep.subr.bf16.mxu0 %v6969_v12  ;;  %4051 = vmatprep.subr.bf16.mxu1 %v6972_v14  ;;  %v7048_v12 = vld [vmem:[#allocation2 + $0x2e8] ss:$36 sps:$4 sm:$0xff]  }
 0x14d   :  { %v7053_v14 = vld [vmem:[#allocation2 + $0x32c] ss:$36 sps:$4 sm:$0xff]  }
 0x14f   :  { %3888 = vmatpush1.bf16.msra.mxu0 %v6967_v15  ;;  %4052 = vmatpush1.bf16.msra.mxu1 %v6970_v16  ;;  %v7056_v15 = vld [vmem:[#allocation2 + $0x334] ss:$36 sps:$4 sm:$0xff]   ;;  %v7051_v16 = vld [vmem:[#allocation2 + $0x328] ss:$36 sps:$4 sm:$0xff]  }
 0x150   :  { %3889 = vmatprep.subr.bf16.mxu0 %v6975_v18  ;;  %4053 = vmatprep.subr.bf16.mxu1 %v6978_v19  ;;  %v7054_v18 = vld [vmem:[#allocation2 + $0x330] ss:$36 sps:$4 sm:$0xff]  }
 0x151   :  { %v7059_v19 = vld [vmem:[#allocation2 + $0x374] ss:$36 sps:$4 sm:$0xff]  }
 0x153   :  { %3890 = vmatpush1.bf16.msra.mxu0 %v6973_v20  ;;  %4054 = vmatpush1.bf16.msra.mxu1 %v6976_v21  ;;  %v7062_v20 = vld [vmem:[#allocation2 + $0x37c] ss:$36 sps:$4 sm:$0xff]   ;;  %v7057_v21 = vld [vmem:[#allocation2 + $0x370] ss:$36 sps:$4 sm:$0xff]  }
 0x154   :  { %3891 = vmatprep.subr.bf16.mxu0 %v6981_v23  ;;  %4055 = vmatprep.subr.bf16.mxu1 %v6984_v24  ;;  %v7060_v23 = vld [vmem:[#allocation2 + $0x378] ss:$36 sps:$4 sm:$0xff]  }
 0x155   :  { %v7065_v24 = vld [vmem:[#allocation2 + $0x3bc] ss:$36 sps:$4 sm:$0xff]  }
 0x157   :  { %3892 = vmatpush1.bf16.msra.mxu0 %v6979_v25  ;;  %4056 = vmatpush1.bf16.msra.mxu1 %v6982_v27  ;;  %v7068_v25 = vld [vmem:[#allocation2 + $0x3c4] ss:$36 sps:$4 sm:$0xff]   ;;  %v7063_v27 = vld [vmem:[#allocation2 + $0x3b8] ss:$36 sps:$4 sm:$0xff]  }
 0x158   :  { %4066 = vmatprep.subr.bf16.mxu0 %v6987_v29  ;;  %4230 = vmatprep.subr.bf16.mxu1 %v6990_v30  ;;  %v7071_v29 = vld [vmem:[#allocation2 + $0x404] ss:$36 sps:$4 sm:$0xff]   ;;  %v7074_v30 = vld [vmem:[#allocation2 + $0x40c] ss:$36 sps:$4 sm:$0xff]  }
 0x15a   :  { %3894 = vmatmul.mubr.bf16.vlgmr.msra.gmra.mrb[0].mxu0 %v7811_v31  ;;  %4058 = vmatmul.mubr.bf16.vlgmr.msra.gmra.mrb[0].mxu1 %v7811_v31 }
 0x15b   :  { %4067 = vmatpush1.bf16.msra.mxu0 %v6985_v33  ;;  %4231 = vmatpush1.bf16.msra.mxu1 %v6988_v34  ;;  %v7069_v33 = vld [vmem:[#allocation2 + $0x400] ss:$36 sps:$4 sm:$0xff]   ;;  %v7072_v34 = vld [vmem:[#allocation2 + $0x408] ss:$36 sps:$4 sm:$0xff]  }
 0x15c   :  { %4068 = vmatprep.subr.bf16.mxu0 %v6993_v35  ;;  %4232 = vmatprep.subr.bf16.mxu1 %v6996_v36  ;;  %v7077_v35 = vld [vmem:[#allocation2 + $0x44c] ss:$36 sps:$4 sm:$0xff]   ;;  %v7080_v36 = vld [vmem:[#allocation2 + $0x454] ss:$36 sps:$4 sm:$0xff]  }
 0x15d   :  { %4098 = vmatprep.mubr.bf16.mxu0 %v7762_v48  ;;  %4262 = vmatprep.mubr.bf16.mxu1 %v7762_v48 }
 0x15f   :  { %4069 = vmatpush1.bf16.msra.mxu0 %v6991_v37  ;;  %4233 = vmatpush1.bf16.msra.mxu1 %v6994_v38  ;;  %v7075_v37 = vld [vmem:[#allocation2 + $0x448] ss:$36 sps:$4 sm:$0xff]   ;;  %v7078_v38 = vld [vmem:[#allocation2 + $0x450] ss:$36 sps:$4 sm:$0xff]  }
 0x160   :  { %4070 = vmatprep.subr.bf16.mxu0 %v6999_v39  ;;  %4234 = vmatprep.subr.bf16.mxu1 %v7002_v40  ;;  %v7083_v39 = vld [vmem:[#allocation2 + $0x494] ss:$36 sps:$4 sm:$0xff]   ;;  %v7086_v40 = vld [vmem:[#allocation2 + $0x49c] ss:$36 sps:$4 sm:$0xff]  }
 0x163   :  { %4071 = vmatpush1.bf16.msra.mxu0 %v6997_v41  ;;  %4235 = vmatpush1.bf16.msra.mxu1 %v7000_v42  ;;  %v7081_v41 = vld [vmem:[#allocation2 + $0x490] ss:$36 sps:$4 sm:$0xff]   ;;  %v7084_v42 = vld [vmem:[#allocation2 + $0x498] ss:$36 sps:$4 sm:$0xff]  }
 0x164   :  { %4072 = vmatprep.subr.bf16.mxu0 %v7005_v43  ;;  %4236 = vmatprep.subr.bf16.mxu1 %v7008_v44  ;;  %v7089_v43 = vld [vmem:[#allocation2 + $0x4dc] ss:$36 sps:$4 sm:$0xff]   ;;  %v7092_v44 = vld [vmem:[#allocation2 + $0x4e4] ss:$36 sps:$4 sm:$0xff]  }
 0x167   :  { %4073 = vmatpush1.bf16.msra.mxu0 %v7003_v45  ;;  %4237 = vmatpush1.bf16.msra.mxu1 %v7006_v46  ;;  %v7087_v45 = vld [vmem:[#allocation2 + $0x4d8] ss:$36 sps:$4 sm:$0xff]   ;;  %v7090_v46 = vld [vmem:[#allocation2 + $0x4e0] ss:$36 sps:$4 sm:$0xff]  }
 0x168   :  { %4074 = vmatprep.subr.bf16.mxu0 %v7011_v47  ;;  %4238 = vmatprep.subr.bf16.mxu1 %v7014_v49  ;;  %v7095_v47 = vld [vmem:[#allocation2 + $0x524] ss:$36 sps:$4 sm:$0xff]   ;;  %v7098_v49 = vld [vmem:[#allocation2 + $0x52c] ss:$36 sps:$4 sm:$0xff]  }
 0x16b   :  { %4075 = vmatpush1.bf16.msra.mxu0 %v7009_v50  ;;  %4239 = vmatpush1.bf16.msra.mxu1 %v7012_v51  ;;  %v7093_v50 = vld [vmem:[#allocation2 + $0x520] ss:$36 sps:$4 sm:$0xff]   ;;  %v7096_v51 = vld [vmem:[#allocation2 + $0x528] ss:$36 sps:$4 sm:$0xff]  }
 0x16c   :  { %4076 = vmatprep.subr.bf16.mxu0 %v7017_v52  ;;  %4240 = vmatprep.subr.bf16.mxu1 %v7020_v53  ;;  %v7101_v52 = vld [vmem:[#allocation2 + $0x56c] ss:$36 sps:$4 sm:$0xff]   ;;  %v7104_v53 = vld [vmem:[#allocation2 + $0x574] ss:$36 sps:$4 sm:$0xff]  }
 0x16f   :  { %4077 = vmatpush1.bf16.msra.mxu0 %v7015_v54  ;;  %4241 = vmatpush1.bf16.msra.mxu1 %v7018_v55  ;;  %v7099_v54 = vld [vmem:[#allocation2 + $0x568] ss:$36 sps:$4 sm:$0xff]   ;;  %v7102_v55 = vld [vmem:[#allocation2 + $0x570] ss:$36 sps:$4 sm:$0xff]  }
 0x170   :  { %4078 = vmatprep.subr.bf16.mxu0 %v7023_v56  ;;  %4242 = vmatprep.subr.bf16.mxu1 %v7026_v57  ;;  %v7107_v56 = vld [vmem:[#allocation2 + $0x5b4] ss:$36 sps:$4 sm:$0xff]   ;;  %v7110_v57 = vld [vmem:[#allocation2 + $0x5bc] ss:$36 sps:$4 sm:$0xff]  }
 0x173   :  { %4079 = vmatpush1.bf16.msra.mxu0 %v7021_v58  ;;  %4243 = vmatpush1.bf16.msra.mxu1 %v7024_v59  ;;  %v7105_v58 = vld [vmem:[#allocation2 + $0x5b0] ss:$36 sps:$4 sm:$0xff]   ;;  %v7108_v59 = vld [vmem:[#allocation2 + $0x5b8] ss:$36 sps:$4 sm:$0xff]  }
 0x174   :  { %4080 = vmatprep.subr.bf16.mxu0 %v7029_v60  ;;  %4244 = vmatprep.subr.bf16.mxu1 %v7032_v61  ;;  %v7113_v60 = vld [vmem:[#allocation2 + $0x5fc] ss:$36 sps:$4 sm:$0xff]   ;;  %v7116_v61 = vld [vmem:[#allocation2 + $0x604] ss:$36 sps:$4 sm:$0xff]  }
 0x177   :  { %4081 = vmatpush1.bf16.msra.mxu0 %v7027_v62  ;;  %4245 = vmatpush1.bf16.msra.mxu1 %v7030_v63  ;;  %v7111_v62 = vld [vmem:[#allocation2 + $0x5f8] ss:$36 sps:$4 sm:$0xff]   ;;  %v7114_v63 = vld [vmem:[#allocation2 + $0x600] ss:$36 sps:$4 sm:$0xff]  }
 0x178   :  { %4082 = vmatprep.subr.bf16.mxu0 %v7035_v0  ;;  %4246 = vmatprep.subr.bf16.mxu1 %v7038_v1  ;;  %v7119_v0 = vld [vmem:[#allocation2 + $0x644] ss:$36 sps:$4 sm:$0xff]   ;;  %v7122_v1 = vld [vmem:[#allocation2 + $0x64c] ss:$36 sps:$4 sm:$0xff]  }
 0x17b   :  { %4083 = vmatpush1.bf16.msra.mxu0 %v7033_v2  ;;  %4247 = vmatpush1.bf16.msra.mxu1 %v7036_v3  ;;  %v7117_v2 = vld [vmem:[#allocation2 + $0x640] ss:$36 sps:$4 sm:$0xff]   ;;  %v7120_v3 = vld [vmem:[#allocation2 + $0x648] ss:$36 sps:$4 sm:$0xff]  }
 0x17c   :  { %4084 = vmatprep.subr.bf16.mxu0 %v7041_v4  ;;  %4248 = vmatprep.subr.bf16.mxu1 %v7044_v6  ;;  %v7125_v4 = vld [vmem:[#allocation2 + $0x68c] ss:$36 sps:$4 sm:$0xff]   ;;  %v7128_v6 = vld [vmem:[#allocation2 + $0x694] ss:$36 sps:$4 sm:$0xff]  }
 0x17f   :  { %4085 = vmatpush1.bf16.msra.mxu0 %v7039_v7  ;;  %4249 = vmatpush1.bf16.msra.mxu1 %v7042_v8  ;;  %v7123_v7 = vld [vmem:[#allocation2 + $0x688] ss:$36 sps:$4 sm:$0xff]   ;;  %v7126_v8 = vld [vmem:[#allocation2 + $0x690] ss:$36 sps:$4 sm:$0xff]  }
 0x180   :  { %4086 = vmatprep.subr.bf16.mxu0 %v7047_v9  ;;  %4250 = vmatprep.subr.bf16.mxu1 %v7050_v10  ;;  %v7131_v9 = vld [vmem:[#allocation2 + $0x6d4] ss:$36 sps:$4 sm:$0xff]   ;;  %v7134_v10 = vld [vmem:[#allocation2 + $0x6dc] ss:$36 sps:$4 sm:$0xff]  }
 0x183   :  { %4087 = vmatpush1.bf16.msra.mxu0 %v7045_v11  ;;  %4251 = vmatpush1.bf16.msra.mxu1 %v7048_v12  ;;  %v7129_v11 = vld [vmem:[#allocation2 + $0x6d0] ss:$36 sps:$4 sm:$0xff]   ;;  %v7132_v12 = vld [vmem:[#allocation2 + $0x6d8] ss:$36 sps:$4 sm:$0xff]  }
 0x184   :  { %4088 = vmatprep.subr.bf16.mxu0 %v7053_v14  ;;  %4252 = vmatprep.subr.bf16.mxu1 %v7056_v15  ;;  %v7137_v14 = vld [vmem:[#allocation2 + $0x71c] ss:$36 sps:$4 sm:$0xff]   ;;  %v7140_v15 = vld [vmem:[#allocation2 + $0x724] ss:$36 sps:$4 sm:$0xff]  }
 0x187   :  { %4089 = vmatpush1.bf16.msra.mxu0 %v7051_v16  ;;  %4253 = vmatpush1.bf16.msra.mxu1 %v7054_v18  ;;  %v7135_v16 = vld [vmem:[#allocation2 + $0x718] ss:$36 sps:$4 sm:$0xff]   ;;  %v7138_v18 = vld [vmem:[#allocation2 + $0x720] ss:$36 sps:$4 sm:$0xff]  }
 0x188   :  { %4090 = vmatprep.subr.bf16.mxu0 %v7059_v19  ;;  %4254 = vmatprep.subr.bf16.mxu1 %v7062_v20  ;;  %v7143_v19 = vld [vmem:[#allocation2 + $0x764] ss:$36 sps:$4 sm:$0xff]   ;;  %v7146_v20 = vld [vmem:[#allocation2 + $0x76c] ss:$36 sps:$4 sm:$0xff]  }
 0x18b   :  { %4091 = vmatpush1.bf16.msra.mxu0 %v7057_v21  ;;  %4255 = vmatpush1.bf16.msra.mxu1 %v7060_v23  ;;  %v7141_v21 = vld [vmem:[#allocation2 + $0x760] ss:$36 sps:$4 sm:$0xff]   ;;  %v7144_v23 = vld [vmem:[#allocation2 + $0x768] ss:$36 sps:$4 sm:$0xff]  }
 0x18c   :  { %4092 = vmatprep.subr.bf16.mxu0 %v7065_v24  ;;  %4256 = vmatprep.subr.bf16.mxu1 %v7068_v25  ;;  %v7149_v24 = vld [vmem:[#allocation2 + $0x7ac] ss:$36 sps:$4 sm:$0xff]   ;;  %v7152_v25 = vld [vmem:[#allocation2 + $0x7b4] ss:$36 sps:$4 sm:$0xff]  }
 0x18f   :  { %4093 = vmatpush1.bf16.msra.mxu0 %v7063_v27  ;;  %4257 = vmatpush1.bf16.msra.mxu1 %v7066_v28  ;;  %v7147_v27 = vld [vmem:[#allocation2 + $0x7a8] ss:$36 sps:$4 sm:$0xff]   ;;  %v7150_v28 = vld [vmem:[#allocation2 + $0x7b0] ss:$36 sps:$4 sm:$0xff]  }
 0x190   :  { %4094 = vmatprep.subr.bf16.mxu0 %v7071_v29  ;;  %4258 = vmatprep.subr.bf16.mxu1 %v7074_v30  ;;  %v7155_v29 = vld [vmem:[#allocation2 + $0x7f4] ss:$36 sps:$4 sm:$0xff]   ;;  %v7158_v30 = vld [vmem:[#allocation2 + $0x7fc] ss:$36 sps:$4 sm:$0xff]  }
 0x193   :  { %4095 = vmatpush1.bf16.msra.mxu0 %v7069_v33  ;;  %4259 = vmatpush1.bf16.msra.mxu1 %v7072_v34  ;;  %v7153_v33 = vld [vmem:[#allocation2 + $0x7f0] ss:$36 sps:$4 sm:$0xff]   ;;  %v7156_v34 = vld [vmem:[#allocation2 + $0x7f8] ss:$36 sps:$4 sm:$0xff]  }
 0x194   :  { %4096 = vmatprep.subr.bf16.mxu0 %v7077_v35  ;;  %4260 = vmatprep.subr.bf16.mxu1 %v7080_v36  ;;  %v7161_v35 = vld [vmem:[#allocation2 + $0x83c] ss:$36 sps:$4 sm:$0xff]   ;;  %v7164_v36 = vld [vmem:[#allocation2 + $0x844] ss:$36 sps:$4 sm:$0xff]  }
 0x197   :  { %4097 = vmatpush1.bf16.msra.mxu0 %v7075_v37  ;;  %4261 = vmatpush1.bf16.msra.mxu1 %v7078_v38  ;;  %v7159_v37 = vld [vmem:[#allocation2 + $0x838] ss:$36 sps:$4 sm:$0xff]   ;;  %v7162_v38 = vld [vmem:[#allocation2 + $0x840] ss:$36 sps:$4 sm:$0xff]  }
 0x198   :  { %4107 = vmatprep.subr.bf16.mxu0 %v7083_v39  ;;  %4271 = vmatprep.subr.bf16.mxu1 %v7086_v40  ;;  %v7167_v39 = vld [vmem:[#allocation2 + $0x884] ss:$36 sps:$4 sm:$0xff]   ;;  %v7170_v40 = vld [vmem:[#allocation2 + $0x88c] ss:$36 sps:$4 sm:$0xff]  }
 0x19a   :  { %4099 = vmatmul.mubr.bf16.vlgmr.msra.gmra.mrb[4].mxu0 %v7769_v5  ;;  %4263 = vmatmul.mubr.bf16.vlgmr.msra.gmra.mrb[4].mxu1 %v7769_v5 }
 0x19b   :  { %4108 = vmatpush1.bf16.msra.mxu0 %v7081_v41  ;;  %4272 = vmatpush1.bf16.msra.mxu1 %v7084_v42  ;;  %v7165_v41 = vld [vmem:[#allocation2 + $0x880] ss:$36 sps:$4 sm:$0xff]   ;;  %v7168_v42 = vld [vmem:[#allocation2 + $0x888] ss:$36 sps:$4 sm:$0xff]  }
 0x19c   :  { %4109 = vmatprep.subr.bf16.mxu0 %v7089_v43  ;;  %4273 = vmatprep.subr.bf16.mxu1 %v7092_v44  ;;  %v7173_v43 = vld [vmem:[#allocation2 + $0x8cc] ss:$36 sps:$4 sm:$0xff]   ;;  %v7176_v44 = vld [vmem:[#allocation2 + $0x8d4] ss:$36 sps:$4 sm:$0xff]  }
 0x19d   :  { %4139 = vmatprep.mubr.bf16.mxu0 %v7776_v32  ;;  %4303 = vmatprep.mubr.bf16.mxu1 %v7776_v32 }
 0x19f   :  { %4110 = vmatpush1.bf16.msra.mxu0 %v7087_v45  ;;  %4274 = vmatpush1.bf16.msra.mxu1 %v7090_v46  ;;  %v7171_v45 = vld [vmem:[#allocation2 + $0x8c8] ss:$36 sps:$4 sm:$0xff]   ;;  %v7174_v46 = vld [vmem:[#allocation2 + $0x8d0] ss:$36 sps:$4 sm:$0xff]  }
 0x1a0   :  { %4111 = vmatprep.subr.bf16.mxu0 %v7095_v47  ;;  %4275 = vmatprep.subr.bf16.mxu1 %v7098_v49  ;;  %v7179_v47 = vld [vmem:[#allocation2 + $0x914] ss:$36 sps:$4 sm:$0xff]   ;;  %v7182_v49 = vld [vmem:[#allocation2 + $0x91c] ss:$36 sps:$4 sm:$0xff]  }
 0x1a3   :  { %4112 = vmatpush1.bf16.msra.mxu0 %v7093_v50  ;;  %4276 = vmatpush1.bf16.msra.mxu1 %v7096_v51  ;;  %v7177_v50 = vld [vmem:[#allocation2 + $0x910] ss:$36 sps:$4 sm:$0xff]   ;;  %v7180_v51 = vld [vmem:[#allocation2 + $0x918] ss:$36 sps:$4 sm:$0xff]  }
 0x1a4   :  { %4113 = vmatprep.subr.bf16.mxu0 %v7101_v52  ;;  %4277 = vmatprep.subr.bf16.mxu1 %v7104_v53  ;;  %v7185_v52 = vld [vmem:[#allocation2 + $0x95c] ss:$36 sps:$4 sm:$0xff]   ;;  %v7188_v53 = vld [vmem:[#allocation2 + $0x964] ss:$36 sps:$4 sm:$0xff]  }
 0x1a7   :  { %4114 = vmatpush1.bf16.msra.mxu0 %v7099_v54  ;;  %4278 = vmatpush1.bf16.msra.mxu1 %v7102_v55  ;;  %v7183_v54 = vld [vmem:[#allocation2 + $0x958] ss:$36 sps:$4 sm:$0xff]   ;;  %v7186_v55 = vld [vmem:[#allocation2 + $0x960] ss:$36 sps:$4 sm:$0xff]  }
 0x1a8   :  { %4115 = vmatprep.subr.bf16.mxu0 %v7107_v56  ;;  %4279 = vmatprep.subr.bf16.mxu1 %v7110_v57  ;;  %v7191_v56 = vld [vmem:[#allocation2 + $0x9a4] ss:$36 sps:$4 sm:$0xff]   ;;  %v7194_v57 = vld [vmem:[#allocation2 + $0x9ac] ss:$36 sps:$4 sm:$0xff]  }
 0x1ab   :  { %4116 = vmatpush1.bf16.msra.mxu0 %v7105_v58  ;;  %4280 = vmatpush1.bf16.msra.mxu1 %v7108_v59  ;;  %v7189_v58 = vld [vmem:[#allocation2 + $0x9a0] ss:$36 sps:$4 sm:$0xff]   ;;  %v7192_v59 = vld [vmem:[#allocation2 + $0x9a8] ss:$36 sps:$4 sm:$0xff]  }
 0x1ac   :  { %4117 = vmatprep.subr.bf16.mxu0 %v7113_v60  ;;  %4281 = vmatprep.subr.bf16.mxu1 %v7116_v61  ;;  %v7197_v60 = vld [vmem:[#allocation2 + $0x9ec] ss:$36 sps:$4 sm:$0xff]   ;;  %v7200_v61 = vld [vmem:[#allocation2 + $0x9f4] ss:$36 sps:$4 sm:$0xff]  }
 0x1af   :  { %4118 = vmatpush1.bf16.msra.mxu0 %v7111_v62  ;;  %4282 = vmatpush1.bf16.msra.mxu1 %v7114_v63  ;;  %v7195_v62 = vld [vmem:[#allocation2 + $0x9e8] ss:$36 sps:$4 sm:$0xff]   ;;  %v7198_v63 = vld [vmem:[#allocation2 + $0x9f0] ss:$36 sps:$4 sm:$0xff]  }
 0x1b0   :  { %4119 = vmatprep.subr.bf16.mxu0 %v7119_v0  ;;  %4283 = vmatprep.subr.bf16.mxu1 %v7122_v1  ;;  %v7203_v0 = vld [vmem:[#allocation2 + $0xa34] ss:$36 sps:$4 sm:$0xff]   ;;  %v7206_v1 = vld [vmem:[#allocation2 + $0xa3c] ss:$36 sps:$4 sm:$0xff]  }
 0x1b3   :  { %4120 = vmatpush1.bf16.msra.mxu0 %v7117_v2  ;;  %4284 = vmatpush1.bf16.msra.mxu1 %v7120_v3  ;;  %v7201_v2 = vld [vmem:[#allocation2 + $0xa30] ss:$36 sps:$4 sm:$0xff]   ;;  %v7204_v3 = vld [vmem:[#allocation2 + $0xa38] ss:$36 sps:$4 sm:$0xff]  }
 0x1b4   :  { %4121 = vmatprep.subr.bf16.mxu0 %v7125_v4  ;;  %4285 = vmatprep.subr.bf16.mxu1 %v7128_v6  ;;  %v7209_v4 = vld [vmem:[#allocation2 + $0xa7c] ss:$36 sps:$4 sm:$0xff]   ;;  %v7212_v6 = vld [vmem:[#allocation2 + $0xa84] ss:$36 sps:$4 sm:$0xff]  }
 0x1b7   :  { %4122 = vmatpush1.bf16.msra.mxu0 %v7123_v7  ;;  %4286 = vmatpush1.bf16.msra.mxu1 %v7126_v8  ;;  %v7207_v7 = vld [vmem:[#allocation2 + $0xa78] ss:$36 sps:$4 sm:$0xff]   ;;  %v7210_v8 = vld [vmem:[#allocation2 + $0xa80] ss:$36 sps:$4 sm:$0xff]  }
 0x1b8   :  { %4123 = vmatprep.subr.bf16.mxu0 %v7131_v9  ;;  %4287 = vmatprep.subr.bf16.mxu1 %v7134_v10  ;;  %v7215_v9 = vld [vmem:[#allocation2 + $0xac4] ss:$36 sps:$4 sm:$0xff]   ;;  %v7218_v10 = vld [vmem:[#allocation2 + $0xacc] ss:$36 sps:$4 sm:$0xff]  }
 0x1bb   :  { %4124 = vmatpush1.bf16.msra.mxu0 %v7129_v11  ;;  %4288 = vmatpush1.bf16.msra.mxu1 %v7132_v12  ;;  %v7213_v11 = vld [vmem:[#allocation2 + $0xac0] ss:$36 sps:$4 sm:$0xff]   ;;  %v7216_v12 = vld [vmem:[#allocation2 + $0xac8] ss:$36 sps:$4 sm:$0xff]  }
 0x1bc   :  { %4125 = vmatprep.subr.bf16.mxu0 %v7137_v14  ;;  %4289 = vmatprep.subr.bf16.mxu1 %v7140_v15  ;;  %v7221_v14 = vld [vmem:[#allocation2 + $0xb0c] ss:$36 sps:$4 sm:$0xff]   ;;  %v7224_v15 = vld [vmem:[#allocation2 + $0xb14] ss:$36 sps:$4 sm:$0xff]  }
 0x1bf   :  { %4126 = vmatpush1.bf16.msra.mxu0 %v7135_v16  ;;  %4290 = vmatpush1.bf16.msra.mxu1 %v7138_v18  ;;  %v7219_v16 = vld [vmem:[#allocation2 + $0xb08] ss:$36 sps:$4 sm:$0xff]   ;;  %v7222_v18 = vld [vmem:[#allocation2 + $0xb10] ss:$36 sps:$4 sm:$0xff]  }
 0x1c0   :  { %4127 = vmatprep.subr.bf16.mxu0 %v7143_v19  ;;  %4291 = vmatprep.subr.bf16.mxu1 %v7146_v20  ;;  %v7227_v19 = vld [vmem:[#allocation2 + $0xb54] ss:$36 sps:$4 sm:$0xff]   ;;  %v7230_v20 = vld [vmem:[#allocation2 + $0xb5c] ss:$36 sps:$4 sm:$0xff]  }
 0x1c3   :  { %4128 = vmatpush1.bf16.msra.mxu0 %v7141_v21  ;;  %4292 = vmatpush1.bf16.msra.mxu1 %v7144_v23  ;;  %v7225_v21 = vld [vmem:[#allocation2 + $0xb50] ss:$36 sps:$4 sm:$0xff]   ;;  %v7228_v23 = vld [vmem:[#allocation2 + $0xb58] ss:$36 sps:$4 sm:$0xff]  }
 0x1c4   :  { %4129 = vmatprep.subr.bf16.mxu0 %v7149_v24  ;;  %4293 = vmatprep.subr.bf16.mxu1 %v7152_v25  ;;  %v7233_v24 = vld [vmem:[#allocation2 + $0xb9c] ss:$36 sps:$4 sm:$0xff]   ;;  %v7236_v25 = vld [vmem:[#allocation2 + $0xba4] ss:$36 sps:$4 sm:$0xff]  }
 0x1c7   :  { %4130 = vmatpush1.bf16.msra.mxu0 %v7147_v27  ;;  %4294 = vmatpush1.bf16.msra.mxu1 %v7150_v28  ;;  %v7231_v27 = vld [vmem:[#allocation2 + $0xb98] ss:$36 sps:$4 sm:$0xff]   ;;  %v7234_v28 = vld [vmem:[#allocation2 + $0xba0] ss:$36 sps:$4 sm:$0xff]  }
 0x1c8   :  { %4131 = vmatprep.subr.bf16.mxu0 %v7155_v29  ;;  %4295 = vmatprep.subr.bf16.mxu1 %v7158_v30  ;;  %v7239_v29 = vld [vmem:[#allocation2 + $0xbe4] ss:$36 sps:$4 sm:$0xff]   ;;  %v7242_v30 = vld [vmem:[#allocation2 + $0xbec] ss:$36 sps:$4 sm:$0xff]  }
 0x1cb   :  { %4132 = vmatpush1.bf16.msra.mxu0 %v7153_v33  ;;  %4296 = vmatpush1.bf16.msra.mxu1 %v7156_v34  ;;  %v7237_v33 = vld [vmem:[#allocation2 + $0xbe0] ss:$36 sps:$4 sm:$0xff]   ;;  %v7240_v34 = vld [vmem:[#allocation2 + $0xbe8] ss:$36 sps:$4 sm:$0xff]  }
 0x1cc   :  { %4133 = vmatprep.subr.bf16.mxu0 %v7161_v35  ;;  %4297 = vmatprep.subr.bf16.mxu1 %v7164_v36  ;;  %v7245_v35 = vld [vmem:[#allocation2 + $0xc2c] ss:$36 sps:$4 sm:$0xff]   ;;  %v7248_v36 = vld [vmem:[#allocation2 + $0xc34] ss:$36 sps:$4 sm:$0xff]  }
 0x1cf   :  { %4134 = vmatpush1.bf16.msra.mxu0 %v7159_v37  ;;  %4298 = vmatpush1.bf16.msra.mxu1 %v7162_v38  ;;  %v7243_v37 = vld [vmem:[#allocation2 + $0xc28] ss:$36 sps:$4 sm:$0xff]   ;;  %v7246_v38 = vld [vmem:[#allocation2 + $0xc30] ss:$36 sps:$4 sm:$0xff]  }
 0x1d0   :  { %4135 = vmatprep.subr.bf16.mxu0 %v7167_v39  ;;  %4299 = vmatprep.subr.bf16.mxu1 %v7170_v40  ;;  %v7251_v39 = vld [vmem:[#allocation2 + $0xc74] ss:$36 sps:$4 sm:$0xff]   ;;  %v7254_v40 = vld [vmem:[#allocation2 + $0xc7c] ss:$36 sps:$4 sm:$0xff]  }
 0x1d3   :  { %4136 = vmatpush1.bf16.msra.mxu0 %v7165_v41  ;;  %4300 = vmatpush1.bf16.msra.mxu1 %v7168_v42  ;;  %v7249_v41 = vld [vmem:[#allocation2 + $0xc70] ss:$36 sps:$4 sm:$0xff]   ;;  %v7252_v42 = vld [vmem:[#allocation2 + $0xc78] ss:$36 sps:$4 sm:$0xff]  }
 0x1d4   :  { %4137 = vmatprep.subr.bf16.mxu0 %v7173_v43  ;;  %4301 = vmatprep.subr.bf16.mxu1 %v7176_v44  ;;  %v7257_v43 = vld [vmem:[#allocation2 + $0xcbc] ss:$36 sps:$4 sm:$0xff]   ;;  %v7260_v44 = vld [vmem:[#allocation2 + $0xcc4] ss:$36 sps:$4 sm:$0xff]  }
 0x1d7   :  { %4138 = vmatpush1.bf16.msra.mxu0 %v7171_v45  ;;  %4302 = vmatpush1.bf16.msra.mxu1 %v7174_v46  ;;  %v7255_v45 = vld [vmem:[#allocation2 + $0xcb8] ss:$36 sps:$4 sm:$0xff]   ;;  %v7258_v46 = vld [vmem:[#allocation2 + $0xcc0] ss:$36 sps:$4 sm:$0xff]  }
 0x1d8   :  { %4148 = vmatprep.subr.bf16.mxu0 %v7179_v47  ;;  %4312 = vmatprep.subr.bf16.mxu1 %v7182_v49  ;;  %v7263_v47 = vld [vmem:[#allocation2 + $0xd04] ss:$36 sps:$4 sm:$0xff]   ;;  %v7266_v49 = vld [vmem:[#allocation2 + $0xd0c] ss:$36 sps:$4 sm:$0xff]  }
 0x1da   :  { %4140 = vmatmul.mubr.bf16.vlgmr.msra.gmra.mrb[4].mxu0 %v7783_v13  ;;  %4304 = vmatmul.mubr.bf16.vlgmr.msra.gmra.mrb[4].mxu1 %v7783_v13 }
 0x1db   :  { %4149 = vmatpush1.bf16.msra.mxu0 %v7177_v50  ;;  %4313 = vmatpush1.bf16.msra.mxu1 %v7180_v51  ;;  %v7261_v50 = vld [vmem:[#allocation2 + $0xd00] ss:$36 sps:$4 sm:$0xff]   ;;  %v7264_v51 = vld [vmem:[#allocation2 + $0xd08] ss:$36 sps:$4 sm:$0xff]  }
 0x1dc   :  { %4150 = vmatprep.subr.bf16.mxu0 %v7185_v52  ;;  %4314 = vmatprep.subr.bf16.mxu1 %v7188_v53  ;;  %v7269_v52 = vld [vmem:[#allocation2 + $0xd4c] ss:$36 sps:$4 sm:$0xff]   ;;  %v7272_v53 = vld [vmem:[#allocation2 + $0xd54] ss:$36 sps:$4 sm:$0xff]  }
 0x1dd   :  { %4180 = vmatprep.mubr.bf16.mxu0 %v7788_v17  ;;  %4344 = vmatprep.mubr.bf16.mxu1 %v7788_v17 }
 0x1df   :  { %4151 = vmatpush1.bf16.msra.mxu0 %v7183_v54  ;;  %4315 = vmatpush1.bf16.msra.mxu1 %v7186_v55  ;;  %v7267_v54 = vld [vmem:[#allocation2 + $0xd48] ss:$36 sps:$4 sm:$0xff]   ;;  %v7270_v55 = vld [vmem:[#allocation2 + $0xd50] ss:$36 sps:$4 sm:$0xff]  }
 0x1e0   :  { %4152 = vmatprep.subr.bf16.mxu0 %v7191_v56  ;;  %4316 = vmatprep.subr.bf16.mxu1 %v7194_v57  ;;  %v7275_v56 = vld [vmem:[#allocation2 + $0xd94] ss:$36 sps:$4 sm:$0xff]   ;;  %v7278_v57 = vld [vmem:[#allocation2 + $0xd9c] ss:$36 sps:$4 sm:$0xff]  }
 0x1e3   :  { %4153 = vmatpush1.bf16.msra.mxu0 %v7189_v58  ;;  %4317 = vmatpush1.bf16.msra.mxu1 %v7192_v59  ;;  %v7273_v58 = vld [vmem:[#allocation2 + $0xd90] ss:$36 sps:$4 sm:$0xff]   ;;  %v7276_v59 = vld [vmem:[#allocation2 + $0xd98] ss:$36 sps:$4 sm:$0xff]  }
 0x1e4   :  { %4154 = vmatprep.subr.bf16.mxu0 %v7197_v60  ;;  %4318 = vmatprep.subr.bf16.mxu1 %v7200_v61  ;;  %v7281_v60 = vld [vmem:[#allocation2 + $0xddc] ss:$36 sps:$4 sm:$0xff]   ;;  %v7284_v61 = vld [vmem:[#allocation2 + $0xde4] ss:$36 sps:$4 sm:$0xff]  }
 0x1e7   :  { %4155 = vmatpush1.bf16.msra.mxu0 %v7195_v62  ;;  %4319 = vmatpush1.bf16.msra.mxu1 %v7198_v63  ;;  %v7279_v62 = vld [vmem:[#allocation2 + $0xdd8] ss:$36 sps:$4 sm:$0xff]   ;;  %v7282_v63 = vld [vmem:[#allocation2 + $0xde0] ss:$36 sps:$4 sm:$0xff]  }
 0x1e8   :  { %4156 = vmatprep.subr.bf16.mxu0 %v7203_v0  ;;  %4320 = vmatprep.subr.bf16.mxu1 %v7206_v1  ;;  %v7287_v0 = vld [vmem:[#allocation2 + $0xe24] ss:$36 sps:$4 sm:$0xff]   ;;  %v7290_v1 = vld [vmem:[#allocation2 + $0xe2c] ss:$36 sps:$4 sm:$0xff]  }
 0x1eb   :  { %4157 = vmatpush1.bf16.msra.mxu0 %v7201_v2  ;;  %4321 = vmatpush1.bf16.msra.mxu1 %v7204_v3  ;;  %v7285_v2 = vld [vmem:[#allocation2 + $0xe20] ss:$36 sps:$4 sm:$0xff]   ;;  %v7288_v3 = vld [vmem:[#allocation2 + $0xe28] ss:$36 sps:$4 sm:$0xff]  }
 0x1ec   :  { %4158 = vmatprep.subr.bf16.mxu0 %v7209_v4  ;;  %4322 = vmatprep.subr.bf16.mxu1 %v7212_v6  ;;  %v7293_v4 = vld [vmem:[#allocation2 + $0xe6c] ss:$36 sps:$4 sm:$0xff]   ;;  %v7296_v6 = vld [vmem:[#allocation2 + $0xe74] ss:$36 sps:$4 sm:$0xff]  }
 0x1ef   :  { %4159 = vmatpush1.bf16.msra.mxu0 %v7207_v7  ;;  %4323 = vmatpush1.bf16.msra.mxu1 %v7210_v8  ;;  %v7291_v7 = vld [vmem:[#allocation2 + $0xe68] ss:$36 sps:$4 sm:$0xff]   ;;  %v7294_v8 = vld [vmem:[#allocation2 + $0xe70] ss:$36 sps:$4 sm:$0xff]  }
 0x1f0   :  { %4160 = vmatprep.subr.bf16.mxu0 %v7215_v9  ;;  %4324 = vmatprep.subr.bf16.mxu1 %v7218_v10  ;;  %v7299_v9 = vld [vmem:[#allocation2 + $0xeb4] ss:$36 sps:$4 sm:$0xff]   ;;  %v7302_v10 = vld [vmem:[#allocation2 + $0xebc] ss:$36 sps:$4 sm:$0xff]  }
 0x1f3   :  { %4161 = vmatpush1.bf16.msra.mxu0 %v7213_v11  ;;  %4325 = vmatpush1.bf16.msra.mxu1 %v7216_v12  ;;  %v7297_v11 = vld [vmem:[#allocation2 + $0xeb0] ss:$36 sps:$4 sm:$0xff]   ;;  %v7300_v12 = vld [vmem:[#allocation2 + $0xeb8] ss:$36 sps:$4 sm:$0xff]  }
 0x1f4   :  { %4162 = vmatprep.subr.bf16.mxu0 %v7221_v14  ;;  %4326 = vmatprep.subr.bf16.mxu1 %v7224_v15  ;;  %v7305_v14 = vld [vmem:[#allocation2 + $0xefc] ss:$36 sps:$4 sm:$0xff]   ;;  %v7308_v15 = vld [vmem:[#allocation2 + $0xf04] ss:$36 sps:$4 sm:$0xff]  }
 0x1f7   :  { %4163 = vmatpush1.bf16.msra.mxu0 %v7219_v16  ;;  %4327 = vmatpush1.bf16.msra.mxu1 %v7222_v18  ;;  %v7303_v16 = vld [vmem:[#allocation2 + $0xef8] ss:$36 sps:$4 sm:$0xff]   ;;  %v7306_v18 = vld [vmem:[#allocation2 + $0xf00] ss:$36 sps:$4 sm:$0xff]  }
 0x1f8   :  { %4164 = vmatprep.subr.bf16.mxu0 %v7227_v19  ;;  %4328 = vmatprep.subr.bf16.mxu1 %v7230_v20  ;;  %v7311_v19 = vld [vmem:[#allocation2 + $0xf44] ss:$36 sps:$4 sm:$0xff]   ;;  %v7314_v20 = vld [vmem:[#allocation2 + $0xf4c] ss:$36 sps:$4 sm:$0xff]  }
 0x1fb   :  { %4165 = vmatpush1.bf16.msra.mxu0 %v7225_v21  ;;  %4329 = vmatpush1.bf16.msra.mxu1 %v7228_v23 }
 0x1fc   :  { %4166 = vmatprep.subr.bf16.mxu0 %v7233_v24  ;;  %4330 = vmatprep.subr.bf16.mxu1 %v7236_v25  ;;  %v7309_v24 = vld [vmem:[#allocation2 + $0xf40] ss:$36 sps:$4 sm:$0xff]  }
 0x1ff   :  { %4167 = vmatpush1.bf16.msra.mxu0 %v7231_v27  ;;  %4331 = vmatpush1.bf16.msra.mxu1 %v7234_v28  ;;  %v7312_v28 = vld [vmem:[#allocation2 + $0xf48] ss:$36 sps:$4 sm:$0xff]  }
 0x200   :  { %4168 = vmatprep.subr.bf16.mxu0 %v7239_v29  ;;  %4332 = vmatprep.subr.bf16.mxu1 %v7242_v30 }
 0x203   :  { %4169 = vmatpush1.bf16.msra.mxu0 %v7237_v33  ;;  %4333 = vmatpush1.bf16.msra.mxu1 %v7240_v34 }
 0x204   :  { %4170 = vmatprep.subr.bf16.mxu0 %v7245_v35  ;;  %4334 = vmatprep.subr.bf16.mxu1 %v7248_v36  ;;  %v7317_v35 = vld [vmem:[#allocation2 + $0xf8c] ss:$36 sps:$4 sm:$0xff]   ;;  %v7320_v36 = vld [vmem:[#allocation2 + $0xf94] ss:$36 sps:$4 sm:$0xff]  }
 0x207   :  { %4171 = vmatpush1.bf16.msra.mxu0 %v7243_v37  ;;  %4335 = vmatpush1.bf16.msra.mxu1 %v7246_v38  ;;  %v7315_v37 = vld [vmem:[#allocation2 + $0xf88] ss:$36 sps:$4 sm:$0xff]   ;;  %v7318_v38 = vld [vmem:[#allocation2 + $0xf90] ss:$36 sps:$4 sm:$0xff]  }
 0x208   :  { %4172 = vmatprep.subr.bf16.mxu0 %v7251_v39  ;;  %4336 = vmatprep.subr.bf16.mxu1 %v7254_v40  ;;  %v7323_v39 = vld [vmem:[#allocation2 + $0xfd4] ss:$36 sps:$4 sm:$0xff]   ;;  %v7326_v40 = vld [vmem:[#allocation2 + $0xfdc] ss:$36 sps:$4 sm:$0xff]  }
 0x20b   :  { %4173 = vmatpush1.bf16.msra.mxu0 %v7249_v41  ;;  %4337 = vmatpush1.bf16.msra.mxu1 %v7252_v42  ;;  %v7321_v41 = vld [vmem:[#allocation2 + $0xfd0] ss:$36 sps:$4 sm:$0xff]   ;;  %v7324_v42 = vld [vmem:[#allocation2 + $0xfd8] ss:$36 sps:$4 sm:$0xff]  }
 0x20c   :  { %4174 = vmatprep.subr.bf16.mxu0 %v7257_v43  ;;  %4338 = vmatprep.subr.bf16.mxu1 %v7260_v44  ;;  %v7329_v43 = vld [vmem:[#allocation2 + $0x101c] ss:$36 sps:$4 sm:$0xff]   ;;  %v7332_v44 = vld [vmem:[#allocation2 + $0x1024] ss:$36 sps:$4 sm:$0xff]  }
 0x20f   :  { %4175 = vmatpush1.bf16.msra.mxu0 %v7255_v45  ;;  %4339 = vmatpush1.bf16.msra.mxu1 %v7258_v46  ;;  %v7327_v45 = vld [vmem:[#allocation2 + $0x1018] ss:$36 sps:$4 sm:$0xff]   ;;  %v7330_v46 = vld [vmem:[#allocation2 + $0x1020] ss:$36 sps:$4 sm:$0xff]  }
 0x210   :  { %4176 = vmatprep.subr.bf16.mxu0 %v7263_v47  ;;  %4340 = vmatprep.subr.bf16.mxu1 %v7266_v49  ;;  %v7840_v47 = vld [vmem:[%s7919_s1] sm:$0xff] }
 0x211   :  { %v7335_v49 = vld [vmem:[#allocation2 + $0x1064] ss:$36 sps:$4 sm:$0xff]  }
 0x213   :  { %4177 = vmatpush1.bf16.msra.mxu0 %v7261_v50  ;;  %4341 = vmatpush1.bf16.msra.mxu1 %v7264_v51  ;;  %v7338_v50 = vld [vmem:[#allocation2 + $0x106c] ss:$36 sps:$4 sm:$0xff]   ;;  %v7646_v51 = vmov 0  }
 0x214   :  { %4178 = vmatprep.subr.bf16.mxu0 %v7269_v52  ;;  %4342 = vmatprep.subr.bf16.mxu1 %v7272_v53  ;;  %v7333_v52 = vld [vmem:[#allocation2 + $0x1060] ss:$36 sps:$4 sm:$0xff]   ;;  %v7336_v53 = vld [vmem:[#allocation2 + $0x1068] ss:$36 sps:$4 sm:$0xff]  }
 0x215   :  { %6599 = vset.pattern.permute.xlu0 %v7646_v51  ;;  %v7399_v51 = vld [vmem:[#allocation2 + $0x218] ss:$36 sps:$4 sm:$0xff]  }
 0x216   :  { %4719 = vperm.xlu0 %6599, %v7840_v47  }
 0x217   :  { %4179 = vmatpush1.bf16.msra.mxu0 %v7267_v54  ;;  %4343 = vmatpush1.bf16.msra.mxu1 %v7270_v55  ;;  %v7341_v54 = vld [vmem:[#allocation2 + $0x10ac] ss:$36 sps:$4 sm:$0xff]   ;;  %v7344_v55 = vld [vmem:[#allocation2 + $0x10b4] ss:$36 sps:$4 sm:$0xff]  }
 0x218   :  { %4189 = vmatprep.subr.bf16.mxu0 %v7275_v56  ;;  %4353 = vmatprep.subr.bf16.mxu1 %v7278_v57  ;;  %v7339_v56 = vld [vmem:[#allocation2 + $0x10a8] ss:$36 sps:$4 sm:$0xff]   ;;  %v7342_v57 = vld [vmem:[#allocation2 + $0x10b0] ss:$36 sps:$4 sm:$0xff]  }
 0x21a   :  { %4181 = vmatmul.mubr.bf16.vlgmr.msra.gmra.mrb[4].mxu0 %v7797_v22  ;;  %4345 = vmatmul.mubr.bf16.vlgmr.msra.gmra.mrb[4].mxu1 %v7797_v22 }
 0x21b   :  { %4190 = vmatpush1.bf16.msra.mxu0 %v7273_v58  ;;  %4354 = vmatpush1.bf16.msra.mxu1 %v7276_v59  ;;  %v7347_v58 = vld [vmem:[#allocation2 + $0x10f4] ss:$36 sps:$4 sm:$0xff]   ;;  %v7350_v59 = vld [vmem:[#allocation2 + $0x10fc] ss:$36 sps:$4 sm:$0xff]  }
 0x21c   :  { %4191 = vmatprep.subr.bf16.mxu0 %v7281_v60  ;;  %4355 = vmatprep.subr.bf16.mxu1 %v7284_v61  ;;  %v7345_v60 = vld [vmem:[#allocation2 + $0x10f0] ss:$36 sps:$4 sm:$0xff]   ;;  %v7348_v61 = vld [vmem:[#allocation2 + $0x10f8] ss:$36 sps:$4 sm:$0xff]  }
 0x21d   :  { %4221 = vmatprep.mubr.bf16.mxu0 %v7802_v26  ;;  %4385 = vmatprep.mubr.bf16.mxu1 %v7802_v26 }
 0x21f   :  { %4192 = vmatpush1.bf16.msra.mxu0 %v7279_v62  ;;  %4356 = vmatpush1.bf16.msra.mxu1 %v7282_v63  ;;  %v7353_v62 = vld [vmem:[#allocation2 + $0x113c] ss:$36 sps:$4 sm:$0xff]   ;;  %v7356_v63 = vld [vmem:[#allocation2 + $0x1144] ss:$36 sps:$4 sm:$0xff]  }
 0x220   :  { %4193 = vmatprep.subr.bf16.mxu0 %v7287_v0  ;;  %4357 = vmatprep.subr.bf16.mxu1 %v7290_v1  ;;  %v7351_v0 = vld [vmem:[#allocation2 + $0x1138] ss:$36 sps:$4 sm:$0xff]   ;;  %v7354_v1 = vld [vmem:[#allocation2 + $0x1140] ss:$36 sps:$4 sm:$0xff]  }
 0x223   :  { %4194 = vmatpush1.bf16.msra.mxu0 %v7285_v2  ;;  %4358 = vmatpush1.bf16.msra.mxu1 %v7288_v3  ;;  %v7359_v2 = vld [vmem:[#allocation2 + $0x1184] ss:$36 sps:$4 sm:$0xff]   ;;  %v7362_v3 = vld [vmem:[#allocation2 + $0x118c] ss:$36 sps:$4 sm:$0xff]  }
 0x224   :  { %4195 = vmatprep.subr.bf16.mxu0 %v7293_v4  ;;  %4359 = vmatprep.subr.bf16.mxu1 %v7296_v6  ;;  %v7357_v4 = vld [vmem:[#allocation2 + $0x1180] ss:$36 sps:$4 sm:$0xff]   ;;  %v7360_v6 = vld [vmem:[#allocation2 + $0x1188] ss:$36 sps:$4 sm:$0xff]  }
 0x227   :  { %4196 = vmatpush1.bf16.msra.mxu0 %v7291_v7  ;;  %4360 = vmatpush1.bf16.msra.mxu1 %v7294_v8  ;;  %v7365_v7 = vld [vmem:[#allocation2 + $0x11cc] ss:$36 sps:$4 sm:$0xff]   ;;  %v7368_v8 = vld [vmem:[#allocation2 + $0x11d4] ss:$36 sps:$4 sm:$0xff]  }
 0x228   :  { %4197 = vmatprep.subr.bf16.mxu0 %v7299_v9  ;;  %4361 = vmatprep.subr.bf16.mxu1 %v7302_v10  ;;  %v7363_v9 = vld [vmem:[#allocation2 + $0x11c8] ss:$36 sps:$4 sm:$0xff]   ;;  %v7366_v10 = vld [vmem:[#allocation2 + $0x11d0] ss:$36 sps:$4 sm:$0xff]  }
 0x22b   :  { %4198 = vmatpush1.bf16.msra.mxu0 %v7297_v11  ;;  %4362 = vmatpush1.bf16.msra.mxu1 %v7300_v12  ;;  %v7369_v11 = vld [vmem:[#allocation2 + $0x260] ss:$36 sps:$4 sm:$0xff]  }
 0x22c   :  { %4199 = vmatprep.subr.bf16.mxu0 %v7305_v14  ;;  %4363 = vmatprep.subr.bf16.mxu1 %v7308_v15  ;;  %v7370_v12 = vld [vmem:[#allocation2 + $0x6e0] ss:$36 sps:$4 sm:$0xff]  }
 0x22d   :  { %v7829_v21 = vpop.f32.mrb[0].mxu0  ;;  %v7831_v23 = vpop.f32.mrb[0].mxu1  ;;  %v7371_v14 = vld [vmem:[#allocation2 + $0x20] ss:$36 sps:$4 sm:$0xff]  }
 0x22e   :  { %v7833_v25 = vpop.f32.mrb[1].mxu0  ;;  %v7835_v27 = vpop.f32.mrb[1].mxu1  ;;  %v7372_v15 = vld [vmem:[#allocation2 + $0x4a0] ss:$36 sps:$4 sm:$0xff]  }
 0x22f   :  { %v3899_v29 = vpop.f32.mrb[2].mxu0  ;;  %v4063_v30 = vpop.f32.mrb[2].mxu1  ;;  %4200 = vmatpush1.bf16.msra.mxu0 %v7303_v16  ;;  %4364 = vmatpush1.bf16.msra.mxu1 %v7306_v18  ;;  %v7373_v16 = vld [vmem:[#allocation2 + $0x2a8] ss:$36 sps:$4 sm:$0xff]  }
 0x230   :  { %v3900_v33 = vpop.f32.mrb[3].mxu0  ;;  %v4064_v34 = vpop.f32.mrb[3].mxu1  ;;  %4201 = vmatprep.subr.bf16.mxu0 %v7311_v19  ;;  %4365 = vmatprep.subr.bf16.mxu1 %v7314_v20  ;;  %v7374_v18 = vld [vmem:[#allocation2 + $0x728] ss:$36 sps:$4 sm:$0xff]   ;;  %v7379_v29 = vld [vmem:[#allocation2 + $0xb0] ss:$36 sps:$4 sm:$0xff]  }
 0x231   :  { %v7375_v19 = vld [vmem:[#allocation2 + $0x68] ss:$36 sps:$4 sm:$0xff]   ;;  %v7380_v30 = vld [vmem:[#allocation2 + $0x530] ss:$36 sps:$4 sm:$0xff]   ;;  %v7381_v33 = vld [vmem:[#allocation2 + $0x338] ss:$36 sps:$4 sm:$0xff]  }
 0x232   :  { %v7376_v20 = vld [vmem:[#allocation2 + $0x4e8] ss:$36 sps:$4 sm:$0xff]   ;;  %v7382_v34 = vld [vmem:[#allocation2 + $0x7b8] ss:$36 sps:$4 sm:$0xff]  }
 0x233   :  { %4202 = vmatpush1.bf16.msra.mxu0 %v7309_v24  ;;  %4366 = vmatpush1.bf16.msra.mxu1 %v7312_v28  ;;  %v7377_v24 = vld [vmem:[#allocation2 + $0x2f0] ss:$36 sps:$4 sm:$0xff]  }
 0x234   :  { %4203 = vmatprep.subr.bf16.mxu0 %v7317_v35  ;;  %4367 = vmatprep.subr.bf16.mxu1 %v7320_v36  ;;  %v7378_v28 = vld [vmem:[#allocation2 + $0x770] ss:$36 sps:$4 sm:$0xff]   ;;  %v7383_v35 = vld [vmem:[#allocation2 + $0xf8] ss:$36 sps:$4 sm:$0xff]  }
 0x235   :  { %v7384_v36 = vld [vmem:[#allocation2 + $0x578] ss:$36 sps:$4 sm:$0xff]  }
 0x237   :  { %4204 = vmatpush1.bf16.msra.mxu0 %v7315_v37  ;;  %4368 = vmatpush1.bf16.msra.mxu1 %v7318_v38  ;;  %v7385_v37 = vld [vmem:[#allocation2 + $0x380] ss:$36 sps:$4 sm:$0xff]  }
 0x238   :  { %4205 = vmatprep.subr.bf16.mxu0 %v7323_v39  ;;  %4369 = vmatprep.subr.bf16.mxu1 %v7326_v40  ;;  %v7386_v38 = vld [vmem:[#allocation2 + $0x800] ss:$36 sps:$4 sm:$0xff]   ;;  %v7389_v39 = vld [vmem:[#allocation2 + $0x3c8] ss:$36 sps:$4 sm:$0xff]  }
 0x239   :  { %v7390_v40 = vld [vmem:[#allocation2 + $0x848] ss:$36 sps:$4 sm:$0xff]  }
 0x23b   :  { %4206 = vmatpush1.bf16.msra.mxu0 %v7321_v41  ;;  %4370 = vmatpush1.bf16.msra.mxu1 %v7324_v42  ;;  %v7391_v41 = vld [vmem:[#allocation2 + $0x188] ss:$36 sps:$4 sm:$0xff]  }
 0x23c   :  { %4207 = vmatprep.subr.bf16.mxu0 %v7329_v43  ;;  %4371 = vmatprep.subr.bf16.mxu1 %v7332_v44  ;;  %v7392_v42 = vld [vmem:[#allocation2 + $0x608] ss:$36 sps:$4 sm:$0xff]   ;;  %v7393_v43 = vld [vmem:[#allocation2 + $0x410] ss:$36 sps:$4 sm:$0xff]  }
 0x23d   :  { %v7394_v44 = vld [vmem:[#allocation2 + $0x890] ss:$36 sps:$4 sm:$0xff]  }
 0x23f   :  { %4208 = vmatpush1.bf16.msra.mxu0 %v7327_v45  ;;  %4372 = vmatpush1.bf16.msra.mxu1 %v7330_v46  ;;  %v7395_v45 = vld [vmem:[#allocation2 + $0x1d0] ss:$36 sps:$4 sm:$0xff]  }
 0x240   :  { %4209 = vmatprep.subr.bf16.mxu0 %v7335_v49  ;;  %4373 = vmatprep.subr.bf16.mxu1 %v7338_v50  ;;  %v7396_v46 = vld [vmem:[#allocation2 + $0x650] ss:$36 sps:$4 sm:$0xff]   ;;  %v7397_v49 = vld [vmem:[#allocation2 + $0x458] ss:$36 sps:$4 sm:$0xff]  }
 0x241   :  { %v7398_v50 = vld [vmem:[#allocation2 + $0x8d8] ss:$36 sps:$4 sm:$0xff]  }
 0x243   :  { %4210 = vmatpush1.bf16.msra.mxu0 %v7333_v52  ;;  %4374 = vmatpush1.bf16.msra.mxu1 %v7336_v53  ;;  %v7400_v52 = vld [vmem:[#allocation2 + $0x698] ss:$36 sps:$4 sm:$0xff]   ;;  %v7401_v53 = vld [vmem:[#allocation2 + $0xb60] ss:$36 sps:$4 sm:$0xff]  }
 0x244   :  { %4211 = vmatprep.subr.bf16.mxu0 %v7341_v54  ;;  %4375 = vmatprep.subr.bf16.mxu1 %v7344_v55  ;;  %v7402_v54 = vld [vmem:[#allocation2 + $0xfe0] ss:$36 sps:$4 sm:$0xff]  }
 0x245   :  { %v7403_v55 = vld [vmem:[#allocation2 + $0x920] ss:$36 sps:$4 sm:$0xff]  }
 0x247   :  { %4212 = vmatpush1.bf16.msra.mxu0 %v7339_v56  ;;  %4376 = vmatpush1.bf16.msra.mxu1 %v7342_v57  ;;  %v7404_v56 = vld [vmem:[#allocation2 + $0xda0] ss:$36 sps:$4 sm:$0xff]   ;;  %v7405_v57 = vld [vmem:[#allocation2 + $0xba8] ss:$36 sps:$4 sm:$0xff]  }
 0x248   :  { %4213 = vmatprep.subr.bf16.mxu0 %v7347_v58  ;;  %4377 = vmatprep.subr.bf16.mxu1 %v7350_v59  ;;  %v7406_v58 = vld [vmem:[#allocation2 + $0x1028] ss:$36 sps:$4 sm:$0xff]  }
 0x249   :  { %v7407_v59 = vld [vmem:[#allocation2 + $0x968] ss:$36 sps:$4 sm:$0xff]  }
 0x24b   :  { %4214 = vmatpush1.bf16.msra.mxu0 %v7345_v60  ;;  %4378 = vmatpush1.bf16.msra.mxu1 %v7348_v61  ;;  %v7408_v60 = vld [vmem:[#allocation2 + $0xde8] ss:$36 sps:$4 sm:$0xff]   ;;  %v7409_v61 = vld [vmem:[#allocation2 + $0xbf0] ss:$36 sps:$4 sm:$0xff]  }
 0x24c   :  { %4215 = vmatprep.subr.bf16.mxu0 %v7353_v62  ;;  %4379 = vmatprep.subr.bf16.mxu1 %v7356_v63  ;;  %v7410_v62 = vld [vmem:[#allocation2 + $0x1070] ss:$36 sps:$4 sm:$0xff]  }
 0x24d   :  { %v7411_v63 = vld [vmem:[#allocation2 + $0x9b0] ss:$36 sps:$4 sm:$0xff]  }
 0x24f   :  { %4216 = vmatpush1.bf16.msra.mxu0 %v7351_v0  ;;  %4380 = vmatpush1.bf16.msra.mxu1 %v7354_v1  ;;  %v7412_v0 = vld [vmem:[#allocation2 + $0xe30] ss:$36 sps:$4 sm:$0xff]   ;;  %v758_v1 = vlaneseq }
 0x250   :  { %4217 = vmatprep.subr.bf16.mxu0 %v7359_v2  ;;  %4381 = vmatprep.subr.bf16.mxu1 %v7362_v3  ;;  %v7415_v2 = vld [vmem:[#allocation2 + $0x9f8] ss:$36 sps:$4 sm:$0xff]  }
 0x251   :  { %v7416_v3 = vld [vmem:[#allocation2 + $0xe78] ss:$36 sps:$4 sm:$0xff]  }
 0x253   :  { %4218 = vmatpush1.bf16.msra.mxu0 %v7357_v4  ;;  %4382 = vmatpush1.bf16.msra.mxu1 %v7360_v6  ;;  %v7417_v4 = vld [vmem:[#allocation2 + $0xc80] ss:$36 sps:$4 sm:$0xff]  }
 0x254   :  { %4219 = vmatprep.subr.bf16.mxu0 %v7365_v7  ;;  %4383 = vmatprep.subr.bf16.mxu1 %v7368_v8  ;;  %v7418_v6 = vld [vmem:[#allocation2 + $0x1100] ss:$36 sps:$4 sm:$0xff]   ;;  %v7421_v8 = vld [vmem:[#allocation2 + $0xcc8] ss:$36 sps:$4 sm:$0xff]  }
 0x255   :  { %v7420_v7 = vld [vmem:[#allocation2 + $0xec0] ss:$36 sps:$4 sm:$0xff]  }
 0x257   :  { %4220 = vmatpush1.bf16.msra.mxu0 %v7363_v9  ;;  %4384 = vmatpush1.bf16.msra.mxu1 %v7366_v10  ;;  %v7422_v9 = vld [vmem:[#allocation2 + $0x1148] ss:$36 sps:$4 sm:$0xff]  }
 0x258   :  { %6267 = vmatprep.subr.bf16.mxu0 %v7369_v11  ;;  %6289 = vmatprep.subr.bf16.mxu1 %v7370_v12  ;;  %v94_v11 = vld [vmem:[#allocation6 + $0x8] sm:$0xff]  ;;  %v96_v12 = vld [vmem:[#allocation6 + $0x18] sm:$0xff] }
 0x25a   :  { %4222 = vmatmul.mubr.bf16.vlgmr.msra.gmra.mrb[4].mxu0 %v7811_v31  ;;  %4386 = vmatmul.mubr.bf16.vlgmr.msra.gmra.mrb[4].mxu1 %v7811_v31 }
 0x25b   :  { %6268 = vmatpush3.bf16.msra.mxu0 %v7371_v14  ;;  %6290 = vmatpush3.bf16.msra.mxu1 %v7372_v15  ;;  %v7423_v14 = vld [vmem:[#allocation2 + $0xa88] ss:$36 sps:$4 sm:$0xff]  }
 0x25c   :  { %6269 = vmatprep.subr.bf16.mxu0 %v7373_v16  ;;  %6291 = vmatprep.subr.bf16.mxu1 %v7374_v18  ;;  %v7424_v15 = vld [vmem:[#allocation2 + $0xf08] ss:$36 sps:$4 sm:$0xff]   ;;  %v7425_v16 = vld [vmem:[#allocation2 + $0xd10] ss:$36 sps:$4 sm:$0xff]  }
 0x25d   :  { %4426 = vmatprep.mubr.bf16.mxu0 %v7762_v48  ;;  %4466 = vmatprep.mubr.bf16.mxu1 %v7776_v32  ;;  %v7387_v48 = vld [vmem:[#allocation2 + $0x140] ss:$36 sps:$4 sm:$0xff]   ;;  %v7426_v18 = vld [vmem:[#allocation2 + $0x1190] ss:$36 sps:$4 sm:$0xff]  }
 0x25e   :  { %v7388_v32 = vld [vmem:[#allocation2 + $0x5c0] ss:$36 sps:$4 sm:$0xff]  }
 0x25f   :  { %6270 = vmatpush3.bf16.msra.mxu0 %v7375_v19  ;;  %6292 = vmatpush3.bf16.msra.mxu1 %v7376_v20 }
 0x260   :  { %6271 = vmatprep.subr.bf16.mxu0 %v7377_v24  ;;  %6293 = vmatprep.subr.bf16.mxu1 %v7378_v28  ;;  %v7427_v24 = vld [vmem:[#allocation2 + $0xad0] ss:$36 sps:$4 sm:$0xff]  }
 0x261   :  { %v7428_v28 = vld [vmem:[#allocation2 + $0xf50] ss:$36 sps:$4 sm:$0xff]  }
 0x263   :  { %6272 = vmatpush3.bf16.msra.mxu0 %v7379_v29  ;;  %6294 = vmatpush3.bf16.msra.mxu1 %v7380_v30  ;;  %v7429_v29 = vld [vmem:[#allocation2 + $0xd58] ss:$36 sps:$4 sm:$0xff]  }
 0x264   :  { %6273 = vmatprep.subr.bf16.mxu0 %v7381_v33  ;;  %6295 = vmatprep.subr.bf16.mxu1 %v7382_v34  ;;  %v7430_v30 = vld [vmem:[#allocation2 + $0x11d8] ss:$36 sps:$4 sm:$0xff]  }
 0x267   :  { %6274 = vmatpush3.bf16.msra.mxu0 %v7383_v35  ;;  %6296 = vmatpush3.bf16.msra.mxu1 %v7384_v36  ;;  %v7431_v35 = vld [vmem:[#allocation2 + $0xb18] ss:$36 sps:$4 sm:$0xff]  }
 0x268   :  { %6275 = vmatprep.subr.bf16.mxu0 %v7385_v37  ;;  %6297 = vmatprep.subr.bf16.mxu1 %v7386_v38  ;;  %v7432_v36 = vld [vmem:[#allocation2 + $0xf98] ss:$36 sps:$4 sm:$0xff]   ;;  %v7433_v37 = vld [vmem:[#allocation4 + $0x40] sm:$0xff]  }
 0x269   :  { %v7434_v38 = vld [vmem:[#allocation4 + $0xc0] sm:$0xff]  }
 0x26b   :  { %6276 = vmatpush3.bf16.msra.mxu0 %v7387_v48  ;;  %6298 = vmatpush3.bf16.msra.mxu1 %v7388_v32 }
 0x26c   :  { %6277 = vmatprep.subr.bf16.mxu0 %v7389_v39  ;;  %6299 = vmatprep.subr.bf16.mxu1 %v7390_v40  ;;  %v7435_v39 = vld [vmem:[#allocation4] sm:$0xff]  }
 0x26d   :  { %v7436_v40 = vld [vmem:[#allocation4 + $0x80] sm:$0xff]  }
 0x26f   :  { %6278 = vmatpush3.bf16.msra.mxu0 %v7391_v41  ;;  %6300 = vmatpush3.bf16.msra.mxu1 %v7392_v42  ;;  %v7438_v42 = vld [vmem:[#allocation4 + $0xc8] sm:$0xff]  }
 0x270   :  { %6279 = vmatprep.subr.bf16.mxu0 %v7393_v43  ;;  %6301 = vmatprep.subr.bf16.mxu1 %v7394_v44  ;;  %v7439_v43 = vld [vmem:[#allocation4 + $0x8] sm:$0xff]  }
 0x271   :  { %v7440_v44 = vld [vmem:[#allocation4 + $0x88] sm:$0xff]  }
 0x273   :  { %6280 = vmatpush3.bf16.msra.mxu0 %v7395_v45  ;;  %6302 = vmatpush3.bf16.msra.mxu1 %v7396_v46  ;;  %v7441_v45 = vld [vmem:[#allocation4 + $0x50] sm:$0xff]  }
 0x274   :  { %6281 = vmatprep.subr.bf16.mxu0 %v7397_v49  ;;  %6303 = vmatprep.subr.bf16.mxu1 %v7398_v50  ;;  %v7442_v46 = vld [vmem:[#allocation4 + $0xd0] sm:$0xff]  }
 0x275   :  { %v7443_v49 = vld [vmem:[#allocation4 + $0x10] sm:$0xff]  }
 0x276   :  { %v7444_v50 = vld [vmem:[#allocation4 + $0x90] sm:$0xff]  }
 0x277   :  { %6282 = vmatpush3.bf16.msra.mxu0 %v7399_v51  ;;  %6304 = vmatpush3.bf16.msra.mxu1 %v7400_v52  ;;  %v7445_v51 = vld [vmem:[#allocation4 + $0x58] sm:$0xff]  }
 0x278   :  { %6311 = vmatprep.subr.bf16.mxu0 %v7401_v53  ;;  %6333 = vmatprep.subr.bf16.mxu1 %v7402_v54  ;;  %v7448_v52 = vld [vmem:[#allocation4 + $0x98] sm:$0xff]   ;;  %v7449_v53 = vld [vmem:[#allocation4 + $0x60] sm:$0xff]  }
 0x279   :  { %v7450_v54 = vld [vmem:[#allocation4 + $0xe0] sm:$0xff]  }
 0x27a   :  { %4427 = vmatmul.mubr.bf16.vlgmr.msra.gmra.mrb[8].mxu0 %v7769_v5  ;;  %4467 = vmatmul.mubr.bf16.vlgmr.msra.gmra.mrb[8].mxu1 %v7783_v13  ;;  %v7413_v5 = vld [vmem:[#allocation2 + $0xc38] ss:$36 sps:$4 sm:$0xff]  }
 0x27b   :  { %6312 = vmatpush3.bf16.msra.mxu0 %v7403_v55  ;;  %6334 = vmatpush3.bf16.msra.mxu1 %v7404_v56  ;;  %v7414_v13 = vld [vmem:[#allocation2 + $0x10b8] ss:$36 sps:$4 sm:$0xff]   ;;  %v7451_v55 = vld [vmem:[#allocation4 + $0x20] sm:$0xff]  }
 0x27c   :  { %6313 = vmatprep.subr.bf16.mxu0 %v7405_v57  ;;  %6335 = vmatprep.subr.bf16.mxu1 %v7406_v58  ;;  %v7452_v56 = vld [vmem:[#allocation4 + $0xa0] sm:$0xff]   ;;  %v7453_v57 = vld [vmem:[#allocation4 + $0x68] sm:$0xff]  }
 0x27d   :  { %4506 = vmatprep.mubr.bf16.mxu0 %v7788_v17  ;;  %4546 = vmatprep.mubr.bf16.mxu1 %v7802_v26  ;;  %v7851_v17 = vshrl.u32 %v758_v1, 7  ;;  %v7419_v26 = vld [vmem:[#allocation2 + $0xa40] ss:$36 sps:$4 sm:$0xff]   ;;  %v7459_v1 = vld [vmem:[#allocation4 + $0x30] sm:$0xff]  }
 0x27e   :  { %v7862_v58 = vld [vmem:[#allocation6] sm:$0xff] }
 0x27f   :  { %6314 = vmatpush3.bf16.msra.mxu0 %v7407_v59  ;;  %6336 = vmatpush3.bf16.msra.mxu1 %v7408_v60  ;;  %v7854_v10 = vsub.s32 0, %v7851_v17  ;;  %v7454_v59 = vld [vmem:[#allocation4 + $0xe8] sm:$0xff]   ;;  %v95_v60 = vld [vmem:[#allocation6 + $0x10] sm:$0xff] }
 0x280   :  { %6315 = vmatprep.subr.bf16.mxu0 %v7409_v61  ;;  %6337 = vmatprep.subr.bf16.mxu1 %v7410_v62  ;;  %v7455_v61 = vld [vmem:[#allocation4 + $0x28] sm:$0xff]  }
 0x281   :  { %v765_v19 = vrot.slane %v94_v11, %v7854_v10  ;;  %v773_v20 = vrot.slane %v96_v12, %v7854_v10  ;;  %v761_v62 = vrot.slane %v7862_v58, %v7854_v10  ;;  %v7465_v11 = vld [vmem:[#allocation4 + $0x140] sm:$0xff]  }
 0x283   :  { %6316 = vmatpush3.bf16.msra.mxu0 %v7411_v63  ;;  %6338 = vmatpush3.bf16.msra.mxu1 %v7412_v0  ;;  %v6531_v33 = vadd.f32 %v7833_v25, %v765_v19  ;;  %v6533_v34 = vadd.f32 %v7835_v27, %v773_v20  ;;  %v7437_v25 = vld [vmem:[#allocation4 + $0x48] sm:$0xff]   ;;  %v7457_v0 = vld [vmem:[#allocation4 + $0x70] sm:$0xff]  }
 0x284   :  { %6317 = vmatprep.subr.bf16.mxu0 %v7413_v5  ;;  %6339 = vmatprep.subr.bf16.mxu1 %v7414_v13  ;;  %v7456_v63 = vld [vmem:[#allocation4 + $0xa8] sm:$0xff]   ;;  %v769_v5 = vrot.slane %v95_v60, %v7854_v10  ;;  %v7458_v13 = vld [vmem:[#allocation4 + $0xf0] sm:$0xff]  }
 0x285   :  { %v4555_v48 = vmax.f32 %v6531_v33, 0.0  ;;  %v4557_v32 = vmax.f32 %v6533_v34, 0.0  ;;  %v7470_v19 = vld [vmem:[#allocation4 + $0x1c8] sm:$0xff]   ;;  %v7476_v33 = vld [vmem:[#allocation4 + $0x190] sm:$0xff]   ;;  %v7477_v34 = vld [vmem:[#allocation4 + $0x158] sm:$0xff]  }
 0x286   :  { %v7471_v20 = vld [vmem:[#allocation4 + $0x108] sm:$0xff]  }
 0x287   :  { %6318 = vmatpush3.bf16.msra.mxu0 %v7415_v2  ;;  %6340 = vmatpush3.bf16.msra.mxu1 %v7416_v3  ;;  %v4565_v41 = vpack.c.bf16 %v4555_v48, %v4555_v48  ;;  %v4567_v27 = vpack.c.bf16 %v4557_v32, %v4557_v32  ;;  %v6530_v2 = vadd.f32 %v7829_v21, %v761_v62  ;;  %v7460_v3 = vld [vmem:[#allocation4 + $0xb0] sm:$0xff]   ;;  %v7467_v21 = vld [vmem:[#allocation4 + $0x100] sm:$0xff]  }
 0x288   :  { %6319 = vmatprep.subr.bf16.mxu0 %v7417_v4  ;;  %6341 = vmatprep.subr.bf16.mxu1 %v7418_v6  ;;  %v7461_v4 = vld [vmem:[#allocation4 + $0x78] sm:$0xff]   ;;  %v6532_v6 = vadd.f32 %v7831_v23, %v769_v5  ;;  %v7482_v48 = vld [vmem:[#allocation4 + $0x1e0] sm:$0xff]  }
 0x289   :  { %v7483_v32 = vld [vmem:[#allocation4 + $0x120] sm:$0xff]  }
 0x28a   :  { %v4556_v12 = vmax.f32 %v6532_v6, 0.0 }
 0x28b   :  { %6320 = vmatpush3.bf16.msra.mxu0 %v7419_v26  ;;  %6342 = vmatpush3.bf16.msra.mxu1 %v7420_v7  ;;  %v7462_v26 = vld [vmem:[#allocation4 + $0xf8] sm:$0xff]  }
 0x28c   :  { %6321 = vmatprep.subr.bf16.mxu0 %v7421_v8  ;;  %6343 = vmatprep.subr.bf16.mxu1 %v7422_v9  ;;  %v7463_v7 = vld [vmem:[#allocation4 + $0x38] sm:$0xff]   ;;  %v4554_v8 = vmax.f32 %v6530_v2, 0.0  ;;  %v4566_v23 = vpack.c.bf16 %v4556_v12, %v4556_v12 }
 0x28d   :  { %v7464_v9 = vld [vmem:[#allocation4 + $0xb8] sm:$0xff]  }
 0x28f   :  { %6322 = vmatpush3.bf16.msra.mxu0 %v7423_v14  ;;  %6344 = vmatpush3.bf16.msra.mxu1 %v7424_v15  ;;  %v7466_v14 = vld [vmem:[#allocation4 + $0x1c0] sm:$0xff]   ;;  %v4564_v15 = vpack.c.bf16 %v4554_v8, %v4554_v8 }
 0x290   :  { %6323 = vmatprep.subr.bf16.mxu0 %v7425_v16  ;;  %6345 = vmatprep.subr.bf16.mxu1 %v7426_v18  ;;  %v7468_v16 = vld [vmem:[#allocation4 + $0x180] sm:$0xff]   ;;  %v7469_v18 = vld [vmem:[#allocation4 + $0x148] sm:$0xff]  }
 0x293   :  { %6324 = vmatpush3.bf16.msra.mxu0 %v7427_v24  ;;  %6346 = vmatpush3.bf16.msra.mxu1 %v7428_v28  ;;  %v7472_v24 = vld [vmem:[#allocation4 + $0x188] sm:$0xff]   ;;  %v7473_v28 = vld [vmem:[#allocation4 + $0x150] sm:$0xff]  }
 0x294   :  { %6325 = vmatprep.subr.bf16.mxu0 %v7429_v29  ;;  %6347 = vmatprep.subr.bf16.mxu1 %v7430_v30  ;;  %v7474_v29 = vld [vmem:[#allocation4 + $0x1d0] sm:$0xff]  }
 0x295   :  { %v7475_v30 = vld [vmem:[#allocation4 + $0x110] sm:$0xff]  }
 0x297   :  { %6326 = vmatpush3.bf16.msra.mxu0 %v7431_v35  ;;  %6348 = vmatpush3.bf16.msra.mxu1 %v7432_v36  ;;  %v7478_v35 = vld [vmem:[#allocation4 + $0x1d8] sm:$0xff]  }
 0x298   :  { %6355 = vmatprep.subr.bf16.mxu0 %v7433_v37  ;;  %6377 = vmatprep.subr.bf16.mxu1 %v7434_v38  ;;  %v7479_v36 = vld [vmem:[#allocation4 + $0x118] sm:$0xff]   ;;  %v7481_v38 = vld [vmem:[#allocation4 + $0x160] sm:$0xff]  }
 0x299   :  { %v7480_v37 = vld [vmem:[#allocation4 + $0x198] sm:$0xff]  }
 0x29a   :  { %4507 = vmatmul.mubr.bf16.vlgmr.msra.gmra.mrb[12].mxu0 %v7797_v22  ;;  %4547 = vmatmul.mubr.bf16.vlgmr.msra.gmra.mrb[12].mxu1 %v7811_v31  ;;  %v7446_v22 = vld [vmem:[#allocation4 + $0xd8] sm:$0xff]  }
 0x29b   :  { %6356 = vmatpush3.bf16.msra.mxu0 %v7435_v39  ;;  %5191 = vmatprep.mubr.bf16.mxu0 %v4565_v41  ;;  %v7447_v31 = vld [vmem:[#allocation4 + $0x18] sm:$0xff]   ;;  %v7484_v39 = vld [vmem:[#allocation4 + $0x1a0] sm:$0xff]   ;;  %v7486_v41 = vld [vmem:[#allocation4 + $0x1e8] sm:$0xff]  }
 0x29c   :  { %6378 = vmatpush3.bf16.msra.mxu1 %v7436_v40  ;;  %5231 = vmatprep.mubr.bf16.mxu1 %v4567_v27  ;;  %v7485_v40 = vld [vmem:[#allocation4 + $0x168] sm:$0xff]   ;;  %v7489_v27 = vld [vmem:[#allocation4 + $0x170] sm:$0xff]  }
 0x29d   :  { %6357 = vmatprep.subr.bf16.mxu0 %v7437_v25  ;;  %6379 = vmatprep.subr.bf16.mxu1 %v7438_v42  ;;  %v7487_v25 = vld [vmem:[#allocation4 + $0x128] sm:$0xff]  }
 0x29e   :  { %v7488_v42 = vld [vmem:[#allocation4 + $0x1a8] sm:$0xff]  }
 0x29f   :  { %6358 = vmatpush3.bf16.msra.mxu0 %v7439_v43  ;;  %v7490_v43 = vld [vmem:[#allocation4 + $0x1f0] sm:$0xff]  }
 0x2a0   :  { %6380 = vmatpush3.bf16.msra.mxu1 %v7440_v44  ;;  %6359 = vmatprep.subr.bf16.mxu0 %v7441_v45  ;;  %v7491_v44 = vld [vmem:[#allocation4 + $0x130] sm:$0xff]  }
 0x2a1   :  { %6381 = vmatprep.subr.bf16.mxu1 %v7442_v46  ;;  %v7492_v45 = vld [vmem:[#allocation4 + $0x1b0] sm:$0xff]   ;;  %v7493_v46 = vld [vmem:[#allocation4 + $0x178] sm:$0xff]  }
 0x2a3   :  { %6360 = vmatpush3.bf16.msra.mxu0 %v7443_v49  ;;  %v7494_v49 = vld [vmem:[#allocation4 + $0x1f8] sm:$0xff]  }
 0x2a4   :  { %6382 = vmatpush3.bf16.msra.mxu1 %v7444_v50  ;;  %6361 = vmatprep.subr.bf16.mxu0 %v7445_v51  ;;  %v7495_v50 = vld [vmem:[#allocation4 + $0x138] sm:$0xff]  }
 0x2a5   :  { %6383 = vmatprep.subr.bf16.mxu1 %v7446_v22  ;;  %v7496_v51 = vld [vmem:[#allocation4 + $0x1b8] sm:$0xff]   ;;  %v7647_v22 = vmov 0.0  }
 0x2a7   :  { %6362 = vmatpush3.bf16.msra.mxu0 %v7447_v31  ;;  %v7648_v31 = vmov 1  }
 0x2a8   :  { %6384 = vmatpush3.bf16.msra.mxu1 %v7448_v52  ;;  %6363 = vmatprep.subr.bf16.mxu0 %v7449_v53  ;;  %v97_v52 = vld [vmem:[#allocation6 + $0x20] sm:$0xff]  ;;  %v99_v53 = vld [vmem:[#allocation6 + $0x30] sm:$0xff] }
 0x2a9   :  { %6385 = vmatprep.subr.bf16.mxu1 %v7450_v54  ;;  %6600 = vset.pattern.permute.xlu0 %v7648_v31  ;;  %v98_v54 = vld [vmem:[#allocation6 + $0x28] sm:$0xff] }
 0x2aa   :  { %5360 = vperm.xlu0 %6600, %v7840_v47  }
 0x2ab   :  { %6364 = vmatpush3.bf16.msra.mxu0 %v7451_v55  ;;  %v100_v55 = vld [vmem:[#allocation6 + $0x38] sm:$0xff] }
 0x2ac   :  { %6386 = vmatpush3.bf16.msra.mxu1 %v7452_v56  ;;  %6365 = vmatprep.subr.bf16.mxu0 %v7453_v57  ;;  %v777_v56 = vrot.slane %v97_v52, %v7854_v10  ;;  %v785_v57 = vrot.slane %v99_v53, %v7854_v10  ;;  %v789_v60 = vrot.slane %v100_v55, %v7854_v10  ;;  %v4724_v55 = vsub.s32 4, %v7851_v17 }
 0x2ad   :  { %6387 = vmatprep.subr.bf16.mxu1 %v7454_v59  ;;  %v781_v59 = vrot.slane %v98_v54, %v7854_v10 }
 0x2af   :  { %6366 = vmatpush3.bf16.msra.mxu0 %v7455_v61 }
 0x2b0   :  { %6388 = vmatpush3.bf16.msra.mxu1 %v7456_v63  ;;  %6367 = vmatprep.subr.bf16.mxu0 %v7457_v0 }
 0x2b1   :  { %6389 = vmatprep.subr.bf16.mxu1 %v7458_v13 }
 0x2b3   :  { %6368 = vmatpush3.bf16.msra.mxu0 %v7459_v1 }
 0x2b4   :  { %6390 = vmatpush3.bf16.msra.mxu1 %v7460_v3  ;;  %6369 = vmatprep.subr.bf16.mxu0 %v7461_v4 }
 0x2b5   :  { %6391 = vmatprep.subr.bf16.mxu1 %v7462_v26 }
 0x2b7   :  { %6370 = vmatpush3.bf16.msra.mxu0 %v7463_v7 }
 0x2b8   :  { %6392 = vmatpush3.bf16.msra.mxu1 %v7464_v9  ;;  %6399 = vmatprep.subr.bf16.mxu0 %v7465_v11 }
 0x2b9   :  { %6421 = vmatprep.subr.bf16.mxu1 %v7466_v14  ;;  %v7497_v14 = vld [vmem:[#allocation4 + $0x200] sm:$0xff]  }
 0x2ba   :  { %5192 = vmatmul.mubr.bf16.vlgmr.msra.gmra.mrb[16].mxu0 %v4564_v15 }
 0x2bb   :  { %5232 = vmatmul.mubr.bf16.vlgmr.msra.gmra.mrb[16].mxu1 %v4566_v23  ;;  %6400 = vmatpush3.bf16.msra.mxu0 %v7467_v21  ;;  %v7500_v23 = vld [vmem:[#allocation4 + $0x218] sm:$0xff]  }
 0x2bc   :  { %6422 = vmatpush3.bf16.msra.mxu1 %v7468_v16  ;;  %6401 = vmatprep.subr.bf16.mxu0 %v7469_v18  ;;  %v7498_v16 = vld [vmem:[#allocation4 + $0x208] sm:$0xff]   ;;  %v7499_v18 = vld [vmem:[#allocation4 + $0x210] sm:$0xff]  }
 0x2bd   :  { %6423 = vmatprep.subr.bf16.mxu1 %v7470_v19  ;;  %v7501_v19 = vld [vmem:[#allocation4 + $0x220] sm:$0xff]  }
 0x2bf   :  { %6402 = vmatpush3.bf16.msra.mxu0 %v7471_v20  ;;  %v7502_v20 = vld [vmem:[#allocation4 + $0x228] sm:$0xff]  }
 0x2c0   :  { %6424 = vmatpush3.bf16.msra.mxu1 %v7472_v24  ;;  %6403 = vmatprep.subr.bf16.mxu0 %v7473_v28  ;;  %v101_v24 = vld [vmem:[#allocation6 + $0x40] sm:$0xff]  ;;  %v7503_v28 = vld [vmem:[#allocation4 + $0x230] sm:$0xff]  }
 0x2c1   :  { %6425 = vmatprep.subr.bf16.mxu1 %v7474_v29 }
 0x2c3   :  { %6404 = vmatpush3.bf16.msra.mxu0 %v7475_v30 }
 0x2c4   :  { %6426 = vmatpush3.bf16.msra.mxu1 %v7476_v33  ;;  %6405 = vmatprep.subr.bf16.mxu0 %v7477_v34  ;;  %v793_v33 = vrot.slane %v101_v24, %v7854_v10 }
 0x2c5   :  { %6427 = vmatprep.subr.bf16.mxu1 %v7478_v35 }
 0x2c7   :  { %6406 = vmatpush3.bf16.msra.mxu0 %v7479_v36 }
 0x2c8   :  { %6428 = vmatpush3.bf16.msra.mxu1 %v7480_v37  ;;  %6407 = vmatprep.subr.bf16.mxu0 %v7481_v38 }
 0x2c9   :  { %6429 = vmatprep.subr.bf16.mxu1 %v7482_v48 }
 0x2cb   :  { %6408 = vmatpush3.bf16.msra.mxu0 %v7483_v32  ;;  %v7504_v32 = vld [vmem:[#allocation4 + $0x238] sm:$0xff]  }
 0x2cc   :  { %6430 = vmatpush3.bf16.msra.mxu1 %v7484_v39  ;;  %6409 = vmatprep.subr.bf16.mxu0 %v7485_v40 }
 0x2cd   :  { %6431 = vmatprep.subr.bf16.mxu1 %v7486_v41 }
 0x2cf   :  { %6410 = vmatpush3.bf16.msra.mxu0 %v7487_v25 }
 0x2d0   :  { %6432 = vmatpush3.bf16.msra.mxu1 %v7488_v42  ;;  %6411 = vmatprep.subr.bf16.mxu0 %v7489_v27 }
 0x2d1   :  { %6433 = vmatprep.subr.bf16.mxu1 %v7490_v43 }
 0x2d3   :  { %6412 = vmatpush3.bf16.msra.mxu0 %v7491_v44 }
 0x2d4   :  { %6434 = vmatpush3.bf16.msra.mxu1 %v7492_v45  ;;  %6413 = vmatprep.subr.bf16.mxu0 %v7493_v46 }
 0x2d5   :  { %6435 = vmatprep.subr.bf16.mxu1 %v7494_v49 }
 0x2d7   :  { %6414 = vmatpush3.bf16.msra.mxu0 %v7495_v50 }
 0x2d8   :  { %6436 = vmatpush3.bf16.msra.mxu1 %v7496_v51  ;;  %6470 = vmatprep.subr.bf16.mxu0 %v7647_v22 }
 0x2d9   :  { %6490 = vmatprep.subr.bf16.mxu1 %v7647_v22 }
 0x32d   :  { %v4223_v61 = vpop.f32.mrb[4].mxu0  ;;  %v4387_v62 = vpop.f32.mrb[4].mxu1 }
 0x32e   :  { %v6534_v63 = vadd.f32 %v4223_v61, %v777_v56  ;;  %v6536_v0 = vadd.f32 %v4387_v62, %v785_v57  ;;  %v4225_v5 = vpop.f32.mrb[5].mxu0  ;;  %v4389_v13 = vpop.f32.mrb[5].mxu1  ;;  %v4725_v56 = vrot.slane %v7862_v58, %v4724_v55  ;;  %v7505_v61 = vld [vmem:[#allocation7] sm:$0xff]  }
 0x32f   :  { %v6535_v1 = vadd.f32 %v4225_v5, %v781_v59  ;;  %v6537_v47 = vadd.f32 %v4389_v13, %v789_v60  ;;  %v4227_v2 = vpop.f32.mrb[6].mxu0  ;;  %v4391_v3 = vpop.f32.mrb[6].mxu1 }
 0x330   :  { %v4558_v4 = vmax.f32 %v6534_v63, 0.0  ;;  %v4560_v6 = vmax.f32 %v6536_v0, 0.0  ;;  %v4228_v26 = vpop.f32.mrb[7].mxu0  ;;  %v4392_v7 = vpop.f32.mrb[7].mxu1 }
 0x331   :  { %v4559_v8 = vmax.f32 %v6535_v1, 0.0  ;;  %v4561_v9 = vmax.f32 %v6537_v47, 0.0  ;;  %v4720_v57 = vpop.permute.xlu0 %4719  ;;  %v7506_v1 = vld [vmem:[#allocation7 + $0x8] sm:$0xff]   ;;  %v7507_v7 = vld [vmem:[#allocation7 + $0x10] sm:$0xff]  }
 0x332   :  { %v4568_v21 = vpack.c.bf16 %v4558_v4, %v4558_v4  ;;  %v4570_v15 = vpack.c.bf16 %v4560_v6, %v4560_v6  ;;  %v4726_v60 = vmul.f32 %v4725_v56, %v4720_v57 }
 0x333   :  { %v4569_v11 = vpack.c.bf16 %v4559_v8, %v4559_v8  ;;  %v4571_v12 = vpack.c.bf16 %v4561_v9, %v4561_v9  ;;  %v7508_v8 = vld [vmem:[#allocation7 + $0x18] sm:$0xff]   ;;  %v7509_v9 = vld [vmem:[#allocation7 + $0x20] sm:$0xff]  }
 0x335   :  { %5271 = vmatprep.mubr.bf16.mxu0 %v4569_v11  ;;  %5311 = vmatprep.mubr.bf16.mxu1 %v4571_v12  ;;  %v7510_v11 = vld [vmem:[#allocation7 + $0x28] sm:$0xff]   ;;  %v7511_v12 = vld [vmem:[#allocation7 + $0x30] sm:$0xff]  }
 0x336   :  { %5272 = vmatmul.mubr.bf16.vlgmr.msra.gmra.mrb[20].mxu0 %v4568_v21  ;;  %5312 = vmatmul.mubr.bf16.vlgmr.msra.gmra.mrb[20].mxu1 %v4570_v15  ;;  %v7513_v21 = vld [vmem:[#allocation9] sm:$0xff]   ;;  %v7514_v15 = vld [vmem:[#allocation9 + $0x8] sm:$0xff]  }
 0x337   :  { %6471 = vmatpush3.bf16.msra.mxu0 %v7497_v14  ;;  %6486 = vmatprep.mubr.msk.bf16.mxu0 %vm7649_vm0, %v7647_v22  ;;  %v7512_v14 = vld [vmem:[#allocation7 + $0x38] sm:$0xff]  }
 0x338   :  { %6472 = vmatprep.subr.bf16.mxu0 %v7647_v22  ;;  %6506 = vmatprep.mubr.msk.bf16.mxu1 %vm7649_vm0, %v7647_v22 }
 0x339   :  { %6491 = vmatpush3.bf16.msra.mxu1 %v7505_v61 }
 0x33a   :  { %6492 = vmatprep.subr.bf16.mxu1 %v7647_v22 }
 0x33b   :  { %6473 = vmatpush3.bf16.msra.mxu0 %v7498_v16  ;;  %v7515_v16 = vld [vmem:[#allocation9 + $0x10] sm:$0xff]  }
 0x33c   :  { %6474 = vmatprep.subr.bf16.mxu0 %v7647_v22 }
 0x33d   :  { %6493 = vmatpush3.bf16.msra.mxu1 %v7506_v1 }
 0x33e   :  { %6494 = vmatprep.subr.bf16.mxu1 %v7647_v22 }
 0x33f   :  { %6475 = vmatpush3.bf16.msra.mxu0 %v7499_v18  ;;  %v7516_v18 = vld [vmem:[#allocation9 + $0x18] sm:$0xff]  }
 0x340   :  { %6476 = vmatprep.subr.bf16.mxu0 %v7647_v22 }
 0x341   :  { %6495 = vmatpush3.bf16.msra.mxu1 %v7507_v7 }
 0x342   :  { %6496 = vmatprep.subr.bf16.mxu1 %v7647_v22 }
 0x343   :  { %6477 = vmatpush3.bf16.msra.mxu0 %v7500_v23  ;;  %v7517_v23 = vld [vmem:[#allocation9 + $0x20] sm:$0xff]  }
 0x344   :  { %6478 = vmatprep.subr.bf16.mxu0 %v7647_v22 }
 0x345   :  { %6497 = vmatpush3.bf16.msra.mxu1 %v7508_v8 }
 0x346   :  { %6498 = vmatprep.subr.bf16.mxu1 %v7647_v22 }
 0x347   :  { %6479 = vmatpush3.bf16.msra.mxu0 %v7501_v19  ;;  %v7518_v19 = vld [vmem:[#allocation9 + $0x28] sm:$0xff]  }
 0x348   :  { %6480 = vmatprep.subr.bf16.mxu0 %v7647_v22 }
 0x349   :  { %6499 = vmatpush3.bf16.msra.mxu1 %v7509_v9 }
 0x34a   :  { %6500 = vmatprep.subr.bf16.mxu1 %v7647_v22 }
 0x34b   :  { %6481 = vmatpush3.bf16.msra.mxu0 %v7502_v20 }
 0x34c   :  { %6482 = vmatprep.subr.bf16.mxu0 %v7647_v22 }
 0x34d   :  { %v6283_v29 = vpop.f32.mrb[8].mxu0  ;;  %v6305_v30 = vpop.f32.mrb[8].mxu1  ;;  %6501 = vmatpush3.bf16.msra.mxu1 %v7510_v11 }
 0x34e   :  { %v6284_v34 = vpop.f32.mrb[9].mxu0  ;;  %v6306_v35 = vpop.f32.mrb[9].mxu1  ;;  %6502 = vmatprep.subr.bf16.mxu1 %v7647_v22 }
 0x34f   :  { %v6285_v36 = vadd.f32 %v6284_v34, %v6283_v29  ;;  %v6307_v37 = vadd.f32 %v6306_v35, %v6305_v30  ;;  %v6286_v38 = vpop.f32.mrb[10].mxu0  ;;  %v6308_v48 = vpop.f32.mrb[10].mxu1  ;;  %6483 = vmatpush3.bf16.msra.mxu0 %v7503_v28 }
 0x350   :  { %v6287_v39 = vpop.f32.mrb[11].mxu0  ;;  %v6309_v40 = vpop.f32.mrb[11].mxu1  ;;  %6484 = vmatprep.subr.bf16.mxu0 %v7647_v22 }
 0x351   :  { %v4429_v41 = vadd.f32 %v6285_v36, %v793_v33  ;;  %6503 = vmatpush3.bf16.msra.mxu1 %v7511_v12  ;;  %v5361_v40 = vpop.permute.xlu0 %5360 }
 0x352   :  { %6504 = vmatprep.subr.bf16.mxu1 %v7647_v22 }
 0x353   :  { %v4469_v25 = vadd.f32 %v6307_v37, %v4429_v41  ;;  %6485 = vmatpush3.bf16.msra.mxu0 %v7504_v32  ;;  %v5365_v32 = vsub.s32 5, %v7851_v17  ;;  %v5371_v41 = vsub.s32 1, %v7851_v17 }
 0x354   :  { %6510 = vmatprep.subr.bf16.mxu0 %v7647_v22 }
 0x355   :  { %6505 = vmatpush3.bf16.msra.mxu1 %v7512_v14  ;;  %v5366_v39 = vrot.slane %v7862_v58, %v5365_v32 }
 0x36d   :  { %v6327_v42 = vpop.f32.mrb[12].mxu0  ;;  %v6349_v27 = vpop.f32.mrb[12].mxu1 }
 0x36e   :  { %v6328_v10 = vpop.f32.mrb[13].mxu0  ;;  %v6350_v43 = vpop.f32.mrb[13].mxu1 }
 0x36f   :  { %v6329_v44 = vadd.f32 %v6328_v10, %v6327_v42  ;;  %v6351_v45 = vadd.f32 %v6350_v43, %v6349_v27  ;;  %v6330_v46 = vpop.f32.mrb[14].mxu0  ;;  %v6352_v49 = vpop.f32.mrb[14].mxu1  ;;  %v5372_v10 = vrot.slane %v7862_v58, %v5371_v41 }
 0x370   :  { %v6331_v50 = vpop.f32.mrb[15].mxu0  ;;  %v6353_v51 = vpop.f32.mrb[15].mxu1 }
 0x371   :  { %v4509_v31 = vadd.f32 %v6329_v44, %v4469_v25  ;;  %v5367_v25 = vmul.f32 %v5366_v39, %v5361_v40 }
 0x373   :  { %v4549_v52 = vadd.f32 %v6351_v45, %v4509_v31  ;;  %v7519_v31 = vld [vmem:[#allocation9 + $0x30] sm:$0xff]  }
 0x375   :  { %v4562_v53 = vmax.f32 %v4549_v52, 0.0  ;;  %v7520_v52 = vld [vmem:[#allocation9 + $0x38] sm:$0xff]  }
 0x377   :  { %v4572_v54 = vpack.c.bf16 %v4562_v53, %v4562_v53  ;;  %v5394_v53 = vsub.s32 2, %v7851_v17 }
 0x379   :  { %6487 = vmatmul.mubr.bf16.vlgmr.msra.gmra.mrb[24].mxu0 %v4572_v54  ;;  %v5395_v54 = vrot.slane %v7862_v58, %v5394_v53 }
 0x37a   :  { %6526 = vmatprep.mubr.msk.bf16.mxu0 %vm7649_vm0, %v7647_v22  ;;  %6511 = vmatpush3.bf16.msra.mxu0 %v7513_v21 }
 0x37b   :  { %6512 = vmatprep.subr.bf16.mxu0 %v7647_v22 }
 0x37e   :  { %6513 = vmatpush3.bf16.msra.mxu0 %v7514_v15 }
 0x37f   :  { %6514 = vmatprep.subr.bf16.mxu0 %v7647_v22 }
 0x382   :  { %6515 = vmatpush3.bf16.msra.mxu0 %v7515_v16 }
 0x383   :  { %6516 = vmatprep.subr.bf16.mxu0 %v7647_v22 }
 0x386   :  { %6517 = vmatpush3.bf16.msra.mxu0 %v7516_v18 }
 0x387   :  { %6518 = vmatprep.subr.bf16.mxu0 %v7647_v22 }
 0x38a   :  { %6519 = vmatpush3.bf16.msra.mxu0 %v7517_v23 }
 0x38b   :  { %6520 = vmatprep.subr.bf16.mxu0 %v7647_v22 }
 0x38d   :  { %v6371_v59 = vpop.f32.mrb[16].mxu0 }
 0x38e   :  { %v6393_v62 = vpop.f32.mrb[16].mxu1  ;;  %v6372_v63 = vpop.f32.mrb[17].mxu0  ;;  %6521 = vmatpush3.bf16.msra.mxu0 %v7518_v19 }
 0x38f   :  { %v6373_v0 = vadd.f32 %v6372_v63, %v6371_v59  ;;  %v6394_v5 = vpop.f32.mrb[17].mxu1  ;;  %v6374_v13 = vpop.f32.mrb[18].mxu0  ;;  %6522 = vmatprep.subr.bf16.mxu0 %v7647_v22  ;;  %v5504_v63 = vsub.s32 3, %v7851_v17 }
 0x390   :  { %v6395_v47 = vadd.f32 %v6394_v5, %v6393_v62  ;;  %v6396_v2 = vpop.f32.mrb[18].mxu1  ;;  %v6375_v3 = vpop.f32.mrb[19].mxu0 }
 0x391   :  { %v5194_v4 = vadd.f32 %v6373_v0, %v4726_v60  ;;  %v6397_v6 = vpop.f32.mrb[19].mxu1  ;;  %v5505_v0 = vrot.slane %v7862_v58, %v5504_v63 }
 0x392   :  { %6523 = vmatpush3.bf16.msra.mxu0 %v7519_v31 }
 0x393   :  { %v5234_v26 = vadd.f32 %v6395_v47, %v5194_v4  ;;  %6524 = vmatprep.subr.bf16.mxu0 %v7647_v22 }
 0x396   :  { %6525 = vmatpush3.bf16.msra.mxu0 %v7520_v52 }
 0x409   :  { %v6415_v20 = vpop.f32.mrb[20].mxu0  ;;  %v6437_v24 = vpop.f32.mrb[20].mxu1 }
 0x40a   :  { %v6416_v28 = vpop.f32.mrb[21].mxu0  ;;  %v6438_v29 = vpop.f32.mrb[21].mxu1 }
 0x40b   :  { %v6417_v30 = vadd.f32 %v6416_v28, %v6415_v20  ;;  %v6439_v33 = vadd.f32 %v6438_v29, %v6437_v24  ;;  %v6418_v34 = vpop.f32.mrb[22].mxu0  ;;  %v6440_v35 = vpop.f32.mrb[22].mxu1 }
 0x40c   :  { %v6419_v36 = vpop.f32.mrb[23].mxu0  ;;  %v6441_v37 = vpop.f32.mrb[23].mxu1 }
 0x40d   :  { %v5274_v38 = vadd.f32 %v6417_v30, %v5234_v26 }
 0x40f   :  { %v5314_v48 = vadd.f32 %v6439_v33, %v5274_v38 }
 0x44c   :  { %v5353_v42 = vpop.f32.mrb[24].mxu0 }
 0x44d   :  { %v5354_v27 = vadd.f32 %v5353_v42, %v5314_v48  ;;  %v6488_v43 = vpop.f32.mrb[25].mxu0 }
 0x44e   :  { %v5356_v44 = vpop.f32.mrb[26].mxu0 }
 0x44f   :  { %v5368_v45 = vadd.f32 %v5367_v25, %v5354_v27  ;;  %v6489_v46 = vpop.f32.mrb[27].mxu0 }
 0x451   :  { %v5373_v49 = vadd.f32 %v5372_v10, %v5368_v45 }
 0x453   :  { %v5374_v50 = vmax.f32 %v5373_v49, 0.0 }
 0x455   :  { %v5375_v51 = vpack.c.bf16 %v5374_v50, %v5374_v50 }
 0x457   :  { %6507 = vmatmul.mubr.bf16.vlgmr.msra.gmra.mrb[24].mxu1 %v5375_v51 }
 0x52a   :  { %v5478_v55 = vpop.f32.mrb[24].mxu1 }
 0x52b   :  { %v5479_v56 = vadd.f32 %v5478_v55, %v5395_v54  ;;  %v6508_v57 = vpop.f32.mrb[25].mxu1 }
 0x52c   :  { %v5481_v59 = vpop.f32.mrb[26].mxu1 }
 0x52d   :  { %v5484_v60 = vmax.f32 %v5479_v56, 0.0  ;;  %v6509_v61 = vpop.f32.mrb[27].mxu1 }
 0x52f   :  { %v5485_v62 = vpack.c.bf16 %v5484_v60, %v5484_v60 }
 0x531   :  { %6527 = vmatmul.mubr.bf16.vlgmr.msra.gmra.mrb[28].mxu0 %v5485_v62 }
 0x604   :  { %v5588_v5 = vpop.f32.mrb[28].mxu0 }
 0x605   :  { %v5589_v22 = vadd.f32 %v5588_v5, %v5505_v0  ;;  %v6528_v13 = vpop.f32.mrb[29].mxu0 }
 0x606   :  { %v5591_v1 = vpop.f32.mrb[30].mxu0 }
 0x607   :  { %v5594_v47 = vmax.f32 %v5589_v22, 0.0  ;;  %v6529_v2 = vpop.f32.mrb[31].mxu0 }
 0x609   :  { %5595 = vst [vmem:[%s7925_s7] sm:$0xff] %v5594_v47 }
 0x60a   :  { %5600 = vsyncpa [#allocation3], 1 }
 0x60b   :  { %5601 = vsyncpa [#allocation5], 1 }
 0x60c   :  { %5602 = vsyncpa [#allocation8], 1 }

</bundles_post_ra>
